<compile_context>
chip_gen: v7x
topology: tpu7x:2x2x1
jax: 0.10.0
libtpu: 0.0.40
codegen_flags: <defaults>
</compile_context>

<pallas_src>
import jax
import jax.numpy as jnp
from jax.experimental import pallas as pl
from jax.experimental.pallas import tpu as pltpu

_LANE = 128


def _leaky_relu(x, negative_slope=0.01):
    # Matches torch.nn.functional.leaky_relu default slope.
    return jnp.where(x >= 0, x, negative_slope * x)


def mlp_kernel(f_ref,
               w1_ref, b1_ref,
               w2_ref, b2_ref,
               w3_ref, b3_ref,
               w4_ref, b4_ref,
               o_ref):
    # f arrives as f32; cast to bf16 here (cheap VPU work hidden under the matmuls)
    # instead of a separate wrapper-side convert that would cost an extra HBM pass.
    h = f_ref[...].astype(jnp.bfloat16)                 # (tm, in_feats) bf16

    # Biases read once as (1, out) f32 rows (single broadcast per layer).
    b1 = b1_ref[...]
    b2 = b2_ref[...]
    b3 = b3_ref[...]
    b4 = b4_ref[...]                                    # (1, 1)

    # layers 1-3: bf16 MXU matmuls, f32 accumulation
    a = jnp.dot(h, w1_ref[...], preferred_element_type=jnp.float32) + b1
    h = _leaky_relu(a).astype(jnp.bfloat16)             # (tm, 256)

    a = jnp.dot(h, w2_ref[...], preferred_element_type=jnp.float32) + b2
    h = _leaky_relu(a).astype(jnp.bfloat16)             # (tm, 128)

    a = jnp.dot(h, w3_ref[...], preferred_element_type=jnp.float32) + b3
    h = _leaky_relu(a)                                  # (tm, 64) f32

    # layer 4: (tm,64)@(64,1) would use a single MXU lane; do it on the VPU/XLU
    # instead and produce the result directly in the lane-dense output layout.
    _, g, lanes = o_ref.shape                           # (1, tm//128, 128)
    hr = h.reshape(g, lanes, h.shape[-1])               # split sublane dim only
    w4 = w4_ref[...].reshape(1, 1, h.shape[-1])         # (1, 1, 64) f32
    s = jnp.sum(hr * w4, axis=-1) + b4                  # (tm//128, 128) f32
    o_ref[...] = jax.nn.sigmoid(s).reshape(o_ref.shape)


def _chip_info():
    """Best-effort TPU generation detection for tm / VMEM-budget tuning."""
    kind = ""
    try:
        kind = jax.devices()[0].device_kind.lower()
    except Exception:
        pass
    is_v7 = "v7" in kind
    # v7x: 64 MiB physical VMEM per TensorCore -> budget 48 MiB; v5e/v6e: 128 MiB -> 96 MiB.
    vmem_cap = (48 << 20) if is_v7 else (96 << 20)
    num_cores = 2 if is_v7 else 1
    return num_cores, vmem_cap


def _vmem_bytes(tm, in_feats, row_buffers=2):
    """Rough VMEM estimate: pipelined f32 row tiles + resident bf16 weights + output + headroom."""
    inp = row_buffers * tm * in_feats * 4                        # f32 input tiles
    wts = (in_feats * 256 + 256 * 128 + 128 * 64) * 2 + 64 * 4   # bf16 weights (single-buffered) + f32 w4
    bia = (256 + 128 + 64 + 1) * 4
    out = 2 * tm * 4                                             # double-buffered output slab
    act = tm * (256 * 2 + 256 * 4)                               # intermediate-activation headroom
    return inp + wts + bia + out + act


def mlp_forward(f, params, *, tm=1024):
    """f: (N, in_feats) float32. params: w_i (in_i, out_i) (transposed vs torch), b_i (1, out_i)."""
    N, in_feats = f.shape
    num_cores, vmem_cap = _chip_info()

    # --- row-tile selection --------------------------------------------------
    # Pad N only to a multiple of 128 (waste < 128 rows), then pick the row tile as a
    # divisor of the padded block count:
    #   * single-TC parts: largest tile within the VMEM budget (fewer serial grid steps),
    #   * v7x (2 TCs): keep >= 4 "parallel" grid steps so both cores load-balance.
    num_blocks = pl.cdiv(N, _LANE)
    n_pad = num_blocks * _LANE
    max_blocks = max(1, min(tm // _LANE, num_blocks))
    if num_cores > 1:
        max_blocks = min(max_blocks, max(1, num_blocks // (2 * num_cores)))

    vmem_budget = int(0.7 * vmem_cap)
    blocks_per_tile = 1
    for d in range(max_blocks, 0, -1):
        if num_blocks % d == 0 and _vmem_bytes(d * _LANE, in_feats) <= vmem_budget:
            blocks_per_tile = d
            break
    tm = blocks_per_tile * _LANE
    grid = (num_blocks // blocks_per_tile,)

    if n_pad != N:
        f = jnp.pad(f, ((0, n_pad - N), (0, 0)))

    # Weights to bf16 (tiny one-off casts); biases stay f32. f itself streams in f32
    # and is cast to bf16 inside the kernel.
    w1 = params["w1"].astype(jnp.bfloat16); b1 = params["b1"]
    w2 = params["w2"].astype(jnp.bfloat16); b2 = params["b2"]
    w3 = params["w3"].astype(jnp.bfloat16); b3 = params["b3"]
    w4 = params["w4"].reshape(1, -1)                    # (1, 64) f32, used on the VPU
    b4 = params["b4"]                                   # (1, 1)  f32

    def resident_spec(shape):
        # Constant block index -> fetched once, resident in VMEM across the whole grid.
        # Buffered(1): no double-buffering of data that never changes.
        return pl.BlockSpec(shape, lambda i: (0,) * len(shape),
                            pipeline_mode=pl.Buffered(1))

    row_spec = pl.BlockSpec((tm, in_feats), lambda i: (i, 0),
                            pipeline_mode=pl.Buffered(2))

    vmem_limit = int(min(vmem_cap, max(32 << 20, 2 * _vmem_bytes(tm, in_feats))))

    out3d = pl.pallas_call(
        mlp_kernel,
        out_shape=jax.ShapeDtypeStruct((grid[0], blocks_per_tile, _LANE), jnp.float32),
        grid_spec=pltpu.PrefetchScalarGridSpec(
            num_scalar_prefetch=0,
            grid=grid,
            in_specs=[
                row_spec,
                resident_spec(w1.shape), resident_spec(b1.shape),
                resident_spec(w2.shape), resident_spec(b2.shape),
                resident_spec(w3.shape), resident_spec(b3.shape),
                resident_spec(w4.shape), resident_spec(b4.shape),
            ],
            out_specs=pl.BlockSpec((1, blocks_per_tile, _LANE), lambda i: (i, 0, 0)),
        ),
        compiler_params=pltpu.CompilerParams(
            dimension_semantics=("parallel",),
            vmem_limit_bytes=vmem_limit),
    )(f, w1, b1, w2, b2, w3, b3, w4, b4)

    # Lane-dense slab -> (N, 1): element (i, j, k) is batch row i*tm + j*128 + k.
    return out3d.reshape(n_pad, 1)[:N]


def init_params(key, in_feats):
    """Deterministic init mimicking nn.Linear's U(-1/sqrt(fan_in), 1/sqrt(fan_in))."""
    dims = [(in_feats, 256), (256, 128), (128, 64), (64, 1)]
    params = {}
    for idx, (fin, fout) in enumerate(dims, start=1):
        key, kw, kb = jax.random.split(key, 3)
        bound = 1.0 / jnp.sqrt(fin)
        params[f"w{idx}"] = jax.random.uniform(
            kw, (fin, fout), jnp.float32, minval=-bound, maxval=bound)
        params[f"b{idx}"] = jax.random.uniform(
            kb, (1, fout), jnp.float32, minval=-bound, maxval=bound)
    return params


def reference_forward(f, params):
    """Pure f32 reference matching the PyTorch module's forward semantics."""
    h = f
    for i in (1, 2, 3, 4):
        h = jnp.dot(h, params[f"w{i}"]) + params[f"b{i}"]
        if i < 4:
            h = jnp.where(h >= 0, h, 0.01 * h)
    return jax.nn.sigmoid(h)


if __name__ == "__main__":
    key = jax.random.PRNGKey(0)
    k_in, k_param = jax.random.split(key)

    batch, in_feats = 300, 32            # exercises 128-multiple padding (300 -> 384)
    f = jax.random.normal(k_in, (batch, in_feats), dtype=jnp.float32)
    params = init_params(k_param, in_feats)

    ref = reference_forward(f, params)

    # Default (large-tile) path.
    out = jax.block_until_ready(mlp_forward(f, params))
    assert out.shape == (batch, 1)
    assert jnp.allclose(out, ref, atol=2e-2, rtol=2e-2), float(jnp.max(jnp.abs(out - ref)))

    # Forced 128-row tiles -> multi-step grid; exercises the pipeline and pad slice-off.
    out_small = jax.block_until_ready(mlp_forward(f, params, tm=128))
    assert jnp.allclose(out_small, ref, atol=2e-2, rtol=2e-2), \
        float(jnp.max(jnp.abs(out_small - ref)))

    print("KERNEL_OK")
</pallas_src>

<mosaic_0001>
module attributes {stable_mosaic.version = 11 : i64} {
  func.func @mlp_kernel(%arg0: i32, %arg1: memref<384x32xf32, #tpu.memory_space<vmem>>, %arg2: memref<32x256xbf16, #tpu.memory_space<vmem>>, %arg3: memref<1x256xf32, #tpu.memory_space<vmem>>, %arg4: memref<256x128xbf16, #tpu.memory_space<vmem>>, %arg5: memref<1x128xf32, #tpu.memory_space<vmem>>, %arg6: memref<128x64xbf16, #tpu.memory_space<vmem>>, %arg7: memref<1x64xf32, #tpu.memory_space<vmem>>, %arg8: memref<1x64xf32, #tpu.memory_space<vmem>>, %arg9: memref<1x1xf32, #tpu.memory_space<vmem>>, %arg10: memref<1x3x128xf32, #tpu.memory_space<vmem>>) attributes {dimension_semantics = [#tpu.dimension_semantics<parallel>], iteration_bounds = array<i64: 1>, scalar_prefetch = 0 : i64, scratch_operands = 0 : i64, tpu.core_type = #tpu.core_type<tc>, window_params = [{pipeline_mode = #tpu.pipeline_mode<double_buffered>, transform_indices = @transform_0, window_bounds = array<i64: 384, 32>}, {pipeline_mode = #tpu.pipeline_mode<synchronous>, transform_indices = @transform_1, window_bounds = array<i64: 32, 256>}, {pipeline_mode = #tpu.pipeline_mode<synchronous>, transform_indices = @transform_2, window_bounds = array<i64: 1, 256>}, {pipeline_mode = #tpu.pipeline_mode<synchronous>, transform_indices = @transform_3, window_bounds = array<i64: 256, 128>}, {pipeline_mode = #tpu.pipeline_mode<synchronous>, transform_indices = @transform_4, window_bounds = array<i64: 1, 128>}, {pipeline_mode = #tpu.pipeline_mode<synchronous>, transform_indices = @transform_5, window_bounds = array<i64: 128, 64>}, {pipeline_mode = #tpu.pipeline_mode<synchronous>, transform_indices = @transform_6, window_bounds = array<i64: 1, 64>}, {pipeline_mode = #tpu.pipeline_mode<synchronous>, transform_indices = @transform_7, window_bounds = array<i64: 1, 64>}, {pipeline_mode = #tpu.pipeline_mode<synchronous>, transform_indices = @transform_8, window_bounds = array<i64: 1, 1>}, {transform_indices = @transform_9, window_bounds = array<i64: 1, 3, 128>}]} {
    %c0 = arith.constant 0 : index
    %c0_0 = arith.constant 0 : index
    %0 = vector.load %arg1[%c0, %c0_0] : memref<384x32xf32, #tpu.memory_space<vmem>>, vector<384x32xf32>
    %1 = arith.truncf %0 : vector<384x32xf32> to vector<384x32xbf16>
    %c0_1 = arith.constant 0 : index
    %c0_2 = arith.constant 0 : index
    %2 = vector.load %arg3[%c0_1, %c0_2] : memref<1x256xf32, #tpu.memory_space<vmem>>, vector<1x256xf32>
    %c0_3 = arith.constant 0 : index
    %c0_4 = arith.constant 0 : index
    %3 = vector.load %arg5[%c0_3, %c0_4] : memref<1x128xf32, #tpu.memory_space<vmem>>, vector<1x128xf32>
    %c0_5 = arith.constant 0 : index
    %c0_6 = arith.constant 0 : index
    %4 = vector.load %arg7[%c0_5, %c0_6] : memref<1x64xf32, #tpu.memory_space<vmem>>, vector<1x64xf32>
    %c0_7 = arith.constant 0 : index
    %c0_8 = arith.constant 0 : index
    %5 = vector.load %arg9[%c0_7, %c0_8] : memref<1x1xf32, #tpu.memory_space<vmem>>, vector<1x1xf32>
    %c0_9 = arith.constant 0 : index
    %c0_10 = arith.constant 0 : index
    %6 = vector.load %arg2[%c0_9, %c0_10] : memref<32x256xbf16, #tpu.memory_space<vmem>>, vector<32x256xbf16>
    %cst = arith.constant dense<0.000000e+00> : vector<384x256xf32>
    %7 = tpu.matmul %1, %6, %cst {dimension_numbers = #tpu.dot_dimension_numbers<[1], [0], [0], [1], [0, 0, 1, 1], [], []>} : vector<384x32xbf16>, vector<32x256xbf16>, vector<384x256xf32> -> vector<384x256xf32>
    %8 = vector.broadcast %2 : vector<1x256xf32> to vector<384x256xf32>
    %9 = arith.addf %7, %8 : vector<384x256xf32>
    %cst_11 = arith.constant 0.000000e+00 : f32
    %10 = vector.broadcast %cst_11 : f32 to vector<384x256xf32>
    %11 = arith.cmpf oge, %9, %10 : vector<384x256xf32>
    %cst_12 = arith.constant 0.00999999977 : f32
    %12 = vector.broadcast %cst_12 : f32 to vector<384x256xf32>
    %13 = arith.mulf %12, %9 : vector<384x256xf32>
    %14 = arith.select %11, %9, %13 : vector<384x256xi1>, vector<384x256xf32>
    %15 = arith.truncf %14 : vector<384x256xf32> to vector<384x256xbf16>
    %c0_13 = arith.constant 0 : index
    %c0_14 = arith.constant 0 : index
    %16 = vector.load %arg4[%c0_13, %c0_14] : memref<256x128xbf16, #tpu.memory_space<vmem>>, vector<256x128xbf16>
    %cst_15 = arith.constant dense<0.000000e+00> : vector<384x128xf32>
    %17 = tpu.matmul %15, %16, %cst_15 {dimension_numbers = #tpu.dot_dimension_numbers<[1], [0], [0], [1], [0, 0, 1, 1], [], []>} : vector<384x256xbf16>, vector<256x128xbf16>, vector<384x128xf32> -> vector<384x128xf32>
    %18 = vector.broadcast %3 : vector<1x128xf32> to vector<384x128xf32>
    %19 = arith.addf %17, %18 : vector<384x128xf32>
    %cst_16 = arith.constant 0.000000e+00 : f32
    %20 = vector.broadcast %cst_16 : f32 to vector<384x128xf32>
    %21 = arith.cmpf oge, %19, %20 : vector<384x128xf32>
    %cst_17 = arith.constant 0.00999999977 : f32
    %22 = vector.broadcast %cst_17 : f32 to vector<384x128xf32>
    %23 = arith.mulf %22, %19 : vector<384x128xf32>
    %24 = arith.select %21, %19, %23 : vector<384x128xi1>, vector<384x128xf32>
    %25 = arith.truncf %24 : vector<384x128xf32> to vector<384x128xbf16>
    %c0_18 = arith.constant 0 : index
    %c0_19 = arith.constant 0 : index
    %26 = vector.load %arg6[%c0_18, %c0_19] : memref<128x64xbf16, #tpu.memory_space<vmem>>, vector<128x64xbf16>
    %cst_20 = arith.constant dense<0.000000e+00> : vector<384x64xf32>
    %27 = tpu.matmul %25, %26, %cst_20 {dimension_numbers = #tpu.dot_dimension_numbers<[1], [0], [0], [1], [0, 0, 1, 1], [], []>} : vector<384x128xbf16>, vector<128x64xbf16>, vector<384x64xf32> -> vector<384x64xf32>
    %28 = vector.broadcast %4 : vector<1x64xf32> to vector<384x64xf32>
    %29 = arith.addf %27, %28 : vector<384x64xf32>
    %cst_21 = arith.constant 0.000000e+00 : f32
    %30 = vector.broadcast %cst_21 : f32 to vector<384x64xf32>
    %31 = arith.cmpf oge, %29, %30 : vector<384x64xf32>
    %cst_22 = arith.constant 0.00999999977 : f32
    %32 = vector.broadcast %cst_22 : f32 to vector<384x64xf32>
    %33 = arith.mulf %32, %29 : vector<384x64xf32>
    %34 = arith.select %31, %29, %33 : vector<384x64xi1>, vector<384x64xf32>
    %35 = vector.shape_cast %34 : vector<384x64xf32> to vector<3x128x64xf32>
    %c0_23 = arith.constant 0 : index
    %c0_24 = arith.constant 0 : index
    %36 = vector.load %arg8[%c0_23, %c0_24] : memref<1x64xf32, #tpu.memory_space<vmem>>, vector<1x64xf32>
    %37 = vector.shape_cast %36 : vector<1x64xf32> to vector<1x1x64xf32>
    %38 = vector.broadcast %37 : vector<1x1x64xf32> to vector<3x128x64xf32>
    %39 = arith.mulf %35, %38 : vector<3x128x64xf32>
    %cst_25 = arith.constant dense<0.000000e+00> : vector<3x128xf32>
    %40 = vector.multi_reduction <add>, %39, %cst_25 [2] : vector<3x128x64xf32> to vector<3x128xf32>
    %41 = vector.broadcast %5 : vector<1x1xf32> to vector<3x128xf32>
    %42 = arith.addf %40, %41 : vector<3x128xf32>
    %43 = arith.negf %42 : vector<3x128xf32>
    %44 = math.exp %43 : vector<3x128xf32>
    %cst_26 = arith.constant 1.000000e+00 : f32
    %45 = vector.broadcast %cst_26 : f32 to vector<3x128xf32>
    %46 = arith.addf %45, %44 : vector<3x128xf32>
    %47 = arith.divf %45, %46 : vector<3x128xf32>
    %48 = vector.shape_cast %47 : vector<3x128xf32> to vector<1x3x128xf32>
    %c0_27 = arith.constant 0 : index
    %c0_28 = arith.constant 0 : index
    %c0_29 = arith.constant 0 : index
    %49 = vector.load %arg10[%c0_27, %c0_28, %c0_29] : memref<1x3x128xf32, #tpu.memory_space<vmem>>, vector<1x3x128xf32>
    tpu.vector_store %arg10[%c0_27, %c0_28, %c0_29], %48 {strides = array<i32>} : memref<1x3x128xf32, #tpu.memory_space<vmem>>, vector<1x3x128xf32>,
    return
  }
  func.func @transform_0(%arg0: i32) -> (i32, i32) {
    %c0_i32 = arith.constant 0 : i32
    %c0_i32_0 = arith.constant 0 : i32
    return %arg0, %c0_i32 : i32, i32
  }
  func.func @transform_1(%arg0: i32) -> (i32, i32) {
    %c0_i32 = arith.constant 0 : i32
    %c0_i32_0 = arith.constant 0 : i32
    %c0_i32_1 = arith.constant 0 : i32
    return %c0_i32, %c0_i32_0 : i32, i32
  }
  func.func @transform_2(%arg0: i32) -> (i32, i32) {
    %c0_i32 = arith.constant 0 : i32
    %c0_i32_0 = arith.constant 0 : i32
    %c0_i32_1 = arith.constant 0 : i32
    return %c0_i32, %c0_i32_0 : i32, i32
  }
  func.func @transform_3(%arg0: i32) -> (i32, i32) {
    %c0_i32 = arith.constant 0 : i32
    %c0_i32_0 = arith.constant 0 : i32
    %c0_i32_1 = arith.constant 0 : i32
    return %c0_i32, %c0_i32_0 : i32, i32
  }
  func.func @transform_4(%arg0: i32) -> (i32, i32) {
    %c0_i32 = arith.constant 0 : i32
    %c0_i32_0 = arith.constant 0 : i32
    %c0_i32_1 = arith.constant 0 : i32
    return %c0_i32, %c0_i32_0 : i32, i32
  }
  func.func @transform_5(%arg0: i32) -> (i32, i32) {
    %c0_i32 = arith.constant 0 : i32
    %c0_i32_0 = arith.constant 0 : i32
    %c0_i32_1 = arith.constant 0 : i32
    return %c0_i32, %c0_i32_0 : i32, i32
  }
  func.func @transform_6(%arg0: i32) -> (i32, i32) {
    %c0_i32 = arith.constant 0 : i32
    %c0_i32_0 = arith.constant 0 : i32
    %c0_i32_1 = arith.constant 0 : i32
    return %c0_i32, %c0_i32_0 : i32, i32
  }
  func.func @transform_7(%arg0: i32) -> (i32, i32) {
    %c0_i32 = arith.constant 0 : i32
    %c0_i32_0 = arith.constant 0 : i32
    %c0_i32_1 = arith.constant 0 : i32
    return %c0_i32, %c0_i32_0 : i32, i32
  }
  func.func @transform_8(%arg0: i32) -> (i32, i32) {
    %c0_i32 = arith.constant 0 : i32
    %c0_i32_0 = arith.constant 0 : i32
    %c0_i32_1 = arith.constant 0 : i32
    return %c0_i32, %c0_i32_0 : i32, i32
  }
  func.func @transform_9(%arg0: i32) -> (i32, i32, i32) {
    %c0_i32 = arith.constant 0 : i32
    %c0_i32_0 = arith.constant 0 : i32
    %c0_i32_1 = arith.constant 0 : i32
    return %arg0, %c0_i32, %c0_i32_0 : i32, i32, i32
  }
}

</mosaic_0001>

<bundles_post_ra>
// kernel: tpu_custom_call.1
= control target key start
LH: loop header
LB: loop body
LE: loop exit
PB: predicated region body
PF: predicated region fallthrough
CT: control target
= control target key end

     0   :  { %v3106_v1 = vmov 0   ;;  %vm146_vm0 = vcmask 261120   ;;  %s4156_s1 = inlined_call_operand.vmem [shape: bf16[32,256], index: 1, kind: input, shape index: {}]   ;;  %s4157_s0 = inlined_call_operand.vmem [shape: f32[384,32], index: 0, kind: input, shape index: {}]   ;;  %s4158_s3 = inlined_call_operand.vmem [shape: bf16[256,128], index: 3, kind: input, shape index: {}]   ;;  %s4159_s5 = inlined_call_operand.vmem [shape: bf16[128,64], index: 5, kind: input, shape index: {}]   ;;  %s4160_s2 = inlined_call_operand.vmem [shape: f32[1,256], index: 2, kind: input, shape index: {}]   ;;  %s4161_s4 = inlined_call_operand.vmem [shape: f32[1,128], index: 4, kind: input, shape index: {}]   ;;  %s4162_s6 = inlined_call_operand.vmem [shape: f32[1,64], index: 6, kind: input, shape index: {}]   ;;  %s4163_s7 = inlined_call_operand.vmem [shape: f32[1,64], index: 7, kind: input, shape index: {}]   ;;  %s4164_s8 = inlined_call_operand.<no memory space> [shape: f32[1,1], index: 8, kind: input, shape index: {}]   ;;  %s4165_s9 = inlined_call_operand.vmem [shape: f32[1,3,128], index: 9, kind: output, shape index: {}]  }
   0x1   :  { %v2884_v0 = vld [vmem:[%s4156_s1 + $0x4] ss:$8 sps:$4 sm:$0xff]   ;;  %251 = vmatprep.mubr.bf16.mxu0 %v3106_v1  ;;  %962 = vmatprep.subr.bf16.mxu1 %v3106_v1  ;;  %v2886_v2 = vld [vmem:[%s4156_s1] ss:$8 sps:$4 sm:$0xff]   ;;  %v2887_v3 = vld [vmem:[%s4156_s1 + $0x14] ss:$8 sps:$4 sm:$0xff]  }
   0x2   :  { %2883 = vset.pattern.permute.xlu0 %v3106_v1  ;;  %219 = vmatprep.subr.bf16.mxu0 %v2884_v0  ;;  %v2889_v4 = vld [vmem:[%s4156_s1 + $0x10] ss:$8 sps:$4 sm:$0xff]   ;;  %v35_v5 = vld [vmem:[%s4157_s0] sm:$0xff]  ;;  %v36_v6 = vld [vmem:[%s4157_s0 + $0x8] sm:$0xff] }
   0x3   :  { %220 = vmatpush1.bf16.msra.mxu0 %v2886_v2  ;;  %v83_v7 = vpack.c.bf16 %v36_v6, %v35_v5  ;;  %v37_v8 = vld [vmem:[%s4157_s0 + $0x10] sm:$0xff]  ;;  %v38_v9 = vld [vmem:[%s4157_s0 + $0x18] sm:$0xff]  ;;  %v39_v11 = vld [vmem:[%s4157_s0 + $0x20] sm:$0xff] }
   0x4   :  { %221 = vmatprep.subr.bf16.mxu0 %v2887_v3  ;;  %v84_v10 = vpack.c.bf16 %v38_v9, %v37_v8  ;;  %v40_v12 = vld [vmem:[%s4157_s0 + $0x28] sm:$0xff]  ;;  %v41_v14 = vld [vmem:[%s4157_s0 + $0x30] sm:$0xff]  ;;  %v42_v15 = vld [vmem:[%s4157_s0 + $0x38] sm:$0xff] }
   0x5   :  { %v85_v13 = vpack.c.bf16 %v40_v12, %v39_v11  ;;  %v86_v16 = vpack.c.bf16 %v42_v15, %v41_v14  ;;  %v43_v17 = vld [vmem:[%s4157_s0 + $0x40] sm:$0xff]  ;;  %v44_v18 = vld [vmem:[%s4157_s0 + $0x48] sm:$0xff]  ;;  %v2892_v22 = vld [vmem:[%s4158_s3 + $0x10] sm:$0xff]  }
   0x6   :  { %v2890_v19 = vld [vmem:[%s4158_s3] sm:$0xff]   ;;  %v2891_v20 = vld [vmem:[%s4158_s3 + $0x8] sm:$0xff]   ;;  %v87_v21 = vpack.c.bf16 %v44_v18, %v43_v17  ;;  %v45_v23 = vld [vmem:[%s4157_s0 + $0x50] sm:$0xff] }
   0x7   :  { %222 = vmatpush1.bf16.msra.mxu0 %v2889_v4  ;;  %963 = vmatpush1.bf16.msra.mxu1 %v2890_v19  ;;  %v46_v24 = vld [vmem:[%s4157_s0 + $0x58] sm:$0xff]  ;;  %v2894_v27 = vld [vmem:[%s4158_s3 + $0x20] sm:$0xff]   ;;  %v48_v29 = vld [vmem:[%s4157_s0 + $0x68] sm:$0xff] }
   0x8   :  { %964 = vmatprep.subr.bf16.mxu1 %v3106_v1  ;;  %v2893_v25 = vld [vmem:[%s4158_s3 + $0x18] sm:$0xff]   ;;  %v88_v26 = vpack.c.bf16 %v46_v24, %v45_v23  ;;  %v47_v28 = vld [vmem:[%s4157_s0 + $0x60] sm:$0xff]  ;;  %v2895_v30 = vld [vmem:[%s4158_s3 + $0x28] sm:$0xff]  }
   0x9   :  { %v89_v31 = vpack.c.bf16 %v48_v29, %v47_v28  ;;  %v2896_v32 = vld [vmem:[%s4158_s3 + $0x30] sm:$0xff]   ;;  %v50_v34 = vld [vmem:[%s4157_s0 + $0x78] sm:$0xff]  ;;  %v2898_v37 = vld [vmem:[%s4158_s3 + $0x40] sm:$0xff]  }
   0xa   :  { %2670 = vmatmul.mubr.msk.bf16.vlgmr.msra.gmra.mrb[0].mxu0 %vm146_vm0, %v83_v7  ;;  %v49_v33 = vld [vmem:[%s4157_s0 + $0x70] sm:$0xff]  ;;  %v2897_v35 = vld [vmem:[%s4158_s3 + $0x38] sm:$0xff]   ;;  %v51_v38 = vld [vmem:[%s4157_s0 + $0x80] sm:$0xff] }
   0xb   :  { %261 = vmatprep.mubr.bf16.mxu0 %v3106_v1  ;;  %965 = vmatpush1.bf16.msra.mxu1 %v2891_v20  ;;  %v90_v36 = vpack.c.bf16 %v50_v34, %v49_v33  ;;  %v52_v39 = vld [vmem:[%s4157_s0 + $0x88] sm:$0xff]  ;;  %v2900_v42 = vld [vmem:[%s4158_s3 + $0x50] sm:$0xff]   ;;  %v54_v44 = vld [vmem:[%s4157_s0 + $0x98] sm:$0xff] }
   0xc   :  { %966 = vmatprep.subr.bf16.mxu1 %v3106_v1  ;;  %v2899_v40 = vld [vmem:[%s4158_s3 + $0x48] sm:$0xff]   ;;  %v91_v41 = vpack.c.bf16 %v52_v39, %v51_v38  ;;  %v53_v43 = vld [vmem:[%s4157_s0 + $0x90] sm:$0xff]  ;;  %v2901_v45 = vld [vmem:[%s4158_s3 + $0x58] sm:$0xff]  }
   0xd   :  { %v92_v46 = vpack.c.bf16 %v54_v44, %v53_v43  ;;  %v2902_v47 = vld [vmem:[%s4158_s3 + $0x60] sm:$0xff]   ;;  %v56_v49 = vld [vmem:[%s4157_s0 + $0xa8] sm:$0xff]  ;;  %v57_v51 = vld [vmem:[%s4157_s0 + $0xb0] sm:$0xff] }
   0xe   :  { %v55_v48 = vld [vmem:[%s4157_s0 + $0xa0] sm:$0xff]  ;;  %v58_v52 = vld [vmem:[%s4157_s0 + $0xb8] sm:$0xff]  ;;  %v2903_v53 = vld [vmem:[%s4158_s3 + $0x68] sm:$0xff]  }
   0xf   :  { %967 = vmatpush1.bf16.msra.mxu1 %v2892_v22  ;;  %v93_v50 = vpack.c.bf16 %v56_v49, %v55_v48  ;;  %v94_v54 = vpack.c.bf16 %v58_v52, %v57_v51  ;;  %v2904_v55 = vld [vmem:[%s4158_s3 + $0x70] sm:$0xff]   ;;  %v59_v56 = vld [vmem:[%s4157_s0 + $0xc0] sm:$0xff]  ;;  %v60_v57 = vld [vmem:[%s4157_s0 + $0xc8] sm:$0xff] }
  0x10   :  { %968 = vmatprep.subr.bf16.mxu1 %v3106_v1  ;;  %v2905_v58 = vld [vmem:[%s4158_s3 + $0x78] sm:$0xff]   ;;  %v95_v59 = vpack.c.bf16 %v60_v57, %v59_v56  ;;  %v61_v60 = vld [vmem:[%s4157_s0 + $0xd0] sm:$0xff]  ;;  %v63_v63 = vld [vmem:[%s4157_s0 + $0xe0] sm:$0xff] }
  0x11   :  { %v62_v61 = vld [vmem:[%s4157_s0 + $0xd8] sm:$0xff]  ;;  %v64_v0 = vld [vmem:[%s4157_s0 + $0xe8] sm:$0xff]  ;;  %v65_v3 = vld [vmem:[%s4157_s0 + $0xf0] sm:$0xff] }
  0x12   :  { %2671 = vmatmul.mubr.msk.bf16.gmra.mrb[4].mxu0 %vm146_vm0, %v84_v10  ;;  %v96_v62 = vpack.c.bf16 %v62_v61, %v61_v60  ;;  %v97_v2 = vpack.c.bf16 %v64_v0, %v63_v63  ;;  %v66_v4 = vld [vmem:[%s4157_s0 + $0xf8] sm:$0xff]  ;;  %v67_v6 = vld [vmem:[%s4157_s0 + $0x100] sm:$0xff]  ;;  %v68_v7 = vld [vmem:[%s4157_s0 + $0x108] sm:$0xff] }
  0x13   :  { %271 = vmatprep.mubr.bf16.mxu0 %v3106_v1  ;;  %969 = vmatpush1.bf16.msra.mxu1 %v2893_v25  ;;  %v98_v5 = vpack.c.bf16 %v66_v4, %v65_v3  ;;  %v99_v8 = vpack.c.bf16 %v68_v7, %v67_v6  ;;  %v69_v9 = vld [vmem:[%s4157_s0 + $0x110] sm:$0xff]  ;;  %v70_v10 = vld [vmem:[%s4157_s0 + $0x118] sm:$0xff]  ;;  %v71_v12 = vld [vmem:[%s4157_s0 + $0x120] sm:$0xff] }
  0x14   :  { %970 = vmatprep.subr.bf16.mxu1 %v3106_v1  ;;  %v100_v11 = vpack.c.bf16 %v70_v10, %v69_v9  ;;  %v73_v15 = vld [vmem:[%s4157_s0 + $0x130] sm:$0xff]  ;;  %v75_v18 = vld [vmem:[%s4157_s0 + $0x140] sm:$0xff]  ;;  %v76_v19 = vld [vmem:[%s4157_s0 + $0x148] sm:$0xff] }
  0x15   :  { %v103_v20 = vpack.c.bf16 %v76_v19, %v75_v18  ;;  %v78_v22 = vld [vmem:[%s4157_s0 + $0x158] sm:$0xff]  ;;  %v79_v24 = vld [vmem:[%s4157_s0 + $0x160] sm:$0xff]  ;;  %v80_v25 = vld [vmem:[%s4157_s0 + $0x168] sm:$0xff] }
  0x16   :  { %v82_v28 = vld [vmem:[%s4157_s0 + $0x178] sm:$0xff]  ;;  %v107_v33 = vld [vmem:[%s4160_s2] sm:$0x3]  ;;  %v2907_v63 = vld [vmem:[%s4159_s5 + $0x8] sm:$0xff]  }
  0x17   :  { %971 = vmatpush1.bf16.msra.mxu1 %v2894_v27  ;;  %v81_v27 = vld [vmem:[%s4157_s0 + $0x170] sm:$0xff] }
  0x18   :  { %972 = vmatprep.subr.bf16.mxu1 %v3106_v1  ;;  %v106_v29 = vpack.c.bf16 %v82_v28, %v81_v27 }
  0x1a   :  { %2672 = vmatmul.mubr.msk.bf16.gmra.mrb[8].mxu0 %vm146_vm0, %v85_v13  ;;  %v72_v13 = vld [vmem:[%s4157_s0 + $0x128] sm:$0xff] }
  0x1b   :  { %281 = vmatprep.mubr.bf16.mxu0 %v3106_v1  ;;  %973 = vmatpush1.bf16.msra.mxu1 %v2895_v30  ;;  %v101_v14 = vpack.c.bf16 %v72_v13, %v71_v12  ;;  %v116_v30 = vlaneseq }
  0x1c   :  { %974 = vmatprep.subr.bf16.mxu1 %v3106_v1 }
  0x1f   :  { %975 = vmatpush1.bf16.msra.mxu1 %v2896_v32  ;;  %v2906_v32 = vld [vmem:[%s4159_s5] sm:$0xff]  }
  0x20   :  { %976 = vmatprep.subr.bf16.mxu1 %v3106_v1  ;;  %2802 = vmatprep.subr.bf16.mxu0 %v2906_v32 }
  0x21   :  { %2803 = vmatpush3.bf16.msra.mxu0 %v2906_v32 }
  0x22   :  { %2673 = vmatmul.mubr.msk.bf16.gmra.mrb[12].mxu0 %vm146_vm0, %v86_v16  ;;  %v74_v16 = vld [vmem:[%s4157_s0 + $0x138] sm:$0xff]  ;;  %2804 = vmatprep.subr.bf16.mxu0 %v2907_v63 }
  0x23   :  { %291 = vmatprep.mubr.bf16.mxu0 %v3106_v1  ;;  %977 = vmatpush1.bf16.msra.mxu1 %v2897_v35  ;;  %v102_v17 = vpack.c.bf16 %v74_v16, %v73_v15 }
  0x24   :  { %978 = vmatprep.subr.bf16.mxu1 %v3106_v1 }
  0x25   :  { %2805 = vmatpush3.bf16.msra.mxu0 %v2907_v63 }
  0x27   :  { %979 = vmatpush1.bf16.msra.mxu1 %v2898_v37 }
  0x28   :  { %980 = vmatprep.subr.bf16.mxu1 %v3106_v1 }
  0x2a   :  { %2674 = vmatmul.mubr.msk.bf16.gmra.mrb[16].mxu0 %vm146_vm0, %v87_v21  ;;  %v77_v21 = vld [vmem:[%s4157_s0 + $0x150] sm:$0xff] }
  0x2b   :  { %301 = vmatprep.mubr.bf16.mxu0 %v3106_v1  ;;  %981 = vmatpush1.bf16.msra.mxu1 %v2899_v40  ;;  %v104_v23 = vpack.c.bf16 %v78_v22, %v77_v21 }
  0x2c   :  { %982 = vmatprep.subr.bf16.mxu1 %v3106_v1 }
  0x2f   :  { %983 = vmatpush1.bf16.msra.mxu1 %v2900_v42 }
  0x30   :  { %984 = vmatprep.subr.bf16.mxu1 %v3106_v1 }
  0x32   :  { %2675 = vmatmul.mubr.msk.bf16.gmra.mrb[20].mxu0 %vm146_vm0, %v88_v26  ;;  %v105_v26 = vpack.c.bf16 %v80_v25, %v79_v24 }
  0x33   :  { %311 = vmatprep.mubr.bf16.mxu0 %v3106_v1  ;;  %985 = vmatpush1.bf16.msra.mxu1 %v2901_v45 }
  0x34   :  { %986 = vmatprep.subr.bf16.mxu1 %v3106_v1 }
  0x37   :  { %987 = vmatpush1.bf16.msra.mxu1 %v2902_v47 }
  0x38   :  { %988 = vmatprep.subr.bf16.mxu1 %v3106_v1 }
  0x3a   :  { %2676 = vmatmul.mubr.msk.bf16.gmra.mrb[24].mxu0 %vm146_vm0, %v89_v31  ;;  %v3427_v31 = vshrl.u32 %v116_v30, 7 }
  0x3b   :  { %321 = vmatprep.mubr.bf16.mxu0 %v3106_v1  ;;  %989 = vmatpush1.bf16.msra.mxu1 %v2903_v53 }
  0x3c   :  { %990 = vmatprep.subr.bf16.mxu1 %v3106_v1  ;;  %v122_v34 = vsub.s32 1, %v3427_v31 }
  0x3f   :  { %991 = vmatpush1.bf16.msra.mxu1 %v2904_v55 }
  0x40   :  { %992 = vmatprep.subr.bf16.mxu1 %v3106_v1 }
  0x42   :  { %2677 = vmatmul.mubr.msk.bf16.gmra.mrb[28].mxu0 %vm146_vm0, %v90_v36  ;;  %v3439_v36 = vrot.slane %v107_v33, %v122_v34 }
  0x43   :  { %331 = vmatprep.mubr.bf16.mxu0 %v3106_v1  ;;  %993 = vmatpush1.bf16.msra.mxu1 %v2905_v58 }
  0x44   :  { %2866 = vmatprep.subr.bf16.mxu1 %v2906_v32 }
  0x4a   :  { %2678 = vmatmul.mubr.msk.bf16.gmra.mrb[32].mxu0 %vm146_vm0, %v91_v41 }
  0x4b   :  { %341 = vmatprep.mubr.bf16.mxu0 %v3106_v1 }
  0x52   :  { %2679 = vmatmul.mubr.msk.bf16.gmra.mrb[36].mxu0 %vm146_vm0, %v92_v46 }
  0x53   :  { %351 = vmatprep.mubr.bf16.mxu0 %v3106_v1 }
  0x5a   :  { %2680 = vmatmul.mubr.msk.bf16.gmra.mrb[40].mxu0 %vm146_vm0, %v93_v50 }
  0x5b   :  { %361 = vmatprep.mubr.bf16.mxu0 %v3106_v1 }
  0x62   :  { %2681 = vmatmul.mubr.msk.bf16.gmra.mrb[44].mxu0 %vm146_vm0, %v94_v54 }
  0x63   :  { %371 = vmatprep.mubr.bf16.mxu0 %v3106_v1 }
  0x6a   :  { %2682 = vmatmul.mubr.msk.bf16.gmra.mrb[48].mxu0 %vm146_vm0, %v95_v59 }
  0x6b   :  { %381 = vmatprep.mubr.bf16.mxu0 %v3106_v1 }
  0x72   :  { %2683 = vmatmul.mubr.msk.bf16.gmra.mrb[52].mxu0 %vm146_vm0, %v96_v62 }
  0x73   :  { %391 = vmatprep.mubr.bf16.mxu0 %v3106_v1 }
  0x7a   :  { %2684 = vmatmul.mubr.msk.bf16.gmra.mrb[56].mxu0 %vm146_vm0, %v97_v2 }
  0x7b   :  { %401 = vmatprep.mubr.bf16.mxu0 %v3106_v1 }
  0x82   :  { %2685 = vmatmul.mubr.msk.bf16.gmra.mrb[60].mxu0 %vm146_vm0, %v98_v5 }
  0x83   :  { %411 = vmatprep.mubr.bf16.mxu0 %v3106_v1 }
  0x8a   :  { %2686 = vmatmul.mubr.msk.bf16.gmra.mrb[64].mxu0 %vm146_vm0, %v99_v8 }
  0x8b   :  { %421 = vmatprep.mubr.bf16.mxu0 %v3106_v1 }
  0x92   :  { %2687 = vmatmul.mubr.msk.bf16.gmra.mrb[68].mxu0 %vm146_vm0, %v100_v11 }
  0x93   :  { %431 = vmatprep.mubr.bf16.mxu0 %v3106_v1 }
  0x9a   :  { %2688 = vmatmul.mubr.msk.bf16.gmra.mrb[72].mxu0 %vm146_vm0, %v101_v14 }
  0x9b   :  { %441 = vmatprep.mubr.bf16.mxu0 %v3106_v1 }
  0xa2   :  { %2689 = vmatmul.mubr.msk.bf16.gmra.mrb[76].mxu0 %vm146_vm0, %v102_v17 }
  0xa3   :  { %451 = vmatprep.mubr.bf16.mxu0 %v3106_v1 }
  0xaa   :  { %2690 = vmatmul.mubr.msk.bf16.gmra.mrb[80].mxu0 %vm146_vm0, %v103_v20 }
  0xab   :  { %461 = vmatprep.mubr.bf16.mxu0 %v3106_v1 }
  0xb2   :  { %2691 = vmatmul.mubr.msk.bf16.gmra.mrb[84].mxu0 %vm146_vm0, %v104_v23 }
  0xb3   :  { %471 = vmatprep.mubr.bf16.mxu0 %v3106_v1 }
  0xba   :  { %2692 = vmatmul.mubr.msk.bf16.gmra.mrb[88].mxu0 %vm146_vm0, %v105_v26 }
  0xbb   :  { %481 = vmatprep.mubr.bf16.mxu0 %v3106_v1  ;;  %v118_v1 = vsub.s32 0, %v3427_v31 }
  0xbd   :  { %v3437_v35 = vrot.slane %v107_v33, %v118_v1 }
  0xc2   :  { %2693 = vmatmul.mubr.msk.bf16.gmra.mrb[92].mxu0 %vm146_vm0, %v106_v29 }
  0xdd   :  { %v253_v37 = vpop.f32.mrb[0].mxu0 }
  0xde   :  { %v254_v38 = vadd.f32 %v253_v37, %v3437_v35  ;;  %v255_v39 = vpop.f32.mrb[1].mxu0 }
  0xdf   :  { %v256_v40 = vadd.f32 %v255_v39, %v3439_v36  ;;  %v257_v41 = vpop.f32.mrb[2].mxu0 }
  0xe0   :  { %v588_v42 = vmul.f32 0.01, %v254_v38  ;;  %v258_v43 = vadd.f32 %v257_v41, %v3437_v35  ;;  %v259_v44 = vpop.f32.mrb[3].mxu0  ;;  %vm492_vm1 = vcmp.ge.f32.partialorder %v254_v38, 0.0 }
  0xe1   :  { %v589_v45 = vmul.f32 0.01, %v256_v40  ;;  %v260_v46 = vadd.f32 %v259_v44, %v3439_v36  ;;  %vm493_vm3 = vcmp.ge.f32.partialorder %v256_v40, 0.0  ;;  %v2908_v44 = vld [vmem:[%s4159_s5 + $0x10] sm:$0xff]  }
  0xe2   :  { %vm494_vm2 = vcmp.ge.f32.partialorder %v258_v43, 0.0  ;;  %v590_v47 = vmul.f32 0.01, %v258_v43  ;;  %v684_v49 = vsel %vm492_vm1, %v254_v38, %v588_v42  ;;  %2806 = vmatprep.subr.bf16.mxu0 %v2908_v44 }
  0xe3   :  { %v591_v48 = vmul.f32 0.01, %v260_v46  ;;  %vm495_vm4 = vcmp.ge.f32.partialorder %v260_v46, 0.0  ;;  %v685_v52 = vsel %vm493_vm3, %v256_v40, %v589_v45  ;;  %2807 = vmatpush3.bf16.msra.mxu0 %v2908_v44 }
  0xe4   :  { %v686_v50 = vsel %vm494_vm2, %v258_v43, %v590_v47 }
  0xe5   :  { %v263_v51 = vpop.f32.mrb[4].mxu0  ;;  %v687_v53 = vsel %vm495_vm4, %v260_v46, %v591_v48  ;;  %v780_v54 = vpack.c.bf16 %v686_v50, %v684_v49 }
  0xe6   :  { %v264_v55 = vadd.f32 %v263_v51, %v3437_v35  ;;  %v265_v56 = vpop.f32.mrb[5].mxu0  ;;  %v781_v57 = vpack.c.bf16 %v687_v53, %v685_v52 }
  0xe7   :  { %v266_v58 = vadd.f32 %v265_v56, %v3439_v36  ;;  %v267_v59 = vpop.f32.mrb[6].mxu0 }
  0xe8   :  { %v592_v60 = vmul.f32 0.01, %v264_v55  ;;  %v268_v61 = vadd.f32 %v267_v59, %v3437_v35  ;;  %v269_v62 = vpop.f32.mrb[7].mxu0  ;;  %994 = vmatprep.mubr.bf16.mxu1 %v781_v57  ;;  %vm496_vm5 = vcmp.ge.f32.partialorder %v264_v55, 0.0 }
  0xe9   :  { %v593_v0 = vmul.f32 0.01, %v266_v58  ;;  %v270_v2 = vadd.f32 %v269_v62, %v3439_v36  ;;  %995 = vmatmul.mubr.bf16.vlgmr.msra.gmra.mrb[0].mxu1 %v780_v54  ;;  %vm497_vm6 = vcmp.ge.f32.partialorder %v266_v58, 0.0  ;;  %v2909_v62 = vld [vmem:[%s4159_s5 + $0x18] sm:$0xff]  }
  0xea   :  { %vm498_vm7 = vcmp.ge.f32.partialorder %v268_v61, 0.0  ;;  %v594_v3 = vmul.f32 0.01, %v268_v61  ;;  %2874 = vmatpush3.bf16.msra.mxu1 %v2906_v32  ;;  %v688_v5 = vsel %vm496_vm5, %v264_v55, %v592_v60  ;;  %2808 = vmatprep.subr.bf16.mxu0 %v2909_v62 }
  0xeb   :  { %vm499_vm8 = vcmp.ge.f32.partialorder %v270_v2, 0.0  ;;  %v595_v4 = vmul.f32 0.01, %v270_v2  ;;  %2867 = vmatprep.subr.bf16.mxu1 %v2907_v63  ;;  %v689_v8 = vsel %vm497_vm6, %v266_v58, %v593_v0  ;;  %2809 = vmatpush3.bf16.msra.mxu0 %v2909_v62 }
  0xec   :  { %v690_v6 = vsel %vm498_vm7, %v268_v61, %v594_v3 }
  0xed   :  { %v273_v7 = vpop.f32.mrb[8].mxu0  ;;  %v691_v9 = vsel %vm499_vm8, %v270_v2, %v595_v4  ;;  %v782_v10 = vpack.c.bf16 %v690_v6, %v688_v5 }
  0xee   :  { %v274_v11 = vadd.f32 %v273_v7, %v3437_v35  ;;  %v275_v12 = vpop.f32.mrb[9].mxu0  ;;  %v783_v13 = vpack.c.bf16 %v691_v9, %v689_v8  ;;  %2875 = vmatpush3.bf16.msra.mxu1 %v2907_v63 }
  0xef   :  { %v276_v14 = vadd.f32 %v275_v12, %v3439_v36  ;;  %v277_v15 = vpop.f32.mrb[10].mxu0  ;;  %2868 = vmatprep.subr.bf16.mxu1 %v2908_v44 }
  0xf0   :  { %v596_v16 = vmul.f32 0.01, %v274_v11  ;;  %v278_v17 = vadd.f32 %v277_v15, %v3437_v35  ;;  %v279_v18 = vpop.f32.mrb[11].mxu0  ;;  %1002 = vmatprep.mubr.bf16.mxu1 %v783_v13  ;;  %vm500_vm9 = vcmp.ge.f32.partialorder %v274_v11, 0.0 }
  0xf1   :  { %v597_v19 = vmul.f32 0.01, %v276_v14  ;;  %v280_v20 = vadd.f32 %v279_v18, %v3439_v36  ;;  %1003 = vmatmul.mubr.bf16.gmra.mrb[4].mxu1 %v782_v10  ;;  %vm501_vm10 = vcmp.ge.f32.partialorder %v276_v14, 0.0 }
  0xf2   :  { %vm502_vm11 = vcmp.ge.f32.partialorder %v278_v17, 0.0  ;;  %v598_v21 = vmul.f32 0.01, %v278_v17  ;;  %v692_v23 = vsel %vm500_vm9, %v274_v11, %v596_v16  ;;  %2876 = vmatpush3.bf16.msra.mxu1 %v2908_v44 }
  0xf3   :  { %vm503_vm12 = vcmp.ge.f32.partialorder %v280_v20, 0.0  ;;  %v599_v22 = vmul.f32 0.01, %v280_v20  ;;  %v693_v26 = vsel %vm501_vm10, %v276_v14, %v597_v19  ;;  %2869 = vmatprep.subr.bf16.mxu1 %v2909_v62 }
  0xf4   :  { %v694_v24 = vsel %vm502_vm11, %v278_v17, %v598_v21 }
  0xf5   :  { %v283_v25 = vpop.f32.mrb[12].mxu0  ;;  %v695_v27 = vsel %vm503_vm12, %v280_v20, %v599_v22  ;;  %v784_v28 = vpack.c.bf16 %v694_v24, %v692_v23 }
  0xf6   :  { %v284_v29 = vadd.f32 %v283_v25, %v3437_v35  ;;  %v285_v32 = vpop.f32.mrb[13].mxu0  ;;  %v785_v1 = vpack.c.bf16 %v695_v27, %v693_v26  ;;  %2877 = vmatpush3.bf16.msra.mxu1 %v2909_v62 }
  0xf7   :  { %v286_v33 = vadd.f32 %v285_v32, %v3439_v36  ;;  %v287_v34 = vpop.f32.mrb[14].mxu0 }
  0xf8   :  { %v600_v37 = vmul.f32 0.01, %v284_v29  ;;  %v288_v38 = vadd.f32 %v287_v34, %v3437_v35  ;;  %v289_v39 = vpop.f32.mrb[15].mxu0  ;;  %1010 = vmatprep.mubr.bf16.mxu1 %v785_v1  ;;  %vm504_vm13 = vcmp.ge.f32.partialorder %v284_v29, 0.0 }
  0xf9   :  { %v601_v40 = vmul.f32 0.01, %v286_v33  ;;  %v290_v41 = vadd.f32 %v289_v39, %v3439_v36  ;;  %1011 = vmatmul.mubr.bf16.gmra.mrb[8].mxu1 %v784_v28  ;;  %vm505_vm14 = vcmp.ge.f32.partialorder %v286_v33, 0.0 }
  0xfa   :  { %vm506_vm15 = vcmp.ge.f32.partialorder %v288_v38, 0.0  ;;  %v602_v42 = vmul.f32 0.01, %v288_v38  ;;  %v696_v45 = vsel %vm504_vm13, %v284_v29, %v600_v37 }
  0xfb   :  { %vm507_vm0 = vcmp.ge.f32.partialorder %v290_v41, 0.0  ;;  %v603_v43 = vmul.f32 0.01, %v290_v41  ;;  %v697_v48 = vsel %vm505_vm14, %v286_v33, %v601_v40 }
  0xfc   :  { %v698_v46 = vsel %vm506_vm15, %v288_v38, %v602_v42 }
  0xfd   :  { %v293_v47 = vpop.f32.mrb[16].mxu0  ;;  %v699_v49 = vsel %vm507_vm0, %v290_v41, %v603_v43  ;;  %v786_v50 = vpack.c.bf16 %v698_v46, %v696_v45 }
  0xfe   :  { %v294_v51 = vadd.f32 %v293_v47, %v3437_v35  ;;  %v295_v52 = vpop.f32.mrb[17].mxu0  ;;  %v787_v53 = vpack.c.bf16 %v699_v49, %v697_v48 }
  0xff   :  { %v296_v54 = vadd.f32 %v295_v52, %v3439_v36  ;;  %v297_v55 = vpop.f32.mrb[18].mxu0 }
 0x100   :  { %v604_v56 = vmul.f32 0.01, %v294_v51  ;;  %v298_v57 = vadd.f32 %v297_v55, %v3437_v35  ;;  %v299_v58 = vpop.f32.mrb[19].mxu0  ;;  %1018 = vmatprep.mubr.bf16.mxu1 %v787_v53  ;;  %vm508_vm1 = vcmp.ge.f32.partialorder %v294_v51, 0.0 }
 0x101   :  { %v605_v59 = vmul.f32 0.01, %v296_v54  ;;  %v300_v60 = vadd.f32 %v299_v58, %v3439_v36  ;;  %1019 = vmatmul.mubr.bf16.gmra.mrb[12].mxu1 %v786_v50  ;;  %vm509_vm2 = vcmp.ge.f32.partialorder %v296_v54, 0.0 }
 0x102   :  { %vm510_vm3 = vcmp.ge.f32.partialorder %v298_v57, 0.0  ;;  %v606_v61 = vmul.f32 0.01, %v298_v57  ;;  %v700_v0 = vsel %vm508_vm1, %v294_v51, %v604_v56 }
 0x103   :  { %vm511_vm4 = vcmp.ge.f32.partialorder %v300_v60, 0.0  ;;  %v607_v63 = vmul.f32 0.01, %v300_v60  ;;  %v701_v4 = vsel %vm509_vm2, %v296_v54, %v605_v59 }
 0x104   :  { %v702_v2 = vsel %vm510_vm3, %v298_v57, %v606_v61  ;;  %v2910_v57 = vld [vmem:[%s4159_s5 + $0x20] sm:$0xff]  }
 0x105   :  { %v303_v3 = vpop.f32.mrb[20].mxu0  ;;  %v703_v5 = vsel %vm511_vm4, %v300_v60, %v607_v63  ;;  %v788_v6 = vpack.c.bf16 %v702_v2, %v700_v0  ;;  %2810 = vmatprep.subr.bf16.mxu0 %v2910_v57  ;;  %2870 = vmatprep.subr.bf16.mxu1 %v2910_v57 }
 0x106   :  { %v304_v7 = vadd.f32 %v303_v3, %v3437_v35  ;;  %v305_v8 = vpop.f32.mrb[21].mxu0  ;;  %v789_v9 = vpack.c.bf16 %v703_v5, %v701_v4  ;;  %2811 = vmatpush3.bf16.msra.mxu0 %v2910_v57  ;;  %2878 = vmatpush3.bf16.msra.mxu1 %v2910_v57 }
 0x107   :  { %v306_v10 = vadd.f32 %v305_v8, %v3439_v36  ;;  %v307_v11 = vpop.f32.mrb[22].mxu0 }
 0x108   :  { %v608_v12 = vmul.f32 0.01, %v304_v7  ;;  %v308_v13 = vadd.f32 %v307_v11, %v3437_v35  ;;  %v309_v14 = vpop.f32.mrb[23].mxu0  ;;  %1026 = vmatprep.mubr.bf16.mxu1 %v789_v9  ;;  %vm512_vm5 = vcmp.ge.f32.partialorder %v304_v7, 0.0 }
 0x109   :  { %v609_v15 = vmul.f32 0.01, %v306_v10  ;;  %v310_v16 = vadd.f32 %v309_v14, %v3439_v36  ;;  %1027 = vmatmul.mubr.bf16.gmra.mrb[16].mxu1 %v788_v6  ;;  %vm513_vm6 = vcmp.ge.f32.partialorder %v306_v10, 0.0 }
 0x10a   :  { %vm514_vm7 = vcmp.ge.f32.partialorder %v308_v13, 0.0  ;;  %v610_v17 = vmul.f32 0.01, %v308_v13  ;;  %v704_v19 = vsel %vm512_vm5, %v304_v7, %v608_v12 }
 0x10b   :  { %vm515_vm8 = vcmp.ge.f32.partialorder %v310_v16, 0.0  ;;  %v611_v18 = vmul.f32 0.01, %v310_v16  ;;  %v705_v22 = vsel %vm513_vm6, %v306_v10, %v609_v15 }
 0x10c   :  { %v706_v20 = vsel %vm514_vm7, %v308_v13, %v610_v17 }
 0x10d   :  { %v313_v21 = vpop.f32.mrb[24].mxu0  ;;  %v707_v23 = vsel %vm515_vm8, %v310_v16, %v611_v18  ;;  %v790_v24 = vpack.c.bf16 %v706_v20, %v704_v19 }
 0x10e   :  { %v314_v25 = vadd.f32 %v313_v21, %v3437_v35  ;;  %v315_v26 = vpop.f32.mrb[25].mxu0  ;;  %v791_v27 = vpack.c.bf16 %v707_v23, %v705_v22 }
 0x10f   :  { %v316_v28 = vadd.f32 %v315_v26, %v3439_v36  ;;  %v317_v29 = vpop.f32.mrb[26].mxu0 }
 0x110   :  { %v612_v32 = vmul.f32 0.01, %v314_v25  ;;  %v318_v1 = vadd.f32 %v317_v29, %v3437_v35  ;;  %v319_v33 = vpop.f32.mrb[27].mxu0  ;;  %1034 = vmatprep.mubr.bf16.mxu1 %v791_v27  ;;  %vm516_vm9 = vcmp.ge.f32.partialorder %v314_v25, 0.0 }
 0x111   :  { %v613_v34 = vmul.f32 0.01, %v316_v28  ;;  %v320_v37 = vadd.f32 %v319_v33, %v3439_v36  ;;  %1035 = vmatmul.mubr.bf16.gmra.mrb[20].mxu1 %v790_v24  ;;  %vm517_vm10 = vcmp.ge.f32.partialorder %v316_v28, 0.0 }
 0x112   :  { %vm518_vm11 = vcmp.ge.f32.partialorder %v318_v1, 0.0  ;;  %v614_v38 = vmul.f32 0.01, %v318_v1  ;;  %v708_v40 = vsel %vm516_vm9, %v314_v25, %v612_v32 }
 0x113   :  { %vm519_vm12 = vcmp.ge.f32.partialorder %v320_v37, 0.0  ;;  %v615_v39 = vmul.f32 0.01, %v320_v37  ;;  %v709_v43 = vsel %vm517_vm10, %v316_v28, %v613_v34 }
 0x114   :  { %v710_v41 = vsel %vm518_vm11, %v318_v1, %v614_v38 }
 0x115   :  { %v323_v42 = vpop.f32.mrb[28].mxu0  ;;  %v711_v44 = vsel %vm519_vm12, %v320_v37, %v615_v39  ;;  %v792_v45 = vpack.c.bf16 %v710_v41, %v708_v40 }
 0x116   :  { %v324_v46 = vadd.f32 %v323_v42, %v3437_v35  ;;  %v325_v47 = vpop.f32.mrb[29].mxu0  ;;  %v793_v48 = vpack.c.bf16 %v711_v44, %v709_v43 }
 0x117   :  { %v326_v49 = vadd.f32 %v325_v47, %v3439_v36  ;;  %v327_v50 = vpop.f32.mrb[30].mxu0 }
 0x118   :  { %v616_v51 = vmul.f32 0.01, %v324_v46  ;;  %v328_v52 = vadd.f32 %v327_v50, %v3437_v35  ;;  %v329_v53 = vpop.f32.mrb[31].mxu0  ;;  %1042 = vmatprep.mubr.bf16.mxu1 %v793_v48  ;;  %vm520_vm13 = vcmp.ge.f32.partialorder %v324_v46, 0.0 }
 0x119   :  { %v617_v54 = vmul.f32 0.01, %v326_v49  ;;  %v330_v55 = vadd.f32 %v329_v53, %v3439_v36  ;;  %1043 = vmatmul.mubr.bf16.gmra.mrb[24].mxu1 %v792_v45  ;;  %vm521_vm14 = vcmp.ge.f32.partialorder %v326_v49, 0.0 }
 0x11a   :  { %vm522_vm15 = vcmp.ge.f32.partialorder %v328_v52, 0.0  ;;  %v618_v56 = vmul.f32 0.01, %v328_v52  ;;  %v712_v59 = vsel %vm520_vm13, %v324_v46, %v616_v51 }
 0x11b   :  { %vm523_vm0 = vcmp.ge.f32.partialorder %v330_v55, 0.0  ;;  %v619_v58 = vmul.f32 0.01, %v330_v55  ;;  %v713_v62 = vsel %vm521_vm14, %v326_v49, %v617_v54 }
 0x11c   :  { %v714_v60 = vsel %vm522_vm15, %v328_v52, %v618_v56 }
 0x11d   :  { %v333_v61 = vpop.f32.mrb[32].mxu0  ;;  %v715_v63 = vsel %vm523_vm0, %v330_v55, %v619_v58  ;;  %v794_v0 = vpack.c.bf16 %v714_v60, %v712_v59 }
 0x11e   :  { %v334_v2 = vadd.f32 %v333_v61, %v3437_v35  ;;  %v335_v3 = vpop.f32.mrb[33].mxu0  ;;  %v795_v4 = vpack.c.bf16 %v715_v63, %v713_v62 }
 0x11f   :  { %v336_v5 = vadd.f32 %v335_v3, %v3439_v36  ;;  %v337_v6 = vpop.f32.mrb[34].mxu0 }
 0x120   :  { %v620_v7 = vmul.f32 0.01, %v334_v2  ;;  %v338_v8 = vadd.f32 %v337_v6, %v3437_v35  ;;  %v339_v9 = vpop.f32.mrb[35].mxu0  ;;  %1050 = vmatprep.mubr.bf16.mxu1 %v795_v4  ;;  %vm524_vm1 = vcmp.ge.f32.partialorder %v334_v2, 0.0 }
 0x121   :  { %v621_v10 = vmul.f32 0.01, %v336_v5  ;;  %v340_v11 = vadd.f32 %v339_v9, %v3439_v36  ;;  %1051 = vmatmul.mubr.bf16.gmra.mrb[28].mxu1 %v794_v0  ;;  %vm525_vm2 = vcmp.ge.f32.partialorder %v336_v5, 0.0 }
 0x122   :  { %vm526_vm3 = vcmp.ge.f32.partialorder %v338_v8, 0.0  ;;  %v622_v12 = vmul.f32 0.01, %v338_v8  ;;  %v716_v14 = vsel %vm524_vm1, %v334_v2, %v620_v7 }
 0x123   :  { %vm527_vm4 = vcmp.ge.f32.partialorder %v340_v11, 0.0  ;;  %v623_v13 = vmul.f32 0.01, %v340_v11  ;;  %v717_v17 = vsel %vm525_vm2, %v336_v5, %v621_v10 }
 0x124   :  { %v718_v15 = vsel %vm526_vm3, %v338_v8, %v622_v12 }
 0x125   :  { %v343_v16 = vpop.f32.mrb[36].mxu0  ;;  %v719_v18 = vsel %vm527_vm4, %v340_v11, %v623_v13  ;;  %v796_v19 = vpack.c.bf16 %v718_v15, %v716_v14 }
 0x126   :  { %v344_v20 = vadd.f32 %v343_v16, %v3437_v35  ;;  %v345_v21 = vpop.f32.mrb[37].mxu0  ;;  %v797_v22 = vpack.c.bf16 %v719_v18, %v717_v17 }
 0x127   :  { %v346_v23 = vadd.f32 %v345_v21, %v3439_v36  ;;  %v347_v24 = vpop.f32.mrb[38].mxu0 }
 0x128   :  { %v624_v25 = vmul.f32 0.01, %v344_v20  ;;  %v348_v26 = vadd.f32 %v347_v24, %v3437_v35  ;;  %v349_v27 = vpop.f32.mrb[39].mxu0  ;;  %1058 = vmatprep.mubr.bf16.mxu1 %v797_v22  ;;  %vm528_vm5 = vcmp.ge.f32.partialorder %v344_v20, 0.0  ;;  %v2911_v22 = vld [vmem:[%s4159_s5 + $0x28] sm:$0xff]  }
 0x129   :  { %v625_v28 = vmul.f32 0.01, %v346_v23  ;;  %v350_v29 = vadd.f32 %v349_v27, %v3439_v36  ;;  %1059 = vmatmul.mubr.bf16.gmra.mrb[32].mxu1 %v796_v19  ;;  %vm529_vm6 = vcmp.ge.f32.partialorder %v346_v23, 0.0  ;;  %2812 = vmatprep.subr.bf16.mxu0 %v2911_v22 }
 0x12a   :  { %vm530_vm7 = vcmp.ge.f32.partialorder %v348_v26, 0.0  ;;  %v626_v32 = vmul.f32 0.01, %v348_v26  ;;  %v720_v33 = vsel %vm528_vm5, %v344_v20, %v624_v25  ;;  %2871 = vmatprep.subr.bf16.mxu1 %v2911_v22  ;;  %2813 = vmatpush3.bf16.msra.mxu0 %v2911_v22 }
 0x12b   :  { %vm531_vm8 = vcmp.ge.f32.partialorder %v350_v29, 0.0  ;;  %v627_v1 = vmul.f32 0.01, %v350_v29  ;;  %v721_v38 = vsel %vm529_vm6, %v346_v23, %v625_v28  ;;  %2879 = vmatpush3.bf16.msra.mxu1 %v2911_v22 }
 0x12c   :  { %v722_v34 = vsel %vm530_vm7, %v348_v26, %v626_v32 }
 0x12d   :  { %v353_v37 = vpop.f32.mrb[40].mxu0  ;;  %v723_v39 = vsel %vm531_vm8, %v350_v29, %v627_v1  ;;  %v798_v40 = vpack.c.bf16 %v722_v34, %v720_v33  ;;  %v2912_v29 = vld [vmem:[%s4159_s5 + $0x30] sm:$0xff]  }
 0x12e   :  { %v354_v41 = vadd.f32 %v353_v37, %v3437_v35  ;;  %v355_v42 = vpop.f32.mrb[41].mxu0  ;;  %v799_v43 = vpack.c.bf16 %v723_v39, %v721_v38  ;;  %2814 = vmatprep.subr.bf16.mxu0 %v2912_v29  ;;  %2872 = vmatprep.subr.bf16.mxu1 %v2912_v29 }
 0x12f   :  { %v356_v44 = vadd.f32 %v355_v42, %v3439_v36  ;;  %v357_v45 = vpop.f32.mrb[42].mxu0  ;;  %2815 = vmatpush3.bf16.msra.mxu0 %v2912_v29  ;;  %2880 = vmatpush3.bf16.msra.mxu1 %v2912_v29 }
 0x130   :  { %v628_v46 = vmul.f32 0.01, %v354_v41  ;;  %v358_v47 = vadd.f32 %v357_v45, %v3437_v35  ;;  %v359_v48 = vpop.f32.mrb[43].mxu0  ;;  %1066 = vmatprep.mubr.bf16.mxu1 %v799_v43  ;;  %vm532_vm9 = vcmp.ge.f32.partialorder %v354_v41, 0.0  ;;  %v2913_v45 = vld [vmem:[%s4159_s5 + $0x38] sm:$0xff]  }
 0x131   :  { %v629_v49 = vmul.f32 0.01, %v356_v44  ;;  %v360_v50 = vadd.f32 %v359_v48, %v3439_v36  ;;  %1067 = vmatmul.mubr.bf16.gmra.mrb[36].mxu1 %v798_v40  ;;  %vm533_vm10 = vcmp.ge.f32.partialorder %v356_v44, 0.0  ;;  %2816 = vmatprep.subr.bf16.mxu0 %v2913_v45 }
 0x132   :  { %vm534_vm11 = vcmp.ge.f32.partialorder %v358_v47, 0.0  ;;  %v630_v51 = vmul.f32 0.01, %v358_v47  ;;  %v724_v53 = vsel %vm532_vm9, %v354_v41, %v628_v46  ;;  %2873 = vmatprep.subr.bf16.mxu1 %v2913_v45 }
 0x133   :  { %vm535_vm12 = vcmp.ge.f32.partialorder %v360_v50, 0.0  ;;  %v631_v52 = vmul.f32 0.01, %v360_v50  ;;  %v725_v56 = vsel %vm533_vm10, %v356_v44, %v629_v49  ;;  %2817 = vmatpush3.bf16.msra.mxu0 %v2913_v45  ;;  %2881 = vmatpush3.bf16.msra.mxu1 %v2913_v45 }
 0x134   :  { %v726_v54 = vsel %vm534_vm11, %v358_v47, %v630_v51 }
 0x135   :  { %v363_v55 = vpop.f32.mrb[44].mxu0  ;;  %v727_v57 = vsel %vm535_vm12, %v360_v50, %v631_v52  ;;  %v800_v58 = vpack.c.bf16 %v726_v54, %v724_v53 }
 0x136   :  { %v364_v59 = vadd.f32 %v363_v55, %v3437_v35  ;;  %v365_v60 = vpop.f32.mrb[45].mxu0  ;;  %v801_v61 = vpack.c.bf16 %v727_v57, %v725_v56 }
 0x137   :  { %v366_v62 = vadd.f32 %v365_v60, %v3439_v36  ;;  %v367_v63 = vpop.f32.mrb[46].mxu0 }
 0x138   :  { %v632_v0 = vmul.f32 0.01, %v364_v59  ;;  %v368_v2 = vadd.f32 %v367_v63, %v3437_v35  ;;  %v369_v3 = vpop.f32.mrb[47].mxu0  ;;  %1074 = vmatprep.mubr.bf16.mxu1 %v801_v61  ;;  %vm536_vm13 = vcmp.ge.f32.partialorder %v364_v59, 0.0 }
 0x139   :  { %v633_v4 = vmul.f32 0.01, %v366_v62  ;;  %v370_v5 = vadd.f32 %v369_v3, %v3439_v36  ;;  %1075 = vmatmul.mubr.bf16.gmra.mrb[40].mxu1 %v800_v58  ;;  %vm537_vm14 = vcmp.ge.f32.partialorder %v366_v62, 0.0 }
 0x13a   :  { %vm538_vm15 = vcmp.ge.f32.partialorder %v368_v2, 0.0  ;;  %v634_v6 = vmul.f32 0.01, %v368_v2  ;;  %v728_v8 = vsel %vm536_vm13, %v364_v59, %v632_v0 }
 0x13b   :  { %vm539_vm0 = vcmp.ge.f32.partialorder %v370_v5, 0.0  ;;  %v635_v7 = vmul.f32 0.01, %v370_v5  ;;  %v729_v11 = vsel %vm537_vm14, %v366_v62, %v633_v4 }
 0x13c   :  { %v730_v9 = vsel %vm538_vm15, %v368_v2, %v634_v6 }
 0x13d   :  { %v373_v10 = vpop.f32.mrb[48].mxu0  ;;  %v731_v12 = vsel %vm539_vm0, %v370_v5, %v635_v7  ;;  %v802_v13 = vpack.c.bf16 %v730_v9, %v728_v8 }
 0x13e   :  { %v374_v14 = vadd.f32 %v373_v10, %v3437_v35  ;;  %v375_v15 = vpop.f32.mrb[49].mxu0  ;;  %v803_v16 = vpack.c.bf16 %v731_v12, %v729_v11 }
 0x13f   :  { %v376_v17 = vadd.f32 %v375_v15, %v3439_v36  ;;  %v377_v18 = vpop.f32.mrb[50].mxu0 }
 0x140   :  { %v636_v19 = vmul.f32 0.01, %v374_v14  ;;  %v378_v20 = vadd.f32 %v377_v18, %v3437_v35  ;;  %v379_v21 = vpop.f32.mrb[51].mxu0  ;;  %1082 = vmatprep.mubr.bf16.mxu1 %v803_v16  ;;  %vm540_vm1 = vcmp.ge.f32.partialorder %v374_v14, 0.0 }
 0x141   :  { %v637_v23 = vmul.f32 0.01, %v376_v17  ;;  %v380_v24 = vadd.f32 %v379_v21, %v3439_v36  ;;  %1083 = vmatmul.mubr.bf16.gmra.mrb[44].mxu1 %v802_v13  ;;  %vm541_vm2 = vcmp.ge.f32.partialorder %v376_v17, 0.0 }
 0x142   :  { %vm542_vm3 = vcmp.ge.f32.partialorder %v378_v20, 0.0  ;;  %v638_v25 = vmul.f32 0.01, %v378_v20  ;;  %v732_v27 = vsel %vm540_vm1, %v374_v14, %v636_v19 }
 0x143   :  { %vm543_vm4 = vcmp.ge.f32.partialorder %v380_v24, 0.0  ;;  %v639_v26 = vmul.f32 0.01, %v380_v24  ;;  %v733_v1 = vsel %vm541_vm2, %v376_v17, %v637_v23 }
 0x144   :  { %v734_v28 = vsel %vm542_vm3, %v378_v20, %v638_v25 }
 0x145   :  { %v383_v32 = vpop.f32.mrb[52].mxu0  ;;  %v735_v33 = vsel %vm543_vm4, %v380_v24, %v639_v26  ;;  %v804_v34 = vpack.c.bf16 %v734_v28, %v732_v27 }
 0x146   :  { %v384_v37 = vadd.f32 %v383_v32, %v3437_v35  ;;  %v385_v38 = vpop.f32.mrb[53].mxu0  ;;  %v805_v39 = vpack.c.bf16 %v735_v33, %v733_v1 }
 0x147   :  { %v386_v40 = vadd.f32 %v385_v38, %v3439_v36  ;;  %v387_v41 = vpop.f32.mrb[54].mxu0 }
 0x148   :  { %v640_v42 = vmul.f32 0.01, %v384_v37  ;;  %v388_v43 = vadd.f32 %v387_v41, %v3437_v35  ;;  %v389_v44 = vpop.f32.mrb[55].mxu0  ;;  %1090 = vmatprep.mubr.bf16.mxu1 %v805_v39  ;;  %vm544_vm5 = vcmp.ge.f32.partialorder %v384_v37, 0.0 }
 0x149   :  { %v641_v46 = vmul.f32 0.01, %v386_v40  ;;  %v390_v47 = vadd.f32 %v389_v44, %v3439_v36  ;;  %1091 = vmatmul.mubr.bf16.gmra.mrb[48].mxu1 %v804_v34  ;;  %vm545_vm6 = vcmp.ge.f32.partialorder %v386_v40, 0.0 }
 0x14a   :  { %vm546_vm7 = vcmp.ge.f32.partialorder %v388_v43, 0.0  ;;  %v642_v48 = vmul.f32 0.01, %v388_v43  ;;  %v736_v50 = vsel %vm544_vm5, %v384_v37, %v640_v42 }
 0x14b   :  { %vm547_vm8 = vcmp.ge.f32.partialorder %v390_v47, 0.0  ;;  %v643_v49 = vmul.f32 0.01, %v390_v47  ;;  %v737_v53 = vsel %vm545_vm6, %v386_v40, %v641_v46 }
 0x14c   :  { %v738_v51 = vsel %vm546_vm7, %v388_v43, %v642_v48 }
 0x14d   :  { %v393_v52 = vpop.f32.mrb[56].mxu0  ;;  %v739_v54 = vsel %vm547_vm8, %v390_v47, %v643_v49  ;;  %v806_v55 = vpack.c.bf16 %v738_v51, %v736_v50 }
 0x14e   :  { %v394_v56 = vadd.f32 %v393_v52, %v3437_v35  ;;  %v395_v57 = vpop.f32.mrb[57].mxu0  ;;  %v807_v58 = vpack.c.bf16 %v739_v54, %v737_v53 }
 0x14f   :  { %v396_v59 = vadd.f32 %v395_v57, %v3439_v36  ;;  %v397_v60 = vpop.f32.mrb[58].mxu0 }
 0x150   :  { %v644_v61 = vmul.f32 0.01, %v394_v56  ;;  %v398_v62 = vadd.f32 %v397_v60, %v3437_v35  ;;  %v399_v63 = vpop.f32.mrb[59].mxu0  ;;  %1098 = vmatprep.mubr.bf16.mxu1 %v807_v58  ;;  %vm548_vm9 = vcmp.ge.f32.partialorder %v394_v56, 0.0 }
 0x151   :  { %v645_v0 = vmul.f32 0.01, %v396_v59  ;;  %v400_v2 = vadd.f32 %v399_v63, %v3439_v36  ;;  %1099 = vmatmul.mubr.bf16.gmra.mrb[52].mxu1 %v806_v55  ;;  %vm549_vm10 = vcmp.ge.f32.partialorder %v396_v59, 0.0 }
 0x152   :  { %vm550_vm11 = vcmp.ge.f32.partialorder %v398_v62, 0.0  ;;  %v646_v3 = vmul.f32 0.01, %v398_v62  ;;  %v740_v5 = vsel %vm548_vm9, %v394_v56, %v644_v61 }
 0x153   :  { %vm551_vm12 = vcmp.ge.f32.partialorder %v400_v2, 0.0  ;;  %v647_v4 = vmul.f32 0.01, %v400_v2  ;;  %v741_v8 = vsel %vm549_vm10, %v396_v59, %v645_v0 }
 0x154   :  { %v742_v6 = vsel %vm550_vm11, %v398_v62, %v646_v3 }
 0x155   :  { %v403_v7 = vpop.f32.mrb[60].mxu0  ;;  %v743_v9 = vsel %vm551_vm12, %v400_v2, %v647_v4  ;;  %v808_v10 = vpack.c.bf16 %v742_v6, %v740_v5 }
 0x156   :  { %v404_v11 = vadd.f32 %v403_v7, %v3437_v35  ;;  %v405_v12 = vpop.f32.mrb[61].mxu0  ;;  %v809_v13 = vpack.c.bf16 %v743_v9, %v741_v8 }
 0x157   :  { %v406_v14 = vadd.f32 %v405_v12, %v3439_v36  ;;  %v407_v15 = vpop.f32.mrb[62].mxu0 }
 0x158   :  { %v648_v16 = vmul.f32 0.01, %v404_v11  ;;  %v408_v17 = vadd.f32 %v407_v15, %v3437_v35  ;;  %v409_v18 = vpop.f32.mrb[63].mxu0  ;;  %1106 = vmatprep.mubr.bf16.mxu1 %v809_v13  ;;  %vm552_vm13 = vcmp.ge.f32.partialorder %v404_v11, 0.0 }
 0x159   :  { %v649_v19 = vmul.f32 0.01, %v406_v14  ;;  %v410_v20 = vadd.f32 %v409_v18, %v3439_v36  ;;  %1107 = vmatmul.mubr.bf16.gmra.mrb[56].mxu1 %v808_v10  ;;  %vm553_vm14 = vcmp.ge.f32.partialorder %v406_v14, 0.0 }
 0x15a   :  { %vm554_vm15 = vcmp.ge.f32.partialorder %v408_v17, 0.0  ;;  %v650_v21 = vmul.f32 0.01, %v408_v17  ;;  %v744_v23 = vsel %vm552_vm13, %v404_v11, %v648_v16 }
 0x15b   :  { %vm555_vm0 = vcmp.ge.f32.partialorder %v410_v20, 0.0  ;;  %v651_v22 = vmul.f32 0.01, %v410_v20  ;;  %v745_v26 = vsel %vm553_vm14, %v406_v14, %v649_v19 }
 0x15c   :  { %v746_v24 = vsel %vm554_vm15, %v408_v17, %v650_v21 }
 0x15d   :  { %v413_v25 = vpop.f32.mrb[64].mxu0  ;;  %v747_v27 = vsel %vm555_vm0, %v410_v20, %v651_v22  ;;  %v810_v28 = vpack.c.bf16 %v746_v24, %v744_v23 }
 0x15e   :  { %v414_v29 = vadd.f32 %v413_v25, %v3437_v35  ;;  %v415_v32 = vpop.f32.mrb[65].mxu0  ;;  %v811_v1 = vpack.c.bf16 %v747_v27, %v745_v26 }
 0x15f   :  { %v416_v33 = vadd.f32 %v415_v32, %v3439_v36  ;;  %v417_v34 = vpop.f32.mrb[66].mxu0 }
 0x160   :  { %v652_v37 = vmul.f32 0.01, %v414_v29  ;;  %v418_v38 = vadd.f32 %v417_v34, %v3437_v35  ;;  %v419_v39 = vpop.f32.mrb[67].mxu0  ;;  %1114 = vmatprep.mubr.bf16.mxu1 %v811_v1  ;;  %vm556_vm1 = vcmp.ge.f32.partialorder %v414_v29, 0.0 }
 0x161   :  { %v653_v40 = vmul.f32 0.01, %v416_v33  ;;  %v420_v41 = vadd.f32 %v419_v39, %v3439_v36  ;;  %1115 = vmatmul.mubr.bf16.gmra.mrb[60].mxu1 %v810_v28  ;;  %vm557_vm2 = vcmp.ge.f32.partialorder %v416_v33, 0.0 }
 0x162   :  { %vm558_vm3 = vcmp.ge.f32.partialorder %v418_v38, 0.0  ;;  %v654_v42 = vmul.f32 0.01, %v418_v38  ;;  %v748_v44 = vsel %vm556_vm1, %v414_v29, %v652_v37 }
 0x163   :  { %vm559_vm4 = vcmp.ge.f32.partialorder %v420_v41, 0.0  ;;  %v655_v43 = vmul.f32 0.01, %v420_v41  ;;  %v749_v47 = vsel %vm557_vm2, %v416_v33, %v653_v40 }
 0x164   :  { %v750_v45 = vsel %vm558_vm3, %v418_v38, %v654_v42 }
 0x165   :  { %v423_v46 = vpop.f32.mrb[68].mxu0  ;;  %v751_v48 = vsel %vm559_vm4, %v420_v41, %v655_v43  ;;  %v812_v49 = vpack.c.bf16 %v750_v45, %v748_v44 }
 0x166   :  { %v424_v50 = vadd.f32 %v423_v46, %v3437_v35  ;;  %v425_v51 = vpop.f32.mrb[69].mxu0  ;;  %v813_v52 = vpack.c.bf16 %v751_v48, %v749_v47 }
 0x167   :  { %v426_v53 = vadd.f32 %v425_v51, %v3439_v36  ;;  %v427_v54 = vpop.f32.mrb[70].mxu0 }
 0x168   :  { %v656_v55 = vmul.f32 0.01, %v424_v50  ;;  %v428_v56 = vadd.f32 %v427_v54, %v3437_v35  ;;  %v429_v57 = vpop.f32.mrb[71].mxu0  ;;  %1122 = vmatprep.mubr.bf16.mxu1 %v813_v52  ;;  %vm560_vm5 = vcmp.ge.f32.partialorder %v424_v50, 0.0 }
 0x169   :  { %v657_v58 = vmul.f32 0.01, %v426_v53  ;;  %v430_v59 = vadd.f32 %v429_v57, %v3439_v36  ;;  %1123 = vmatmul.mubr.bf16.gmra.mrb[64].mxu1 %v812_v49  ;;  %vm561_vm6 = vcmp.ge.f32.partialorder %v426_v53, 0.0 }
 0x16a   :  { %vm562_vm7 = vcmp.ge.f32.partialorder %v428_v56, 0.0  ;;  %v658_v60 = vmul.f32 0.01, %v428_v56  ;;  %v752_v62 = vsel %vm560_vm5, %v424_v50, %v656_v55 }
 0x16b   :  { %vm563_vm8 = vcmp.ge.f32.partialorder %v430_v59, 0.0  ;;  %v659_v61 = vmul.f32 0.01, %v430_v59  ;;  %v753_v2 = vsel %vm561_vm6, %v426_v53, %v657_v58 }
 0x16c   :  { %v754_v63 = vsel %vm562_vm7, %v428_v56, %v658_v60 }
 0x16d   :  { %v433_v0 = vpop.f32.mrb[72].mxu0  ;;  %v755_v3 = vsel %vm563_vm8, %v430_v59, %v659_v61  ;;  %v814_v4 = vpack.c.bf16 %v754_v63, %v752_v62 }
 0x16e   :  { %v434_v5 = vadd.f32 %v433_v0, %v3437_v35  ;;  %v435_v6 = vpop.f32.mrb[73].mxu0  ;;  %v815_v7 = vpack.c.bf16 %v755_v3, %v753_v2 }
 0x16f   :  { %v436_v8 = vadd.f32 %v435_v6, %v3439_v36  ;;  %v437_v9 = vpop.f32.mrb[74].mxu0 }
 0x170   :  { %vm564_vm9 = vcmp.ge.f32.partialorder %v434_v5, 0.0  ;;  %v660_v10 = vmul.f32 0.01, %v434_v5  ;;  %v438_v11 = vadd.f32 %v437_v9, %v3437_v35  ;;  %v439_v12 = vpop.f32.mrb[75].mxu0  ;;  %1130 = vmatprep.mubr.bf16.mxu1 %v815_v7 }
 0x171   :  { %vm565_vm10 = vcmp.ge.f32.partialorder %v436_v8, 0.0  ;;  %v661_v13 = vmul.f32 0.01, %v436_v8  ;;  %v440_v14 = vadd.f32 %v439_v12, %v3439_v36  ;;  %1131 = vmatmul.mubr.bf16.gmra.mrb[68].mxu1 %v814_v4 }
 0x172   :  { %vm566_vm11 = vcmp.ge.f32.partialorder %v438_v11, 0.0  ;;  %v662_v15 = vmul.f32 0.01, %v438_v11  ;;  %v756_v16 = vsel %vm564_vm9, %v434_v5, %v660_v10 }
 0x173   :  { %vm567_vm12 = vcmp.ge.f32.partialorder %v440_v14, 0.0  ;;  %v663_v17 = vmul.f32 0.01, %v440_v14  ;;  %v757_v18 = vsel %vm565_vm10, %v436_v8, %v661_v13 }
 0x174   :  { %v758_v19 = vsel %vm566_vm11, %v438_v11, %v662_v15 }
 0x175   :  { %v443_v20 = vpop.f32.mrb[76].mxu0  ;;  %v759_v21 = vsel %vm567_vm12, %v440_v14, %v663_v17  ;;  %v816_v22 = vpack.c.bf16 %v758_v19, %v756_v16 }
 0x176   :  { %v444_v23 = vadd.f32 %v443_v20, %v3437_v35  ;;  %v445_v24 = vpop.f32.mrb[77].mxu0  ;;  %v817_v25 = vpack.c.bf16 %v759_v21, %v757_v18 }
 0x177   :  { %v446_v26 = vadd.f32 %v445_v24, %v3439_v36  ;;  %v447_v27 = vpop.f32.mrb[78].mxu0 }
 0x178   :  { %vm568_vm13 = vcmp.ge.f32.partialorder %v444_v23, 0.0  ;;  %v664_v28 = vmul.f32 0.01, %v444_v23  ;;  %v448_v29 = vadd.f32 %v447_v27, %v3437_v35  ;;  %v449_v32 = vpop.f32.mrb[79].mxu0  ;;  %1138 = vmatprep.mubr.bf16.mxu1 %v817_v25 }
 0x179   :  { %vm569_vm14 = vcmp.ge.f32.partialorder %v446_v26, 0.0  ;;  %v665_v1 = vmul.f32 0.01, %v446_v26  ;;  %v450_v33 = vadd.f32 %v449_v32, %v3439_v36  ;;  %1139 = vmatmul.mubr.bf16.gmra.mrb[72].mxu1 %v816_v22 }
 0x17a   :  { %vm570_vm15 = vcmp.ge.f32.partialorder %v448_v29, 0.0  ;;  %v666_v34 = vmul.f32 0.01, %v448_v29  ;;  %v760_v37 = vsel %vm568_vm13, %v444_v23, %v664_v28 }
 0x17b   :  { %vm571_vm0 = vcmp.ge.f32.partialorder %v450_v33, 0.0  ;;  %v667_v38 = vmul.f32 0.01, %v450_v33  ;;  %v761_v39 = vsel %vm569_vm14, %v446_v26, %v665_v1 }
 0x17c   :  { %v762_v40 = vsel %vm570_vm15, %v448_v29, %v666_v34 }
 0x17d   :  { %v763_v41 = vsel %vm571_vm0, %v450_v33, %v667_v38  ;;  %v818_v42 = vpack.c.bf16 %v762_v40, %v760_v37  ;;  %v453_v43 = vpop.f32.mrb[80].mxu0 }
 0x17e   :  { %v819_v44 = vpack.c.bf16 %v763_v41, %v761_v39  ;;  %v454_v45 = vadd.f32 %v453_v43, %v3437_v35  ;;  %v455_v46 = vpop.f32.mrb[81].mxu0 }
 0x17f   :  { %v456_v47 = vadd.f32 %v455_v46, %v3439_v36  ;;  %v457_v48 = vpop.f32.mrb[82].mxu0 }
 0x180   :  { %1146 = vmatprep.mubr.bf16.mxu1 %v819_v44  ;;  %vm572_vm1 = vcmp.ge.f32.partialorder %v454_v45, 0.0  ;;  %v668_v49 = vmul.f32 0.01, %v454_v45  ;;  %v458_v50 = vadd.f32 %v457_v48, %v3437_v35  ;;  %v459_v51 = vpop.f32.mrb[83].mxu0 }
 0x181   :  { %1147 = vmatmul.mubr.bf16.gmra.mrb[76].mxu1 %v818_v42  ;;  %vm573_vm2 = vcmp.ge.f32.partialorder %v456_v47, 0.0  ;;  %v669_v52 = vmul.f32 0.01, %v456_v47  ;;  %v460_v53 = vadd.f32 %v459_v51, %v3439_v36 }
 0x182   :  { %vm574_vm3 = vcmp.ge.f32.partialorder %v458_v50, 0.0  ;;  %v670_v54 = vmul.f32 0.01, %v458_v50  ;;  %v764_v55 = vsel %vm572_vm1, %v454_v45, %v668_v49 }
 0x183   :  { %vm575_vm4 = vcmp.ge.f32.partialorder %v460_v53, 0.0  ;;  %v671_v56 = vmul.f32 0.01, %v460_v53  ;;  %v765_v57 = vsel %vm573_vm2, %v456_v47, %v669_v52 }
 0x184   :  { %v766_v58 = vsel %vm574_vm3, %v458_v50, %v670_v54 }
 0x185   :  { %v463_v59 = vpop.f32.mrb[84].mxu0  ;;  %v767_v60 = vsel %vm575_vm4, %v460_v53, %v671_v56  ;;  %v820_v61 = vpack.c.bf16 %v766_v58, %v764_v55 }
 0x186   :  { %v464_v62 = vadd.f32 %v463_v59, %v3437_v35  ;;  %v465_v63 = vpop.f32.mrb[85].mxu0  ;;  %v821_v0 = vpack.c.bf16 %v767_v60, %v765_v57 }
 0x187   :  { %v466_v2 = vadd.f32 %v465_v63, %v3439_v36  ;;  %v467_v3 = vpop.f32.mrb[86].mxu0 }
 0x188   :  { %vm576_vm5 = vcmp.ge.f32.partialorder %v464_v62, 0.0  ;;  %v672_v4 = vmul.f32 0.01, %v464_v62  ;;  %v468_v5 = vadd.f32 %v467_v3, %v3437_v35  ;;  %v469_v6 = vpop.f32.mrb[87].mxu0  ;;  %1154 = vmatprep.mubr.bf16.mxu1 %v821_v0 }
 0x189   :  { %vm577_vm6 = vcmp.ge.f32.partialorder %v466_v2, 0.0  ;;  %v673_v7 = vmul.f32 0.01, %v466_v2  ;;  %v470_v8 = vadd.f32 %v469_v6, %v3439_v36  ;;  %1155 = vmatmul.mubr.bf16.gmra.mrb[80].mxu1 %v820_v61 }
 0x18a   :  { %vm578_vm7 = vcmp.ge.f32.partialorder %v468_v5, 0.0  ;;  %v674_v9 = vmul.f32 0.01, %v468_v5  ;;  %v768_v10 = vsel %vm576_vm5, %v464_v62, %v672_v4 }
 0x18b   :  { %vm579_vm8 = vcmp.ge.f32.partialorder %v470_v8, 0.0  ;;  %v675_v11 = vmul.f32 0.01, %v470_v8  ;;  %v769_v12 = vsel %vm577_vm6, %v466_v2, %v673_v7 }
 0x18c   :  { %v770_v13 = vsel %vm578_vm7, %v468_v5, %v674_v9 }
 0x18d   :  { %v473_v14 = vpop.f32.mrb[88].mxu0  ;;  %v771_v15 = vsel %vm579_vm8, %v470_v8, %v675_v11  ;;  %v822_v16 = vpack.c.bf16 %v770_v13, %v768_v10 }
 0x18e   :  { %v474_v17 = vadd.f32 %v473_v14, %v3437_v35  ;;  %v475_v18 = vpop.f32.mrb[89].mxu0  ;;  %v823_v19 = vpack.c.bf16 %v771_v15, %v769_v12 }
 0x18f   :  { %v476_v20 = vadd.f32 %v475_v18, %v3439_v36  ;;  %v477_v21 = vpop.f32.mrb[90].mxu0 }
 0x190   :  { %vm580_vm9 = vcmp.ge.f32.partialorder %v474_v17, 0.0  ;;  %v676_v22 = vmul.f32 0.01, %v474_v17  ;;  %v478_v23 = vadd.f32 %v477_v21, %v3437_v35  ;;  %v479_v24 = vpop.f32.mrb[91].mxu0  ;;  %1162 = vmatprep.mubr.bf16.mxu1 %v823_v19 }
 0x191   :  { %vm581_vm10 = vcmp.ge.f32.partialorder %v476_v20, 0.0  ;;  %v677_v25 = vmul.f32 0.01, %v476_v20  ;;  %v480_v26 = vadd.f32 %v479_v24, %v3439_v36  ;;  %1163 = vmatmul.mubr.bf16.gmra.mrb[84].mxu1 %v822_v16 }
 0x192   :  { %vm582_vm11 = vcmp.ge.f32.partialorder %v478_v23, 0.0  ;;  %v678_v27 = vmul.f32 0.01, %v478_v23  ;;  %v772_v28 = vsel %vm580_vm9, %v474_v17, %v676_v22 }
 0x193   :  { %vm583_vm12 = vcmp.ge.f32.partialorder %v480_v26, 0.0  ;;  %v679_v29 = vmul.f32 0.01, %v480_v26  ;;  %v773_v32 = vsel %vm581_vm10, %v476_v20, %v677_v25 }
 0x194   :  { %v774_v1 = vsel %vm582_vm11, %v478_v23, %v678_v27 }
 0x195   :  { %v483_v33 = vpop.f32.mrb[92].mxu0  ;;  %v775_v34 = vsel %vm583_vm12, %v480_v26, %v679_v29  ;;  %v824_v37 = vpack.c.bf16 %v774_v1, %v772_v28 }
 0x196   :  { %v484_v38 = vadd.f32 %v483_v33, %v3437_v35  ;;  %v485_v39 = vpop.f32.mrb[93].mxu0  ;;  %v825_v40 = vpack.c.bf16 %v775_v34, %v773_v32 }
 0x197   :  { %v486_v41 = vadd.f32 %v485_v39, %v3439_v36  ;;  %v487_v42 = vpop.f32.mrb[94].mxu0 }
 0x198   :  { %vm584_vm13 = vcmp.ge.f32.partialorder %v484_v38, 0.0  ;;  %v680_v43 = vmul.f32 0.01, %v484_v38  ;;  %v488_v44 = vadd.f32 %v487_v42, %v3437_v35  ;;  %v489_v45 = vpop.f32.mrb[95].mxu0  ;;  %1170 = vmatprep.mubr.bf16.mxu1 %v825_v40  ;;  %v3561_v35 = vld [vmem:[%s4161_s4] ss:$0 sm:$0xff] }
 0x199   :  { %vm585_vm14 = vcmp.ge.f32.partialorder %v486_v41, 0.0  ;;  %v681_v46 = vmul.f32 0.01, %v486_v41  ;;  %v490_v47 = vadd.f32 %v489_v45, %v3439_v36  ;;  %1171 = vmatmul.mubr.bf16.gmra.mrb[88].mxu1 %v824_v37 }
 0x19a   :  { %vm586_vm15 = vcmp.ge.f32.partialorder %v488_v44, 0.0  ;;  %v682_v48 = vmul.f32 0.01, %v488_v44  ;;  %v776_v49 = vsel %vm584_vm13, %v484_v38, %v680_v43 }
 0x19b   :  { %vm587_vm0 = vcmp.ge.f32.partialorder %v490_v47, 0.0  ;;  %v683_v50 = vmul.f32 0.01, %v490_v47  ;;  %v777_v51 = vsel %vm585_vm14, %v486_v41, %v681_v46 }
 0x19c   :  { %v778_v52 = vsel %vm586_vm15, %v488_v44, %v682_v48 }
 0x19d   :  { %v779_v53 = vsel %vm587_vm0, %v490_v47, %v683_v50  ;;  %v826_v54 = vpack.c.bf16 %v778_v52, %v776_v49 }
 0x19e   :  { %v827_v55 = vpack.c.bf16 %v779_v53, %v777_v51 }
 0x1a0   :  { %1178 = vmatprep.mubr.bf16.mxu1 %v827_v55 }
 0x1a1   :  { %1179 = vmatmul.mubr.bf16.gmra.mrb[92].mxu1 %v826_v54 }
 0x1bc   :  { %v996_v56 = vpop.f32.mrb[0].mxu1 }
 0x1bd   :  { %v997_v36 = vadd.f32 %v3561_v35, %v996_v56  ;;  %v998_v57 = vpop.f32.mrb[1].mxu1 }
 0x1be   :  { %v999_v58 = vpop.f32.mrb[2].mxu1 }
 0x1bf   :  { %v1235_v59 = vmul.f32 0.01, %v997_v36  ;;  %v1000_v60 = vadd.f32 %v3561_v35, %v999_v58  ;;  %v1001_v61 = vpop.f32.mrb[3].mxu1  ;;  %vm1187_vm1 = vcmp.ge.f32.partialorder %v997_v36, 0.0 }
 0x1c1   :  { %vm1188_vm2 = vcmp.ge.f32.partialorder %v1000_v60, 0.0  ;;  %v1236_v62 = vmul.f32 0.01, %v1000_v60  ;;  %v1283_v63 = vsel %vm1187_vm1, %v997_v36, %v1235_v59 }
 0x1c3   :  { %v1284_v0 = vsel %vm1188_vm2, %v1000_v60, %v1236_v62 }
 0x1c4   :  { %v1004_v2 = vpop.f32.mrb[4].mxu1  ;;  %v1331_v3 = vpack.c.bf16 %v1284_v0, %v1283_v63 }
 0x1c5   :  { %v1005_v4 = vadd.f32 %v3561_v35, %v1004_v2  ;;  %v1006_v5 = vpop.f32.mrb[5].mxu1 }
 0x1c6   :  { %v1007_v6 = vpop.f32.mrb[6].mxu1  ;;  %2818 = vmatprep.mubr.bf16.mxu0 %v1331_v3 }
 0x1c7   :  { %v1237_v7 = vmul.f32 0.01, %v1005_v4  ;;  %v1008_v8 = vadd.f32 %v3561_v35, %v1007_v6  ;;  %v1009_v9 = vpop.f32.mrb[7].mxu1  ;;  %vm1189_vm3 = vcmp.ge.f32.partialorder %v1005_v4, 0.0 }
 0x1c9   :  { %vm1190_vm4 = vcmp.ge.f32.partialorder %v1008_v8, 0.0  ;;  %v1238_v10 = vmul.f32 0.01, %v1008_v8  ;;  %v1285_v11 = vsel %vm1189_vm3, %v1005_v4, %v1237_v7 }
 0x1cb   :  { %v1286_v12 = vsel %vm1190_vm4, %v1008_v8, %v1238_v10 }
 0x1cc   :  { %v1332_v13 = vpack.c.bf16 %v1286_v12, %v1285_v11  ;;  %v1012_v14 = vpop.f32.mrb[8].mxu1 }
 0x1cd   :  { %v1013_v15 = vadd.f32 %v3561_v35, %v1012_v14  ;;  %v1014_v16 = vpop.f32.mrb[9].mxu1 }
 0x1ce   :  { %v1015_v17 = vpop.f32.mrb[10].mxu1  ;;  %2819 = vmatmul.mubr.bf16.vlgmr.msra.gmra.mrb[96].mxu0 %v1332_v13 }
 0x1cf   :  { %v1239_v18 = vmul.f32 0.01, %v1013_v15  ;;  %v1016_v19 = vadd.f32 %v3561_v35, %v1015_v17  ;;  %v1017_v20 = vpop.f32.mrb[11].mxu1  ;;  %vm1191_vm5 = vcmp.ge.f32.partialorder %v1013_v15, 0.0 }
 0x1d1   :  { %vm1192_vm6 = vcmp.ge.f32.partialorder %v1016_v19, 0.0  ;;  %v1240_v21 = vmul.f32 0.01, %v1016_v19  ;;  %v1287_v22 = vsel %vm1191_vm5, %v1013_v15, %v1239_v18 }
 0x1d3   :  { %v1288_v23 = vsel %vm1192_vm6, %v1016_v19, %v1240_v21 }
 0x1d4   :  { %v1020_v24 = vpop.f32.mrb[12].mxu1  ;;  %v1333_v25 = vpack.c.bf16 %v1288_v23, %v1287_v22 }
 0x1d5   :  { %v1021_v26 = vadd.f32 %v3561_v35, %v1020_v24  ;;  %v1022_v27 = vpop.f32.mrb[13].mxu1 }
 0x1d6   :  { %v1023_v28 = vpop.f32.mrb[14].mxu1  ;;  %2822 = vmatprep.mubr.bf16.mxu0 %v1333_v25 }
 0x1d7   :  { %v1241_v29 = vmul.f32 0.01, %v1021_v26  ;;  %v1024_v32 = vadd.f32 %v3561_v35, %v1023_v28  ;;  %v1025_v1 = vpop.f32.mrb[15].mxu1  ;;  %vm1193_vm7 = vcmp.ge.f32.partialorder %v1021_v26, 0.0 }
 0x1d9   :  { %vm1194_vm8 = vcmp.ge.f32.partialorder %v1024_v32, 0.0  ;;  %v1242_v33 = vmul.f32 0.01, %v1024_v32  ;;  %v1289_v34 = vsel %vm1193_vm7, %v1021_v26, %v1241_v29 }
 0x1db   :  { %v1290_v37 = vsel %vm1194_vm8, %v1024_v32, %v1242_v33 }
 0x1dc   :  { %v1028_v38 = vpop.f32.mrb[16].mxu1  ;;  %v1334_v39 = vpack.c.bf16 %v1290_v37, %v1289_v34 }
 0x1dd   :  { %v1029_v40 = vadd.f32 %v3561_v35, %v1028_v38  ;;  %v1030_v41 = vpop.f32.mrb[17].mxu1 }
 0x1de   :  { %v1031_v42 = vpop.f32.mrb[18].mxu1  ;;  %2823 = vmatmul.mubr.bf16.gmra.mrb[100].mxu0 %v1334_v39 }
 0x1df   :  { %v1243_v43 = vmul.f32 0.01, %v1029_v40  ;;  %v1032_v44 = vadd.f32 %v3561_v35, %v1031_v42  ;;  %v1033_v45 = vpop.f32.mrb[19].mxu1  ;;  %vm1195_vm9 = vcmp.ge.f32.partialorder %v1029_v40, 0.0 }
 0x1e1   :  { %vm1196_vm10 = vcmp.ge.f32.partialorder %v1032_v44, 0.0  ;;  %v1244_v46 = vmul.f32 0.01, %v1032_v44  ;;  %v1291_v47 = vsel %vm1195_vm9, %v1029_v40, %v1243_v43 }
 0x1e3   :  { %v1292_v48 = vsel %vm1196_vm10, %v1032_v44, %v1244_v46 }
 0x1e4   :  { %v1036_v49 = vpop.f32.mrb[20].mxu1  ;;  %v1335_v50 = vpack.c.bf16 %v1292_v48, %v1291_v47 }
 0x1e5   :  { %v1037_v51 = vadd.f32 %v3561_v35, %v1036_v49  ;;  %v1038_v52 = vpop.f32.mrb[21].mxu1 }
 0x1e6   :  { %v1039_v53 = vpop.f32.mrb[22].mxu1  ;;  %2826 = vmatprep.mubr.bf16.mxu0 %v1335_v50 }
 0x1e7   :  { %v1245_v54 = vmul.f32 0.01, %v1037_v51  ;;  %v1040_v55 = vadd.f32 %v3561_v35, %v1039_v53  ;;  %v1041_v56 = vpop.f32.mrb[23].mxu1  ;;  %vm1197_vm11 = vcmp.ge.f32.partialorder %v1037_v51, 0.0 }
 0x1e9   :  { %vm1198_vm12 = vcmp.ge.f32.partialorder %v1040_v55, 0.0  ;;  %v1246_v36 = vmul.f32 0.01, %v1040_v55  ;;  %v1293_v57 = vsel %vm1197_vm11, %v1037_v51, %v1245_v54 }
 0x1eb   :  { %v1294_v58 = vsel %vm1198_vm12, %v1040_v55, %v1246_v36 }
 0x1ec   :  { %v1044_v59 = vpop.f32.mrb[24].mxu1  ;;  %v1336_v60 = vpack.c.bf16 %v1294_v58, %v1293_v57 }
 0x1ed   :  { %v1045_v61 = vadd.f32 %v3561_v35, %v1044_v59  ;;  %v1046_v62 = vpop.f32.mrb[25].mxu1 }
 0x1ee   :  { %v1047_v63 = vpop.f32.mrb[26].mxu1  ;;  %2827 = vmatmul.mubr.bf16.gmra.mrb[104].mxu0 %v1336_v60 }
 0x1ef   :  { %v1247_v0 = vmul.f32 0.01, %v1045_v61  ;;  %v1048_v2 = vadd.f32 %v3561_v35, %v1047_v63  ;;  %v1049_v3 = vpop.f32.mrb[27].mxu1  ;;  %vm1199_vm13 = vcmp.ge.f32.partialorder %v1045_v61, 0.0 }
 0x1f1   :  { %vm1200_vm14 = vcmp.ge.f32.partialorder %v1048_v2, 0.0  ;;  %v1248_v4 = vmul.f32 0.01, %v1048_v2  ;;  %v1295_v5 = vsel %vm1199_vm13, %v1045_v61, %v1247_v0 }
 0x1f3   :  { %v1296_v6 = vsel %vm1200_vm14, %v1048_v2, %v1248_v4 }
 0x1f4   :  { %v1052_v7 = vpop.f32.mrb[28].mxu1  ;;  %v1337_v8 = vpack.c.bf16 %v1296_v6, %v1295_v5 }
 0x1f5   :  { %v1053_v9 = vadd.f32 %v3561_v35, %v1052_v7  ;;  %v1054_v10 = vpop.f32.mrb[29].mxu1 }
 0x1f6   :  { %v1055_v11 = vpop.f32.mrb[30].mxu1  ;;  %2830 = vmatprep.mubr.bf16.mxu0 %v1337_v8 }
 0x1f7   :  { %v1249_v12 = vmul.f32 0.01, %v1053_v9  ;;  %v1056_v13 = vadd.f32 %v3561_v35, %v1055_v11  ;;  %v1057_v14 = vpop.f32.mrb[31].mxu1  ;;  %vm1201_vm15 = vcmp.ge.f32.partialorder %v1053_v9, 0.0 }
 0x1f9   :  { %vm1202_vm0 = vcmp.ge.f32.partialorder %v1056_v13, 0.0  ;;  %v1250_v15 = vmul.f32 0.01, %v1056_v13  ;;  %v1297_v16 = vsel %vm1201_vm15, %v1053_v9, %v1249_v12 }
 0x1fb   :  { %v1298_v17 = vsel %vm1202_vm0, %v1056_v13, %v1250_v15 }
 0x1fc   :  { %v1060_v18 = vpop.f32.mrb[32].mxu1  ;;  %v1338_v19 = vpack.c.bf16 %v1298_v17, %v1297_v16 }
 0x1fd   :  { %v1061_v20 = vadd.f32 %v3561_v35, %v1060_v18  ;;  %v1062_v21 = vpop.f32.mrb[33].mxu1 }
 0x1fe   :  { %v1063_v22 = vpop.f32.mrb[34].mxu1  ;;  %2831 = vmatmul.mubr.bf16.gmra.mrb[108].mxu0 %v1338_v19 }
 0x1ff   :  { %v1251_v23 = vmul.f32 0.01, %v1061_v20  ;;  %v1064_v24 = vadd.f32 %v3561_v35, %v1063_v22  ;;  %v1065_v25 = vpop.f32.mrb[35].mxu1  ;;  %vm1203_vm1 = vcmp.ge.f32.partialorder %v1061_v20, 0.0 }
 0x201   :  { %vm1204_vm2 = vcmp.ge.f32.partialorder %v1064_v24, 0.0  ;;  %v1252_v26 = vmul.f32 0.01, %v1064_v24  ;;  %v1299_v27 = vsel %vm1203_vm1, %v1061_v20, %v1251_v23 }
 0x203   :  { %v1300_v28 = vsel %vm1204_vm2, %v1064_v24, %v1252_v26 }
 0x204   :  { %v1068_v29 = vpop.f32.mrb[36].mxu1  ;;  %v1339_v32 = vpack.c.bf16 %v1300_v28, %v1299_v27 }
 0x205   :  { %v1069_v1 = vadd.f32 %v3561_v35, %v1068_v29  ;;  %v1070_v33 = vpop.f32.mrb[37].mxu1 }
 0x206   :  { %v1071_v34 = vpop.f32.mrb[38].mxu1  ;;  %2834 = vmatprep.mubr.bf16.mxu0 %v1339_v32 }
 0x207   :  { %v1253_v37 = vmul.f32 0.01, %v1069_v1  ;;  %v1072_v38 = vadd.f32 %v3561_v35, %v1071_v34  ;;  %v1073_v39 = vpop.f32.mrb[39].mxu1  ;;  %vm1205_vm3 = vcmp.ge.f32.partialorder %v1069_v1, 0.0 }
 0x209   :  { %vm1206_vm4 = vcmp.ge.f32.partialorder %v1072_v38, 0.0  ;;  %v1254_v40 = vmul.f32 0.01, %v1072_v38  ;;  %v1301_v41 = vsel %vm1205_vm3, %v1069_v1, %v1253_v37 }
 0x20b   :  { %v1302_v42 = vsel %vm1206_vm4, %v1072_v38, %v1254_v40 }
 0x20c   :  { %v1076_v43 = vpop.f32.mrb[40].mxu1  ;;  %v1340_v44 = vpack.c.bf16 %v1302_v42, %v1301_v41 }
 0x20d   :  { %v1077_v45 = vadd.f32 %v3561_v35, %v1076_v43  ;;  %v1078_v46 = vpop.f32.mrb[41].mxu1 }
 0x20e   :  { %v1079_v47 = vpop.f32.mrb[42].mxu1  ;;  %2835 = vmatmul.mubr.bf16.gmra.mrb[112].mxu0 %v1340_v44 }
 0x20f   :  { %v1255_v48 = vmul.f32 0.01, %v1077_v45  ;;  %v1080_v49 = vadd.f32 %v3561_v35, %v1079_v47  ;;  %v1081_v50 = vpop.f32.mrb[43].mxu1  ;;  %vm1207_vm5 = vcmp.ge.f32.partialorder %v1077_v45, 0.0 }
 0x211   :  { %vm1208_vm6 = vcmp.ge.f32.partialorder %v1080_v49, 0.0  ;;  %v1256_v51 = vmul.f32 0.01, %v1080_v49  ;;  %v1303_v52 = vsel %vm1207_vm5, %v1077_v45, %v1255_v48 }
 0x213   :  { %v1304_v53 = vsel %vm1208_vm6, %v1080_v49, %v1256_v51 }
 0x214   :  { %v1084_v54 = vpop.f32.mrb[44].mxu1  ;;  %v1341_v55 = vpack.c.bf16 %v1304_v53, %v1303_v52 }
 0x215   :  { %v1085_v56 = vadd.f32 %v3561_v35, %v1084_v54  ;;  %v1086_v36 = vpop.f32.mrb[45].mxu1 }
 0x216   :  { %v1087_v57 = vpop.f32.mrb[46].mxu1  ;;  %2838 = vmatprep.mubr.bf16.mxu0 %v1341_v55 }
 0x217   :  { %v1257_v58 = vmul.f32 0.01, %v1085_v56  ;;  %v1088_v59 = vadd.f32 %v3561_v35, %v1087_v57  ;;  %v1089_v60 = vpop.f32.mrb[47].mxu1  ;;  %vm1209_vm7 = vcmp.ge.f32.partialorder %v1085_v56, 0.0 }
 0x219   :  { %vm1210_vm8 = vcmp.ge.f32.partialorder %v1088_v59, 0.0  ;;  %v1258_v61 = vmul.f32 0.01, %v1088_v59  ;;  %v1305_v62 = vsel %vm1209_vm7, %v1085_v56, %v1257_v58 }
 0x21b   :  { %v1306_v63 = vsel %vm1210_vm8, %v1088_v59, %v1258_v61 }
 0x21c   :  { %v1092_v0 = vpop.f32.mrb[48].mxu1  ;;  %v1342_v2 = vpack.c.bf16 %v1306_v63, %v1305_v62 }
 0x21d   :  { %v1093_v3 = vadd.f32 %v3561_v35, %v1092_v0  ;;  %v1094_v4 = vpop.f32.mrb[49].mxu1 }
 0x21e   :  { %v1095_v5 = vpop.f32.mrb[50].mxu1  ;;  %2839 = vmatmul.mubr.bf16.gmra.mrb[116].mxu0 %v1342_v2 }
 0x21f   :  { %v1259_v6 = vmul.f32 0.01, %v1093_v3  ;;  %v1096_v7 = vadd.f32 %v3561_v35, %v1095_v5  ;;  %v1097_v8 = vpop.f32.mrb[51].mxu1  ;;  %vm1211_vm9 = vcmp.ge.f32.partialorder %v1093_v3, 0.0 }
 0x221   :  { %vm1212_vm10 = vcmp.ge.f32.partialorder %v1096_v7, 0.0  ;;  %v1260_v9 = vmul.f32 0.01, %v1096_v7  ;;  %v1307_v10 = vsel %vm1211_vm9, %v1093_v3, %v1259_v6 }
 0x223   :  { %v1308_v11 = vsel %vm1212_vm10, %v1096_v7, %v1260_v9 }
 0x224   :  { %v1100_v12 = vpop.f32.mrb[52].mxu1  ;;  %v1343_v13 = vpack.c.bf16 %v1308_v11, %v1307_v10 }
 0x225   :  { %v1101_v14 = vadd.f32 %v3561_v35, %v1100_v12  ;;  %v1102_v15 = vpop.f32.mrb[53].mxu1 }
 0x226   :  { %v1103_v16 = vpop.f32.mrb[54].mxu1  ;;  %2842 = vmatprep.mubr.bf16.mxu0 %v1343_v13 }
 0x227   :  { %v1261_v17 = vmul.f32 0.01, %v1101_v14  ;;  %v1104_v18 = vadd.f32 %v3561_v35, %v1103_v16  ;;  %v1105_v19 = vpop.f32.mrb[55].mxu1  ;;  %vm1213_vm11 = vcmp.ge.f32.partialorder %v1101_v14, 0.0 }
 0x229   :  { %vm1214_vm12 = vcmp.ge.f32.partialorder %v1104_v18, 0.0  ;;  %v1262_v20 = vmul.f32 0.01, %v1104_v18  ;;  %v1309_v21 = vsel %vm1213_vm11, %v1101_v14, %v1261_v17 }
 0x22b   :  { %v1310_v22 = vsel %vm1214_vm12, %v1104_v18, %v1262_v20 }
 0x22c   :  { %v1108_v23 = vpop.f32.mrb[56].mxu1  ;;  %v1344_v24 = vpack.c.bf16 %v1310_v22, %v1309_v21 }
 0x22d   :  { %v1109_v25 = vadd.f32 %v3561_v35, %v1108_v23  ;;  %v1110_v26 = vpop.f32.mrb[57].mxu1 }
 0x22e   :  { %v1111_v27 = vpop.f32.mrb[58].mxu1  ;;  %2843 = vmatmul.mubr.bf16.gmra.mrb[120].mxu0 %v1344_v24 }
 0x22f   :  { %v1263_v28 = vmul.f32 0.01, %v1109_v25  ;;  %v1112_v29 = vadd.f32 %v3561_v35, %v1111_v27  ;;  %v1113_v32 = vpop.f32.mrb[59].mxu1  ;;  %vm1215_vm13 = vcmp.ge.f32.partialorder %v1109_v25, 0.0 }
 0x231   :  { %vm1216_vm14 = vcmp.ge.f32.partialorder %v1112_v29, 0.0  ;;  %v1264_v1 = vmul.f32 0.01, %v1112_v29  ;;  %v1311_v33 = vsel %vm1215_vm13, %v1109_v25, %v1263_v28 }
 0x233   :  { %v1312_v34 = vsel %vm1216_vm14, %v1112_v29, %v1264_v1 }
 0x234   :  { %v1116_v37 = vpop.f32.mrb[60].mxu1  ;;  %v1345_v38 = vpack.c.bf16 %v1312_v34, %v1311_v33 }
 0x235   :  { %v1117_v39 = vadd.f32 %v3561_v35, %v1116_v37  ;;  %v1118_v40 = vpop.f32.mrb[61].mxu1 }
 0x236   :  { %v1119_v41 = vpop.f32.mrb[62].mxu1  ;;  %2846 = vmatprep.mubr.bf16.mxu0 %v1345_v38 }
 0x237   :  { %v1265_v42 = vmul.f32 0.01, %v1117_v39  ;;  %v1120_v43 = vadd.f32 %v3561_v35, %v1119_v41  ;;  %v1121_v44 = vpop.f32.mrb[63].mxu1  ;;  %vm1217_vm15 = vcmp.ge.f32.partialorder %v1117_v39, 0.0 }
 0x239   :  { %vm1218_vm0 = vcmp.ge.f32.partialorder %v1120_v43, 0.0  ;;  %v1266_v45 = vmul.f32 0.01, %v1120_v43  ;;  %v1313_v46 = vsel %vm1217_vm15, %v1117_v39, %v1265_v42 }
 0x23b   :  { %v1314_v47 = vsel %vm1218_vm0, %v1120_v43, %v1266_v45 }
 0x23c   :  { %v1124_v48 = vpop.f32.mrb[64].mxu1  ;;  %v1346_v49 = vpack.c.bf16 %v1314_v47, %v1313_v46 }
 0x23d   :  { %v1125_v50 = vadd.f32 %v3561_v35, %v1124_v48  ;;  %v1126_v51 = vpop.f32.mrb[65].mxu1 }
 0x23e   :  { %v1127_v52 = vpop.f32.mrb[66].mxu1  ;;  %2847 = vmatmul.mubr.bf16.gmra.mrb[124].mxu0 %v1346_v49 }
 0x23f   :  { %v1267_v53 = vmul.f32 0.01, %v1125_v50  ;;  %v1128_v54 = vadd.f32 %v3561_v35, %v1127_v52  ;;  %v1129_v55 = vpop.f32.mrb[67].mxu1  ;;  %vm1219_vm1 = vcmp.ge.f32.partialorder %v1125_v50, 0.0 }
 0x241   :  { %vm1220_vm2 = vcmp.ge.f32.partialorder %v1128_v54, 0.0  ;;  %v1268_v56 = vmul.f32 0.01, %v1128_v54  ;;  %v1315_v36 = vsel %vm1219_vm1, %v1125_v50, %v1267_v53 }
 0x243   :  { %v1316_v57 = vsel %vm1220_vm2, %v1128_v54, %v1268_v56 }
 0x244   :  { %v1132_v58 = vpop.f32.mrb[68].mxu1  ;;  %v1347_v59 = vpack.c.bf16 %v1316_v57, %v1315_v36 }
 0x245   :  { %v1133_v60 = vadd.f32 %v3561_v35, %v1132_v58  ;;  %v1134_v61 = vpop.f32.mrb[69].mxu1 }
 0x246   :  { %v1135_v62 = vpop.f32.mrb[70].mxu1  ;;  %2850 = vmatprep.mubr.bf16.mxu0 %v1347_v59 }
 0x247   :  { %v1269_v63 = vmul.f32 0.01, %v1133_v60  ;;  %v1136_v0 = vadd.f32 %v3561_v35, %v1135_v62  ;;  %v1137_v2 = vpop.f32.mrb[71].mxu1  ;;  %vm1221_vm3 = vcmp.ge.f32.partialorder %v1133_v60, 0.0 }
 0x249   :  { %vm1222_vm4 = vcmp.ge.f32.partialorder %v1136_v0, 0.0  ;;  %v1270_v3 = vmul.f32 0.01, %v1136_v0  ;;  %v1317_v4 = vsel %vm1221_vm3, %v1133_v60, %v1269_v63  ;;  %vm1849_vm3 = vcmask 523264  }
 0x24b   :  { %v1318_v5 = vsel %vm1222_vm4, %v1136_v0, %v1270_v3 }
 0x24c   :  { %v1348_v6 = vpack.c.bf16 %v1318_v5, %v1317_v4  ;;  %v1140_v7 = vpop.f32.mrb[72].mxu1 }
 0x24d   :  { %v1141_v8 = vadd.f32 %v3561_v35, %v1140_v7  ;;  %v1142_v9 = vpop.f32.mrb[73].mxu1 }
 0x24e   :  { %2851 = vmatmul.mubr.bf16.gmra.mrb[128].mxu0 %v1348_v6  ;;  %v1143_v10 = vpop.f32.mrb[74].mxu1 }
 0x24f   :  { %vm1223_vm5 = vcmp.ge.f32.partialorder %v1141_v8, 0.0  ;;  %v1271_v11 = vmul.f32 0.01, %v1141_v8  ;;  %v1144_v12 = vadd.f32 %v3561_v35, %v1143_v10  ;;  %v1145_v13 = vpop.f32.mrb[75].mxu1 }
 0x251   :  { %vm1224_vm6 = vcmp.ge.f32.partialorder %v1144_v12, 0.0  ;;  %v1272_v14 = vmul.f32 0.01, %v1144_v12  ;;  %v1319_v15 = vsel %vm1223_vm5, %v1141_v8, %v1271_v11 }
 0x253   :  { %v1320_v16 = vsel %vm1224_vm6, %v1144_v12, %v1272_v14  ;;  %v3614_v12 = vld [vmem:[%s4162_s6] ss:$0 sm:$0xff] }
 0x254   :  { %v1148_v17 = vpop.f32.mrb[76].mxu1  ;;  %v1349_v18 = vpack.c.bf16 %v1320_v16, %v1319_v15 }
 0x255   :  { %v1149_v19 = vadd.f32 %v3561_v35, %v1148_v17  ;;  %v1150_v20 = vpop.f32.mrb[77].mxu1 }
 0x256   :  { %v1151_v21 = vpop.f32.mrb[78].mxu1  ;;  %2854 = vmatprep.mubr.bf16.mxu0 %v1349_v18  ;;  %v3622_v20 = vld [vmem:[%s4163_s7] ss:$0 sm:$0xff] }
 0x257   :  { %vm1225_vm7 = vcmp.ge.f32.partialorder %v1149_v19, 0.0  ;;  %v1273_v22 = vmul.f32 0.01, %v1149_v19  ;;  %v1152_v23 = vadd.f32 %v3561_v35, %v1151_v21  ;;  %v1153_v24 = vpop.f32.mrb[79].mxu1 }
 0x259   :  { %vm1226_vm8 = vcmp.ge.f32.partialorder %v1152_v23, 0.0  ;;  %v1274_v25 = vmul.f32 0.01, %v1152_v23  ;;  %v1321_v26 = vsel %vm1225_vm7, %v1149_v19, %v1273_v22 }
 0x25b   :  { %v1322_v27 = vsel %vm1226_vm8, %v1152_v23, %v1274_v25 }
 0x25c   :  { %v1350_v28 = vpack.c.bf16 %v1322_v27, %v1321_v26  ;;  %v1156_v29 = vpop.f32.mrb[80].mxu1 }
 0x25d   :  { %v1157_v32 = vadd.f32 %v3561_v35, %v1156_v29  ;;  %v1158_v1 = vpop.f32.mrb[81].mxu1 }
 0x25e   :  { %2855 = vmatmul.mubr.bf16.gmra.mrb[132].mxu0 %v1350_v28  ;;  %v1159_v33 = vpop.f32.mrb[82].mxu1 }
 0x25f   :  { %vm1227_vm9 = vcmp.ge.f32.partialorder %v1157_v32, 0.0  ;;  %v1275_v34 = vmul.f32 0.01, %v1157_v32  ;;  %v1160_v37 = vadd.f32 %v3561_v35, %v1159_v33  ;;  %v1161_v38 = vpop.f32.mrb[83].mxu1 }
 0x261   :  { %vm1228_vm10 = vcmp.ge.f32.partialorder %v1160_v37, 0.0  ;;  %v1276_v39 = vmul.f32 0.01, %v1160_v37  ;;  %v1323_v40 = vsel %vm1227_vm9, %v1157_v32, %v1275_v34 }
 0x263   :  { %v1324_v41 = vsel %vm1228_vm10, %v1160_v37, %v1276_v39 }
 0x264   :  { %v1164_v42 = vpop.f32.mrb[84].mxu1  ;;  %v1351_v43 = vpack.c.bf16 %v1324_v41, %v1323_v40 }
 0x265   :  { %v1165_v44 = vadd.f32 %v3561_v35, %v1164_v42  ;;  %v1166_v45 = vpop.f32.mrb[85].mxu1 }
 0x266   :  { %v1167_v46 = vpop.f32.mrb[86].mxu1  ;;  %2858 = vmatprep.mubr.bf16.mxu1 %v1351_v43 }
 0x267   :  { %vm1229_vm11 = vcmp.ge.f32.partialorder %v1165_v44, 0.0  ;;  %v1277_v47 = vmul.f32 0.01, %v1165_v44  ;;  %v1168_v48 = vadd.f32 %v3561_v35, %v1167_v46  ;;  %v1169_v49 = vpop.f32.mrb[87].mxu1 }
 0x269   :  { %v1325_v50 = vsel %vm1229_vm11, %v1165_v44, %v1277_v47  ;;  %vm1230_vm12 = vcmp.ge.f32.partialorder %v1168_v48, 0.0  ;;  %v1278_v51 = vmul.f32 0.01, %v1168_v48 }
 0x26b   :  { %v1326_v52 = vsel %vm1230_vm12, %v1168_v48, %v1278_v51 }
 0x26c   :  { %v1352_v53 = vpack.c.bf16 %v1326_v52, %v1325_v50  ;;  %v1172_v54 = vpop.f32.mrb[88].mxu1 }
 0x26d   :  { %v1173_v55 = vadd.f32 %v3561_v35, %v1172_v54  ;;  %v1174_v56 = vpop.f32.mrb[89].mxu1 }
 0x26e   :  { %2859 = vmatmul.mubr.bf16.vlgmr.msra.gmra.mrb[96].mxu1 %v1352_v53  ;;  %v1175_v36 = vpop.f32.mrb[90].mxu1 }
 0x26f   :  { %vm1231_vm13 = vcmp.ge.f32.partialorder %v1173_v55, 0.0  ;;  %v1279_v57 = vmul.f32 0.01, %v1173_v55  ;;  %v1176_v58 = vadd.f32 %v3561_v35, %v1175_v36  ;;  %v1177_v59 = vpop.f32.mrb[91].mxu1 }
 0x271   :  { %vm1232_vm14 = vcmp.ge.f32.partialorder %v1176_v58, 0.0  ;;  %v1280_v60 = vmul.f32 0.01, %v1176_v58  ;;  %v1327_v61 = vsel %vm1231_vm13, %v1173_v55, %v1279_v57 }
 0x273   :  { %v1328_v62 = vsel %vm1232_vm14, %v1176_v58, %v1280_v60 }
 0x274   :  { %v1180_v63 = vpop.f32.mrb[92].mxu1  ;;  %v1353_v0 = vpack.c.bf16 %v1328_v62, %v1327_v61 }
 0x275   :  { %v1181_v2 = vadd.f32 %v3561_v35, %v1180_v63  ;;  %v1182_v3 = vpop.f32.mrb[93].mxu1 }
 0x276   :  { %v1183_v4 = vpop.f32.mrb[94].mxu1  ;;  %2862 = vmatprep.mubr.bf16.mxu1 %v1353_v0 }
 0x277   :  { %vm1233_vm15 = vcmp.ge.f32.partialorder %v1181_v2, 0.0  ;;  %v1281_v5 = vmul.f32 0.01, %v1181_v2  ;;  %v1184_v6 = vadd.f32 %v3561_v35, %v1183_v4  ;;  %v1185_v7 = vpop.f32.mrb[95].mxu1 }
 0x279   :  { %vm1234_vm0 = vcmp.ge.f32.partialorder %v1184_v6, 0.0  ;;  %v1282_v8 = vmul.f32 0.01, %v1184_v6  ;;  %v1329_v9 = vsel %vm1233_vm15, %v1181_v2, %v1281_v5 }
 0x27b   :  { %v1330_v10 = vsel %vm1234_vm0, %v1184_v6, %v1282_v8 }
 0x27c   :  { %v1354_v11 = vpack.c.bf16 %v1330_v10, %v1329_v9  ;;  %v14_v9 = vstv %s4164_s8 }
 0x27d   :  { %15 = vst [vmem:[#allocation2] sm:$0x1] %v14_v9 }
 0x27e   :  { %2863 = vmatmul.mubr.bf16.gmra.mrb[100].mxu1 %v1354_v11 }
 0x2a1   :  { %v2820_v13 = vpop.f32.mrb[96].mxu0 }
 0x2a2   :  { %v1468_v14 = vadd.f32 %v2820_v13, %v3614_v12  ;;  %v1459_v15 = vpop.f32.mrb[97].mxu0 }
 0x2a3   :  { %v1460_v16 = vadd.f32 %v3614_v12, %v1459_v15  ;;  %v2821_v17 = vpop.f32.mrb[98].mxu0 }
 0x2a4   :  { %v1700_v35 = vmul.f32 0.01, %v1468_v14  ;;  %v1471_v18 = vadd.f32 %v2821_v17, %v3614_v12  ;;  %v1462_v19 = vpop.f32.mrb[99].mxu0  ;;  %vm1652_vm1 = vcmp.ge.f32.partialorder %v1468_v14, 0.0 }
 0x2a5   :  { %vm1650_vm2 = vcmp.ge.f32.partialorder %v1460_v16, 0.0  ;;  %v1698_v21 = vmul.f32 0.01, %v1460_v16  ;;  %v1463_v23 = vadd.f32 %v3614_v12, %v1462_v19 }
 0x2a6   :  { %v1701_v22 = vmul.f32 0.01, %v1471_v18  ;;  %v1748_v24 = vsel %vm1652_vm1, %v1468_v14, %v1700_v35  ;;  %vm1653_vm4 = vcmp.ge.f32.partialorder %v1471_v18, 0.0 }
 0x2a7   :  { %v1803_v25 = vmul.f32 %v3622_v20, %v1748_v24  ;;  %v1746_v26 = vsel %vm1650_vm2, %v1460_v16, %v1698_v21  ;;  %v1699_v29 = vmul.f32 0.01, %v1463_v23  ;;  %vm1651_vm5 = vcmp.ge.f32.partialorder %v1463_v23, 0.0 }
 0x2a8   :  { %v1801_v28 = vmul.f32 %v3622_v20, %v1746_v26  ;;  %v1749_v32 = vsel %vm1653_vm4, %v1471_v18, %v1701_v22 }
 0x2a9   :  { %v1856_v27 = vsel %vm1849_vm3, %v1803_v25, 0.0  ;;  %v1804_v33 = vmul.f32 %v3622_v20, %v1749_v32  ;;  %v1747_v34 = vsel %vm1651_vm5, %v1463_v23, %v1699_v29 }
 0x2aa   :  { %1857 = vadd.xlane.f32.xlu0 %v1856_v27  ;;  %v1850_v1 = vsel %vm1849_vm3, %v1801_v28, 0.0  ;;  %v1802_v39 = vmul.f32 %v3622_v20, %v1747_v34 }
 0x2ab   :  { %v1859_v38 = vsel %vm1849_vm3, %v1804_v33, 0.0 }
 0x2ac   :  { %v1853_v49 = vsel %vm1849_vm3, %v1802_v39, 0.0 }
 0x2ae   :  { %1851 = vadd.xlane.f32.xlu0 %v1850_v1 }
 0x2b1   :  { %v2824_v37 = vpop.f32.mrb[100].mxu0 }
 0x2b2   :  { %v1484_v40 = vadd.f32 %v2824_v37, %v3614_v12  ;;  %v1475_v41 = vpop.f32.mrb[101].mxu0  ;;  %1860 = vadd.xlane.f32.xlu0 %v1859_v38 }
 0x2b3   :  { %v1476_v42 = vadd.f32 %v3614_v12, %v1475_v41  ;;  %v2825_v43 = vpop.f32.mrb[102].mxu0 }
 0x2b4   :  { %v1704_v44 = vmul.f32 0.01, %v1484_v40  ;;  %v1487_v45 = vadd.f32 %v2825_v43, %v3614_v12  ;;  %v1478_v46 = vpop.f32.mrb[103].mxu0  ;;  %vm1656_vm6 = vcmp.ge.f32.partialorder %v1484_v40, 0.0 }
 0x2b5   :  { %vm1654_vm7 = vcmp.ge.f32.partialorder %v1476_v42, 0.0  ;;  %v1702_v47 = vmul.f32 0.01, %v1476_v42  ;;  %v1479_v48 = vadd.f32 %v3614_v12, %v1478_v46 }
 0x2b6   :  { %vm1657_vm8 = vcmp.ge.f32.partialorder %v1487_v45, 0.0  ;;  %v1705_v50 = vmul.f32 0.01, %v1487_v45  ;;  %1854 = vadd.xlane.f32.xlu0 %v1853_v49  ;;  %v1752_v51 = vsel %vm1656_vm6, %v1484_v40, %v1704_v44 }
 0x2b7   :  { %vm1655_vm9 = vcmp.ge.f32.partialorder %v1479_v48, 0.0  ;;  %v1703_v52 = vmul.f32 0.01, %v1479_v48  ;;  %v1807_v53 = vmul.f32 %v3622_v20, %v1752_v51  ;;  %v1750_v54 = vsel %vm1654_vm7, %v1476_v42, %v1702_v47 }
 0x2b8   :  { %v1753_v55 = vsel %vm1657_vm8, %v1487_v45, %v1705_v50  ;;  %v1805_v57 = vmul.f32 %v3622_v20, %v1750_v54 }
 0x2b9   :  { %v1868_v56 = vsel %vm1849_vm3, %v1807_v53, 0.0  ;;  %v1808_v36 = vmul.f32 %v3622_v20, %v1753_v55  ;;  %v1751_v58 = vsel %vm1655_vm9, %v1479_v48, %v1703_v52 }
 0x2ba   :  { %1869 = vadd.xlane.f32.xlu1 %v1868_v56  ;;  %v1806_v60 = vmul.f32 %v3622_v20, %v1751_v58  ;;  %v1862_v61 = vsel %vm1849_vm3, %v1805_v57, 0.0 }
 0x2bb   :  { %v1871_v59 = vsel %vm1849_vm3, %v1808_v36, 0.0 }
 0x2bc   :  { %1872 = vadd.xlane.f32.xlu0 %v1871_v59  ;;  %v1865_v62 = vsel %vm1849_vm3, %v1806_v60, 0.0 }
 0x2be   :  { %1863 = vadd.xlane.f32.xlu1 %v1862_v61 }
 0x2c0   :  { %1866 = vadd.xlane.f32.xlu0 %v1865_v62 }
 0x2c1   :  { %v3645_v63 = vpop.f32.mrb[104].mxu0 }
 0x2c2   :  { %v1491_v0 = vpop.f32.mrb[105].mxu0 }
 0x2c3   :  { %v1492_v2 = vadd.f32 %v3614_v12, %v1491_v0  ;;  %v3648_v3 = vpop.f32.mrb[106].mxu0 }
 0x2c4   :  { %v3650_v4 = vpop.f32.mrb[107].mxu0 }
 0x2c5   :  { %vm1658_vm10 = vcmp.ge.f32.partialorder %v1492_v2, 0.0  ;;  %v1706_v5 = vmul.f32 0.01, %v1492_v2 }
 0x2c7   :  { %v1754_v6 = vsel %vm1658_vm10, %v1492_v2, %v1706_v5 }
 0x2c8   :  { %v1809_v7 = vmul.f32 %v3622_v20, %v1754_v6 }
 0x2ca   :  { %v1874_v8 = vsel %vm1849_vm3, %v1809_v7, 0.0 }
 0x2cb   :  { %1875 = vadd.xlane.f32.xlu1 %v1874_v8 }
 0x2d1   :  { %v3657_v10 = vpop.f32.mrb[108].mxu0 }
 0x2d2   :  { %v3659_v11 = vpop.f32.mrb[109].mxu0 }
 0x2d3   :  { %v3661_v13 = vpop.f32.mrb[110].mxu0 }
 0x2d4   :  { %v3663_v14 = vpop.f32.mrb[111].mxu0 }
 0x2e1   :  { %v2836_v15 = vpop.f32.mrb[112].mxu0 }
 0x2e2   :  { %v1532_v16 = vadd.f32 %v2836_v15, %v3614_v12  ;;  %v1523_v17 = vpop.f32.mrb[113].mxu0 }
 0x2e3   :  { %v1524_v35 = vadd.f32 %v3614_v12, %v1523_v17  ;;  %v2837_v18 = vpop.f32.mrb[114].mxu0 }
 0x2e4   :  { %vm1668_vm11 = vcmp.ge.f32.partialorder %v1532_v16, 0.0  ;;  %v1716_v19 = vmul.f32 0.01, %v1532_v16  ;;  %v1535_v21 = vadd.f32 %v2837_v18, %v3614_v12  ;;  %v1526_v22 = vpop.f32.mrb[115].mxu0 }
 0x2e5   :  { %vm1666_vm12 = vcmp.ge.f32.partialorder %v1524_v35, 0.0  ;;  %v1714_v23 = vmul.f32 0.01, %v1524_v35  ;;  %v1527_v25 = vadd.f32 %v3614_v12, %v1526_v22 }
 0x2e6   :  { %v1717_v24 = vmul.f32 0.01, %v1535_v21  ;;  %v1764_v26 = vsel %vm1668_vm11, %v1532_v16, %v1716_v19  ;;  %vm1669_vm13 = vcmp.ge.f32.partialorder %v1535_v21, 0.0 }
 0x2e7   :  { %v1819_v27 = vmul.f32 %v3622_v20, %v1764_v26  ;;  %v1762_v28 = vsel %vm1666_vm12, %v1524_v35, %v1714_v23  ;;  %v1715_v1 = vmul.f32 0.01, %v1527_v25  ;;  %vm1667_vm14 = vcmp.ge.f32.partialorder %v1527_v25, 0.0 }
 0x2e8   :  { %v1817_v32 = vmul.f32 %v3622_v20, %v1762_v28  ;;  %v1765_v33 = vsel %vm1669_vm13, %v1535_v21, %v1717_v24  ;;  %v1495_v28 = vadd.f32 %v3614_v12, %v3650_v4 }
 0x2e9   :  { %v1904_v29 = vsel %vm1849_vm3, %v1819_v27, 0.0  ;;  %v1820_v37 = vmul.f32 %v3622_v20, %v1765_v33  ;;  %v1763_v38 = vsel %vm1667_vm14, %v1527_v25, %v1715_v1 }
 0x2ea   :  { %1905 = vadd.xlane.f32.xlu1 %v1904_v29  ;;  %v1898_v34 = vsel %vm1849_vm3, %v1817_v32, 0.0  ;;  %v1818_v41 = vmul.f32 %v3622_v20, %v1763_v38  ;;  %vm1659_vm9 = vcmp.ge.f32.partialorder %v1495_v28, 0.0 }
 0x2eb   :  { %v1907_v40 = vsel %vm1849_vm3, %v1820_v37, 0.0 }
 0x2ec   :  { %v1901_v51 = vsel %vm1849_vm3, %v1818_v41, 0.0 }
 0x2ee   :  { %1899 = vadd.xlane.f32.xlu1 %v1898_v34 }
 0x2f1   :  { %v2840_v39 = vpop.f32.mrb[116].mxu0 }
 0x2f2   :  { %v1548_v42 = vadd.f32 %v2840_v39, %v3614_v12  ;;  %v1539_v43 = vpop.f32.mrb[117].mxu0  ;;  %1908 = vadd.xlane.f32.xlu1 %v1907_v40 }
 0x2f3   :  { %v1540_v44 = vadd.f32 %v3614_v12, %v1539_v43  ;;  %v2841_v45 = vpop.f32.mrb[118].mxu0 }
 0x2f4   :  { %vm1672_vm15 = vcmp.ge.f32.partialorder %v1548_v42, 0.0  ;;  %v1720_v46 = vmul.f32 0.01, %v1548_v42  ;;  %v1551_v47 = vadd.f32 %v2841_v45, %v3614_v12  ;;  %v1542_v48 = vpop.f32.mrb[119].mxu0 }
 0x2f5   :  { %vm1670_vm0 = vcmp.ge.f32.partialorder %v1540_v44, 0.0  ;;  %v1718_v49 = vmul.f32 0.01, %v1540_v44  ;;  %v1543_v50 = vadd.f32 %v3614_v12, %v1542_v48 }
 0x2f6   :  { %vm1673_vm1 = vcmp.ge.f32.partialorder %v1551_v47, 0.0  ;;  %v1721_v52 = vmul.f32 0.01, %v1551_v47  ;;  %1902 = vadd.xlane.f32.xlu1 %v1901_v51  ;;  %v1768_v53 = vsel %vm1672_vm15, %v1548_v42, %v1720_v46  ;;  %v1707_v42 = vmul.f32 0.01, %v1495_v28 }
 0x2f7   :  { %vm1671_vm2 = vcmp.ge.f32.partialorder %v1543_v50, 0.0  ;;  %v1719_v54 = vmul.f32 0.01, %v1543_v50  ;;  %v1823_v55 = vmul.f32 %v3622_v20, %v1768_v53  ;;  %v1766_v56 = vsel %vm1670_vm0, %v1540_v44, %v1718_v49 }
 0x2f8   :  { %v1769_v36 = vsel %vm1673_vm1, %v1551_v47, %v1721_v52  ;;  %v1821_v59 = vmul.f32 %v3622_v20, %v1766_v56  ;;  %v1755_v52 = vsel %vm1659_vm9, %v1495_v28, %v1707_v42 }
 0x2f9   :  { %v1916_v57 = vsel %vm1849_vm3, %v1823_v55, 0.0  ;;  %v1824_v58 = vmul.f32 %v3622_v20, %v1769_v36  ;;  %v1767_v60 = vsel %vm1671_vm2, %v1543_v50, %v1719_v54  ;;  %v1500_v50 = vadd.f32 %v3645_v63, %v3614_v12 }
 0x2fa   :  { %1917 = vadd.xlane.f32.xlu0 %v1916_v57  ;;  %v1822_v62 = vmul.f32 %v3622_v20, %v1767_v60  ;;  %v1910_v0 = vsel %vm1849_vm3, %v1821_v59, 0.0  ;;  %v1810_v55 = vmul.f32 %v3622_v20, %v1755_v52  ;;  %v1503_v60 = vadd.f32 %v3648_v3, %v3614_v12 }
 0x2fb   :  { %v1919_v61 = vsel %vm1849_vm3, %v1824_v58, 0.0  ;;  %v1708_v56 = vmul.f32 0.01, %v1500_v50  ;;  %vm1660_vm11 = vcmp.ge.f32.partialorder %v1500_v50, 0.0 }
 0x2fc   :  { %1920 = vadd.xlane.f32.xlu1 %v1919_v61  ;;  %v1913_v2 = vsel %vm1849_vm3, %v1822_v62, 0.0  ;;  %vm1661_vm15 = vcmp.ge.f32.partialorder %v1503_v60, 0.0 }
 0x2fe   :  { %1911 = vadd.xlane.f32.xlu0 %v1910_v0  ;;  %v1877_v0 = vsel %vm1849_vm3, %v1810_v55, 0.0 }
 0x300   :  { %1914 = vadd.xlane.f32.xlu1 %v1913_v2 }
 0x301   :  { %v2844_v5 = vpop.f32.mrb[120].mxu0 }
 0x302   :  { %v1555_v6 = vpop.f32.mrb[121].mxu0  ;;  %v1564_v36 = vadd.f32 %v2844_v5, %v3614_v12 }
 0x303   :  { %v1556_v7 = vadd.f32 %v3614_v12, %v1555_v6  ;;  %v3690_v8 = vpop.f32.mrb[122].mxu0 }
 0x304   :  { %v1558_v9 = vpop.f32.mrb[123].mxu0  ;;  %v1724_v6 = vmul.f32 0.01, %v1564_v36  ;;  %vm1676_vm13 = vcmp.ge.f32.partialorder %v1564_v36, 0.0 }
 0x305   :  { %vm1674_vm4 = vcmp.ge.f32.partialorder %v1556_v7, 0.0  ;;  %v1722_v15 = vmul.f32 0.01, %v1556_v7  ;;  %v1559_v4 = vadd.f32 %v3614_v12, %v1558_v9  ;;  %v1756_v9 = vsel %vm1660_vm11, %v1500_v50, %v1708_v56 }
 0x307   :  { %v1770_v16 = vsel %vm1674_vm4, %v1556_v7, %v1722_v15  ;;  %v1723_v51 = vmul.f32 0.01, %v1559_v4  ;;  %vm1675_vm10 = vcmp.ge.f32.partialorder %v1559_v4, 0.0 }
 0x308   :  { %v1825_v17 = vmul.f32 %v3622_v20, %v1770_v16 }
 0x309   :  { %v1771_v57 = vsel %vm1675_vm10, %v1559_v4, %v1723_v51 }
 0x30a   :  { %v1922_v35 = vsel %vm1849_vm3, %v1825_v17, 0.0  ;;  %v1826_v2 = vmul.f32 %v3622_v20, %v1771_v57 }
 0x30b   :  { %1923 = vadd.xlane.f32.xlu0 %v1922_v35  ;;  %v1811_v35 = vmul.f32 %v3622_v20, %v1756_v9 }
 0x30c   :  { %v1925_v3 = vsel %vm1849_vm3, %v1826_v2, 0.0 }
 0x311   :  { %v3694_v18 = vpop.f32.mrb[124].mxu0 }
 0x312   :  { %v3696_v19 = vpop.f32.mrb[125].mxu0 }
 0x313   :  { %v3698_v21 = vpop.f32.mrb[126].mxu0 }
 0x314   :  { %v3700_v22 = vpop.f32.mrb[127].mxu0 }
 0x315   :  { %v1575_v51 = vadd.f32 %v3614_v12, %v3700_v22  ;;  %v1580_v22 = vadd.f32 %v3694_v18, %v3614_v12 }
 0x317   :  { %v1727_v55 = vmul.f32 0.01, %v1575_v51 }
 0x321   :  { %v2852_v23 = vpop.f32.mrb[128].mxu0 }
 0x322   :  { %v1596_v24 = vadd.f32 %v2852_v23, %v3614_v12  ;;  %v1587_v25 = vpop.f32.mrb[129].mxu0 }
 0x323   :  { %v1588_v26 = vadd.f32 %v3614_v12, %v1587_v25  ;;  %v2853_v27 = vpop.f32.mrb[130].mxu0  ;;  %v1567_v25 = vadd.f32 %v3690_v8, %v3614_v12 }
 0x324   :  { %vm1684_vm5 = vcmp.ge.f32.partialorder %v1596_v24, 0.0  ;;  %v1732_v29 = vmul.f32 0.01, %v1596_v24  ;;  %v1599_v32 = vadd.f32 %v2853_v27, %v3614_v12  ;;  %v1590_v1 = vpop.f32.mrb[131].mxu0  ;;  %v1772_v27 = vsel %vm1676_vm13, %v1564_v36, %v1724_v6 }
 0x325   :  { %vm1682_vm6 = vcmp.ge.f32.partialorder %v1588_v26, 0.0  ;;  %v1730_v33 = vmul.f32 0.01, %v1588_v26  ;;  %v1591_v34 = vadd.f32 %v3614_v12, %v1590_v1  ;;  %v1827_v1 = vmul.f32 %v3622_v20, %v1772_v27 }
 0x326   :  { %vm1685_vm7 = vcmp.ge.f32.partialorder %v1599_v32, 0.0  ;;  %v1733_v37 = vmul.f32 0.01, %v1599_v32  ;;  %v1780_v38 = vsel %vm1684_vm5, %v1596_v24, %v1732_v29  ;;  %v1709_v24 = vmul.f32 0.01, %v1503_v60 }
 0x327   :  { %vm1683_vm8 = vcmp.ge.f32.partialorder %v1591_v34, 0.0  ;;  %v1731_v39 = vmul.f32 0.01, %v1591_v34  ;;  %v1835_v40 = vmul.f32 %v3622_v20, %v1780_v38  ;;  %v1778_v41 = vsel %vm1682_vm6, %v1588_v26, %v1730_v33 }
 0x328   :  { %v1781_v43 = vsel %vm1685_vm7, %v1599_v32, %v1733_v37  ;;  %v1833_v46 = vmul.f32 %v3622_v20, %v1778_v41  ;;  %v1880_v29 = vsel %vm1849_vm3, %v1811_v35, 0.0  ;;  %v1508_v33 = vadd.f32 %v3614_v12, %v3659_v11 }
 0x329   :  { %v1952_v44 = vsel %vm1849_vm3, %v1835_v40, 0.0  ;;  %v1836_v45 = vmul.f32 %v3622_v20, %v1781_v43  ;;  %v1779_v47 = vsel %vm1683_vm8, %v1591_v34, %v1731_v39  ;;  %v1725_v34 = vmul.f32 0.01, %v1567_v25 }
 0x32a   :  { %1953 = vadd.xlane.f32.xlu0 %v1952_v44  ;;  %v1834_v49 = vmul.f32 %v3622_v20, %v1779_v47  ;;  %v1946_v53 = vsel %vm1849_vm3, %v1833_v46, 0.0  ;;  %v1757_v8 = vsel %vm1661_vm15, %v1503_v60, %v1709_v24  ;;  %vm1677_vm0 = vcmp.ge.f32.partialorder %v1567_v25, 0.0 }
 0x32b   :  { %v1955_v48 = vsel %vm1849_vm3, %v1836_v45, 0.0  ;;  %v1928_v37 = vsel %vm1849_vm3, %v1827_v1, 0.0  ;;  %v1812_v38 = vmul.f32 %v3622_v20, %v1757_v8  ;;  %v1710_v39 = vmul.f32 0.01, %v1508_v33 }
 0x32c   :  { %1956 = vadd.xlane.f32.xlu1 %v1955_v48  ;;  %v1949_v54 = vsel %vm1849_vm3, %v1834_v49, 0.0  ;;  %v1572_v40 = vadd.f32 %v3614_v12, %v3696_v19  ;;  %v1773_v41 = vsel %vm1677_vm0, %v1567_v25, %v1725_v34  ;;  %vm1662_vm1 = vcmp.ge.f32.partialorder %v1508_v33, 0.0 }
 0x32d   :  { %v1883_v11 = vsel %vm1849_vm3, %v1812_v38, 0.0  ;;  %v1828_v43 = vmul.f32 %v3622_v20, %v1773_v41  ;;  %v1511_v45 = vadd.f32 %v3614_v12, %v3663_v14  ;;  %v1758_v47 = vsel %vm1662_vm1, %v1508_v33, %v1710_v39 }
 0x32e   :  { %1947 = vadd.xlane.f32.xlu0 %v1946_v53  ;;  %v1726_v46 = vmul.f32 0.01, %v1572_v40  ;;  %vm1678_vm2 = vcmp.ge.f32.partialorder %v1572_v40, 0.0  ;;  %v1813_v49 = vmul.f32 %v3622_v20, %v1758_v47  ;;  %vm1679_vm5 = vcmp.ge.f32.partialorder %v1575_v51, 0.0 }
 0x32f   :  { %v1931_v19 = vsel %vm1849_vm3, %v1828_v43, 0.0  ;;  %v1711_v50 = vmul.f32 0.01, %v1511_v45  ;;  %vm1663_vm4 = vcmp.ge.f32.partialorder %v1511_v45, 0.0  ;;  %v1519_v6 = vadd.f32 %v3661_v13, %v3614_v12 }
 0x330   :  { %1950 = vadd.xlane.f32.xlu1 %v1949_v54  ;;  %v1774_v52 = vsel %vm1678_vm2, %v1572_v40, %v1726_v46  ;;  %v1886_v53 = vsel %vm1849_vm3, %v1813_v49, 0.0  ;;  %v1516_v54 = vadd.f32 %v3657_v10, %v3614_v12  ;;  %vm1680_vm7 = vcmp.ge.f32.partialorder %v1580_v22, 0.0 }
 0x331   :  { %v2856_v58 = vpop.f32.mrb[132].mxu0  ;;  %v1829_v14 = vmul.f32 %v3622_v20, %v1774_v52  ;;  %v1759_v56 = vsel %vm1663_vm4, %v1511_v45, %v1711_v50  ;;  %vm1665_vm8 = vcmp.ge.f32.partialorder %v1519_v6, 0.0 }
 0x332   :  { %v1612_v63 = vadd.f32 %v2856_v58, %v3614_v12  ;;  %v1603_v59 = vpop.f32.mrb[133].mxu0  ;;  %v1814_v57 = vmul.f32 %v3622_v20, %v1759_v56  ;;  %v1712_v58 = vmul.f32 0.01, %v1516_v54  ;;  %vm1664_vm6 = vcmp.ge.f32.partialorder %v1516_v54, 0.0 }
 0x333   :  { %v1604_v61 = vadd.f32 %v3614_v12, %v1603_v59  ;;  %v3725_v62 = vpop.f32.mrb[134].mxu0  ;;  %v1934_v36 = vsel %vm1849_vm3, %v1829_v14, 0.0  ;;  %v2721_v59 = vld [vmem:[#allocation2] ss:$0 sm:$0xff] }
 0x334   :  { %vm1688_vm12 = vcmp.ge.f32.partialorder %v1612_v63, 0.0  ;;  %v1736_v5 = vmul.f32 0.01, %v1612_v63  ;;  %1878 = vadd.xlane.f32.xlu1 %v1877_v0  ;;  %v3729_v7 = vpop.f32.mrb[135].mxu0  ;;  %v1889_v10 = vsel %vm1849_vm3, %v1814_v57, 0.0  ;;  %v1760_v18 = vsel %vm1664_vm6, %v1516_v54, %v1712_v58 }
 0x335   :  { %vm1686_vm14 = vcmp.ge.f32.partialorder %v1604_v61, 0.0  ;;  %v1734_v15 = vmul.f32 0.01, %v1604_v61  ;;  %v1615_v25 = vadd.f32 %v3725_v62, %v3614_v12  ;;  %vm2412_vm6 = vcmask 261312  }
 0x336   :  { %v1784_v16 = vsel %vm1688_vm12, %v1612_v63, %v1736_v5  ;;  %v1775_v63 = vsel %vm1679_vm5, %v1575_v51, %v1727_v55  ;;  %v1728_v5 = vmul.f32 0.01, %v1580_v22  ;;  %vm2405_vm5 = vcmask 195712  }
 0x337   :  { %v1839_v17 = vmul.f32 %v3622_v20, %v1784_v16  ;;  %v1782_v23 = vsel %vm1686_vm14, %v1604_v61, %v1734_v15  ;;  %v1830_v0 = vmul.f32 %v3622_v20, %v1775_v63  ;;  %v1815_v16 = vmul.f32 %v3622_v20, %v1760_v18 }
 0x338   :  { %1926 = vadd.xlane.f32.xlu1 %v1925_v3  ;;  %v1837_v26 = vmul.f32 %v3622_v20, %v1782_v23  ;;  %v1713_v3 = vmul.f32 0.01, %v1519_v6  ;;  %v1776_v35 = vsel %vm1680_vm7, %v1580_v22, %v1728_v5  ;;  %vm1689_vm10 = vcmp.ge.f32.partialorder %v1615_v25, 0.0 }
 0x339   :  { %v1964_v28 = vsel %vm1849_vm3, %v1839_v17, 0.0  ;;  %v1937_v15 = vsel %vm1849_vm3, %v1830_v0, 0.0  ;;  %v1583_v17 = vadd.f32 %v3698_v21, %v3614_v12  ;;  %v1892_v13 = vsel %vm1849_vm3, %v1815_v16, 0.0 }
 0x33a   :  { %1965 = vadd.xlane.f32.xlu0 %v1964_v28  ;;  %v1958_v32 = vsel %vm1849_vm3, %v1837_v26, 0.0  ;;  %v1831_v23 = vmul.f32 %v3622_v20, %v1776_v35  ;;  %v1761_v26 = vsel %vm1665_vm8, %v1519_v6, %v1713_v3  ;;  %v1607_v21 = vadd.f32 %v3614_v12, %v3729_v7 }
 0x33b   :  { %v1729_v24 = vmul.f32 0.01, %v1583_v17  ;;  %vm1681_vm9 = vcmp.ge.f32.partialorder %v1583_v17, 0.0  ;;  %v1816_v28 = vmul.f32 %v3622_v20, %v1761_v26  ;;  %vm2419_vm7 = vcmask 326912  }
 0x33c   :  { %1881 = vadd.xlane.f32.xlu1 %v1880_v29  ;;  %v1940_v27 = vsel %vm1849_vm3, %v1831_v23, 0.0  ;;  %v1737_v29 = vmul.f32 0.01, %v1615_v25  ;;  %v1735_v34 = vmul.f32 0.01, %v1607_v21  ;;  %vm1687_vm11 = vcmp.ge.f32.partialorder %v1607_v21, 0.0 }
 0x33d   :  { %v1895_v33 = vsel %vm1849_vm3, %v1816_v28, 0.0  ;;  %vm2426_vm8 = vcmask 392512  }
 0x33e   :  { %1959 = vadd.xlane.f32.xlu0 %v1958_v32  ;;  %v1777_v32 = vsel %vm1681_vm9, %v1583_v17, %v1729_v24  ;;  %v1783_v43 = vsel %vm1687_vm11, %v1607_v21, %v1735_v34  ;;  %vm2433_vm9 = vcmask 458112   ;;  %vm2447_vm11 = vcmask 589312  }
 0x33f   :  { %v1832_v62 = vmul.f32 %v3622_v20, %v1777_v32  ;;  %v1838_v45 = vmul.f32 %v3622_v20, %v1783_v43 }
 0x340   :  { %1929 = vadd.xlane.f32.xlu1 %v1928_v37  ;;  %v1785_v37 = vsel %vm1689_vm10, %v1615_v25, %v1737_v29  ;;  %vm2440_vm10 = vcmask 523712  }
 0x341   :  { %v3747_v42 = vpop.f32.mrb[96].mxu1  ;;  %v1943_v7 = vsel %vm1849_vm3, %v1832_v62, 0.0  ;;  %v1840_v40 = vmul.f32 %v3622_v20, %v1785_v37  ;;  %v1961_v50 = vsel %vm1849_vm3, %v1838_v45, 0.0 }
 0x342   :  { %v3749_v4 = vpop.f32.mrb[97].mxu1  ;;  %v1628_v8 = vadd.f32 %v3747_v42, %v3614_v12 }
 0x343   :  { %v2861_v44 = vpop.f32.mrb[98].mxu1  ;;  %v1967_v42 = vsel %vm1849_vm3, %v1840_v40, 0.0 }
 0x344   :  { %1884 = vadd.xlane.f32.xlu1 %v1883_v11  ;;  %v3755_v48 = vpop.f32.mrb[99].mxu1  ;;  %v1631_v1 = vadd.f32 %v2861_v44, %v3614_v12  ;;  %v1740_v41 = vmul.f32 0.01, %v1628_v8  ;;  %v1620_v11 = vadd.f32 %v3614_v12, %v3749_v4  ;;  %vm1692_vm13 = vcmp.ge.f32.partialorder %v1628_v8, 0.0 }
 0x346   :  { %v1741_v38 = vmul.f32 0.01, %v1631_v1  ;;  %vm1693_vm12 = vcmp.ge.f32.partialorder %v1631_v1, 0.0  ;;  %v1738_v47 = vmul.f32 0.01, %v1620_v11  ;;  %v1788_v49 = vsel %vm1692_vm13, %v1628_v8, %v1740_v41 }
 0x347   :  { %vm1690_vm15 = vcmp.ge.f32.partialorder %v1620_v11, 0.0  ;;  %v1843_v51 = vmul.f32 %v3622_v20, %v1788_v49  ;;  %v3828_v35 = vpop.xlane.xlu1 %1869  ;;  %vm2461_vm13 = vcmask 720512  }
 0x348   :  { %1932 = vadd.xlane.f32.xlu1 %v1931_v19  ;;  %v1789_v46 = vsel %vm1693_vm12, %v1631_v1, %v1741_v38  ;;  %v1623_v19 = vadd.f32 %v3614_v12, %v3755_v48  ;;  %v1786_v54 = vsel %vm1690_vm15, %v1620_v11, %v1738_v47  ;;  %vm2454_vm12 = vcmask 654912  }
 0x349   :  { %v1844_v4 = vmul.f32 %v3622_v20, %v1789_v46  ;;  %v1976_v56 = vsel %vm1849_vm3, %v1843_v51, 0.0  ;;  %vm2475_vm15 = vcmask 851712  }
 0x34a   :  { %vm1691_vm0 = vcmp.ge.f32.partialorder %v1623_v19, 0.0 }
 0x34b   :  { %v1979_v48 = vsel %vm1849_vm3, %v1844_v4, 0.0  ;;  %v3832_v23 = vpop.xlane.xlu1 %1863 }
 0x34c   :  { %1887 = vadd.xlane.f32.xlu1 %v1886_v53  ;;  %v1739_v53 = vmul.f32 0.01, %v1623_v19 }
 0x34e   :  { %v1787_v22 = vsel %vm1691_vm0, %v1623_v19, %v1739_v53  ;;  %vm2482_vm0 = vcmask 917312  }
 0x350   :  { %1935 = vadd.xlane.f32.xlu1 %v1934_v36  ;;  %v1841_v36 = vmul.f32 %v3622_v20, %v1786_v54 }
 0x351   :  { %v2864_v60 = vpop.f32.mrb[100].mxu1 }
 0x352   :  { %v3769_v61 = vpop.f32.mrb[101].mxu1  ;;  %v1644_v39 = vadd.f32 %v2864_v60, %v3614_v12  ;;  %v1842_v60 = vmul.f32 %v3622_v20, %v1787_v22 }
 0x353   :  { %v3773_v2 = vpop.f32.mrb[102].mxu1  ;;  %v1636_v14 = vadd.f32 %v3614_v12, %v3769_v61 }
 0x354   :  { %1890 = vadd.xlane.f32.xlu1 %v1889_v10  ;;  %2000 = vperm.xlu0 %2883, %v2721_v59   ;;  %v3777_v9 = vpop.f32.mrb[103].mxu1  ;;  %v1744_v44 = vmul.f32 0.01, %v1644_v39  ;;  %vm1696_vm14 = vcmp.ge.f32.partialorder %v1644_v39, 0.0  ;;  %v1970_v59 = vsel %vm1849_vm3, %v1841_v36, 0.0  ;;  %v1647_v61 = vadd.f32 %v3773_v2, %v3614_v12 }
 0x355   :  { %v1742_v57 = vmul.f32 0.01, %v1636_v14  ;;  %v1639_v58 = vadd.f32 %v3614_v12, %v3777_v9  ;;  %vm1694_vm1 = vcmp.ge.f32.partialorder %v1636_v14, 0.0  ;;  %v1973_v6 = vsel %vm1849_vm3, %v1842_v60, 0.0 }
 0x356   :  { %v1792_v52 = vsel %vm1696_vm14, %v1644_v39, %v1744_v44  ;;  %v1745_v18 = vmul.f32 0.01, %v1647_v61  ;;  %vm1697_vm4 = vcmp.ge.f32.partialorder %v1647_v61, 0.0  ;;  %vm2468_vm14 = vcmask 786112  }
 0x357   :  { %v1847_v55 = vmul.f32 %v3622_v20, %v1792_v52  ;;  %v1743_v10 = vmul.f32 0.01, %v1639_v58  ;;  %v1790_v0 = vsel %vm1694_vm1, %v1636_v14, %v1742_v57  ;;  %vm1695_vm2 = vcmp.ge.f32.partialorder %v1639_v58, 0.0 }
 0x358   :  { %1938 = vadd.xlane.f32.xlu1 %v1937_v15  ;;  %v1845_v5 = vmul.f32 %v3622_v20, %v1790_v0  ;;  %v1793_v3 = vsel %vm1697_vm4, %v1647_v61, %v1745_v18  ;;  %v3834_v24 = vpop.xlane.xlu1 %1875  ;;  %vm2489_vm1 = vcmask 982912   ;;  %vm2656_vm4 = vcmask 1041409  }
 0x359   :  { %v1988_v63 = vsel %vm1849_vm3, %v1847_v55, 0.0  ;;  %v1791_v9 = vsel %vm1695_vm2, %v1639_v58, %v1743_v10  ;;  %v1848_v2 = vmul.f32 %v3622_v20, %v1793_v3  ;;  %v3878_v10 = vand.u32 127, %v116_v30 }
 0x35a   :  { %v1982_v15 = vsel %vm1849_vm3, %v1845_v5, 0.0  ;;  %v1846_v16 = vmul.f32 %v3622_v20, %v1791_v9  ;;  %vm2496_vm2 = vcmask 1048512  }
 0x35b   :  { %v1991_v17 = vsel %vm1849_vm3, %v1848_v2, 0.0  ;;  %v2393_v3 = vadd.s32 4294967288, %v3878_v10  ;;  %v2400_v30 = vadd.s32 4294967280, %v3878_v10 }
 0x35c   :  { %1893 = vadd.xlane.f32.xlu1 %v1892_v13  ;;  %v1985_v12 = vsel %vm1849_vm3, %v1846_v16, 0.0  ;;  %v3830_v13 = vpop.xlane.xlu0 %1857  ;;  %vm2398_vm3 = vcmask 130112  }
 0x360   :  { %1941 = vadd.xlane.f32.xlu1 %v1940_v27  ;;  %v3836_v25 = vpop.xlane.xlu0 %1851 }
 0x364   :  { %1896 = vadd.xlane.f32.xlu1 %v1895_v33  ;;  %v3838_v27 = vpop.xlane.xlu0 %1860 }
 0x368   :  { %1944 = vadd.xlane.f32.xlu1 %v1943_v7  ;;  %v3840_v29 = vpop.xlane.xlu0 %1854 }
 0x36c   :  { %1968 = vadd.xlane.f32.xlu1 %v1967_v42  ;;  %v3842_v21 = vpop.xlane.xlu0 %1872 }
 0x370   :  { %1962 = vadd.xlane.f32.xlu1 %v1961_v50  ;;  %v3844_v1 = vpop.xlane.xlu0 %1866 }
 0x373   :  { %1980 = vadd.xlane.f32.xlu0 %v1979_v48 }
 0x374   :  { %1977 = vadd.xlane.f32.xlu1 %v1976_v56 }
 0x377   :  { %1989 = vadd.xlane.f32.xlu0 %v1988_v63  ;;  %v1906_v26 = vpop.xlane.xlu1 %1905 }
 0x378   :  { %1971 = vadd.xlane.f32.xlu1 %v1970_v59 }
 0x37b   :  { %v1900_v28 = vpop.xlane.xlu1 %1899 }
 0x37c   :  { %1974 = vadd.xlane.f32.xlu1 %v1973_v6 }
 0x37f   :  { %v1909_v20 = vpop.xlane.xlu1 %1908 }
 0x380   :  { %1983 = vadd.xlane.f32.xlu1 %v1982_v15 }
 0x383   :  { %v1903_v32 = vpop.xlane.xlu1 %1902 }
 0x384   :  { %1986 = vadd.xlane.f32.xlu1 %v1985_v12 }
 0x387   :  { %v1918_v62 = vpop.xlane.xlu0 %1917 }
 0x388   :  { %1992 = vadd.xlane.f32.xlu1 %v1991_v17 }
 0x389   :  { %v1921_v33 = vpop.xlane.xlu1 %1920 }
 0x38b   :  { %v1912_v8 = vpop.xlane.xlu0 %1911 }
 0x38d   :  { %v1915_v34 = vpop.xlane.xlu1 %1914 }
 0x398   :  { %v1924_v38 = vpop.xlane.xlu0 %1923 }
 0x3b7   :  { %v3850_v7 = vpop.xlane.xlu0 %1953 }
 0x3b9   :  { %v3846_v37 = vpop.xlane.xlu1 %1956 }
 0x3bb   :  { %v3854_v41 = vpop.xlane.xlu0 %1947 }
 0x3bd   :  { %v3848_v39 = vpop.xlane.xlu1 %1950 }
 0x3c1   :  { %v3852_v40 = vpop.xlane.xlu1 %1878 }
 0x3c5   :  { %v1927_v11 = vpop.xlane.xlu1 %1926 }
 0x3c7   :  { %v3856_v43 = vpop.xlane.xlu0 %1965 }
 0x3c9   :  { %v3858_v44 = vpop.xlane.xlu1 %1881 }
 0x3cb   :  { %v3860_v45 = vpop.xlane.xlu0 %1959 }
 0x3cd   :  { %v1930_v42 = vpop.xlane.xlu1 %1929 }
 0x3d1   :  { %v1885_v46 = vpop.xlane.xlu1 %1884 }
 0x3d3   :  { %v3862_v47 = vpop.permute.xlu0 %2000 }
 0x3d4   :  { %v2014_v19 = vadd.f32 %v3862_v47, %v1885_v46  ;;  %v2019_v49 = vadd.f32 %v3862_v47, %v1900_v28  ;;  %v2020_v4 = vadd.f32 %v3862_v47, %v1903_v32  ;;  %v2021_v50 = vadd.f32 %v3862_v47, %v1906_v26 }
 0x3d5   :  { %v1933_v51 = vpop.xlane.xlu1 %1932  ;;  %v2022_v52 = vadd.f32 %v3862_v47, %v1909_v20  ;;  %v2023_v53 = vadd.f32 %v3862_v47, %v1912_v8  ;;  %v2024_v14 = vadd.f32 %v3862_v47, %v1915_v34  ;;  %v2025_v56 = vadd.f32 %v3862_v47, %v1918_v62 }
 0x3d6   :  { %v2733_v54 = vmul.f32 -1.442695, %v2014_v19  ;;  %v2738_v48 = vmul.f32 -1.442695, %v2019_v49  ;;  %v2739_v55 = vmul.f32 -1.442695, %v2020_v4  ;;  %v2026_v57 = vadd.f32 %v3862_v47, %v1921_v33 }
 0x3d7   :  { %v2740_v36 = vmul.f32 -1.442695, %v2021_v50  ;;  %v2741_v58 = vmul.f32 -1.442695, %v2022_v52  ;;  %v2027_v63 = vadd.f32 %v3862_v47, %v1924_v38  ;;  %v2742_v59 = vmul.f32 -1.442695, %v2023_v53 }
 0x3d8   :  { %2914 = vpow2.f32 %v2733_v54  ;;  %v2028_v60 = vadd.f32 %v3862_v47, %v1927_v11  ;;  %v2743_v61 = vmul.f32 -1.442695, %v2024_v14  ;;  %v2029_v0 = vadd.f32 %v3862_v47, %v1930_v42 }
 0x3d9   :  { %v3873_v22 = vpop.xlane.xlu1 %1887  ;;  %2916 = vpow2.f32 %v2738_v48  ;;  %v2744_v6 = vmul.f32 -1.442695, %v2025_v56  ;;  %v2745_v5 = vmul.f32 -1.442695, %v2026_v57  ;;  %v2030_v9 = vadd.f32 %v3862_v47, %v1933_v51 }
 0x3da   :  { %2918 = vpow2.f32 %v2739_v55  ;;  %v2746_v15 = vmul.f32 -1.442695, %v2027_v63  ;;  %v2747_v16 = vmul.f32 -1.442695, %v2028_v60  ;;  %v2748_v12 = vmul.f32 -1.442695, %v2029_v0 }
 0x3db   :  { %2920 = vpow2.f32 %v2740_v36  ;;  %v2749_v17 = vmul.f32 -1.442695, %v2030_v9  ;;  %v2407_v28 = vadd.s32 4294967272, %v3878_v10  ;;  %v3891_v32 = vsub.s32 %v3878_v10, %v3427_v31 }
 0x3dc   :  { %2922 = vpow2.f32 %v2741_v58  ;;  %v3894_v33 = vsub.s32 %v2393_v3, %v3427_v31  ;;  %v2414_v62 = vadd.s32 4294967264, %v3878_v10  ;;  %v3898_v8 = vsub.s32 %v2400_v30, %v3427_v31 }
 0x3dd   :  { %v3881_v18 = vpop.xlane.xlu1 %1935  ;;  %2924 = vpow2.f32 %v2742_v59  ;;  %v2421_v38 = vadd.s32 4294967256, %v3878_v10  ;;  %v2428_v11 = vadd.s32 4294967248, %v3878_v10  ;;  %v2435_v49 = vadd.s32 4294967240, %v3878_v10 }
 0x3de   :  { %2926 = vpow2.f32 %v2743_v61  ;;  %v2442_v4 = vadd.s32 4294967232, %v3878_v10  ;;  %v3907_v52 = vsub.s32 %v2407_v28, %v3427_v31  ;;  %v2449_v53 = vadd.s32 4294967224, %v3878_v10 }
 0x3df   :  { %2928 = vpow2.f32 %v2744_v6  ;;  %v3911_v48 = vsub.s32 %v2414_v62, %v3427_v31  ;;  %v2456_v55 = vadd.s32 4294967216, %v3878_v10  ;;  %v3915_v57 = vsub.s32 %v2421_v38, %v3427_v31 }
 0x3e0   :  { %2930 = vpow2.f32 %v2745_v5  ;;  %v3918_v58 = vsub.s32 %v2428_v11, %v3427_v31  ;;  %v3923_v61 = vsub.s32 %v2435_v49, %v3427_v31  ;;  %v3926_v0 = vsub.s32 %v2442_v4, %v3427_v31 }
 0x3e1   :  { %v3886_v2 = vpop.xlane.xlu1 %1890  ;;  %2932 = vpow2.f32 %v2746_v15  ;;  %v3929_v9 = vsub.s32 %v2449_v53, %v3427_v31  ;;  %v2005_v62 = vadd.f32 %v3862_v47, %v3830_v13  ;;  %v2008_v49 = vadd.f32 %v3862_v47, %v3844_v1 }
 0x3e2   :  { %v2915_v26 = vpop.eup %2914  ;;  %2934 = vpow2.f32 %v2747_v16  ;;  %v2003_v16 = vadd.f32 %v3862_v47, %v3836_v25  ;;  %v2006_v25 = vadd.f32 %v3862_v47, %v3838_v27  ;;  %v2009_v27 = vadd.f32 %v3862_v47, %v3828_v35 }
 0x3e3   :  { %v2917_v20 = vpop.eup %2916  ;;  %2936 = vpow2.f32 %v2748_v12  ;;  %v3934_v12 = vsub.s32 %v2456_v55, %v3427_v31  ;;  %v2206_v11 = vadd.f32 1.0, %v2915_v26  ;;  %v2010_v26 = vadd.f32 %v3862_v47, %v3842_v21 }
 0x3e4   :  { %v2919_v34 = vpop.eup %2918  ;;  %v2211_v42 = vadd.f32 1.0, %v2917_v20  ;;  %2938 = vpow2.f32 %v2749_v17  ;;  %v2004_v17 = vadd.f32 %v3862_v47, %v3840_v29  ;;  %v2007_v29 = vadd.f32 %v3862_v47, %v3832_v23 }
 0x3e5   :  { %v3902_v46 = vpop.xlane.xlu1 %1938  ;;  %v2921_v19 = vpop.eup %2920  ;;  %v2212_v50 = vadd.f32 1.0, %v2919_v34  ;;  %v2722_v13 = vmul.f32 -1.442695, %v2003_v16  ;;  %v2011_v23 = vadd.f32 %v3862_v47, %v3834_v24  ;;  %v2012_v1 = vadd.f32 %v3862_v47, %v3852_v40 }
 0x3e6   :  { %v2923_v51 = vpop.eup %2922  ;;  %v2213_v14 = vadd.f32 1.0, %v2921_v19  ;;  %2940 = vrcp.f32 %v2211_v42  ;;  %v2724_v53 = vmul.f32 -1.442695, %v2005_v62  ;;  %v2013_v21 = vadd.f32 %v3862_v47, %v3858_v44 }
 0x3e7   :  { %v2925_v54 = vpop.eup %2924  ;;  %v2214_v56 = vadd.f32 1.0, %v2923_v51  ;;  %2942 = vrcp.f32 %v2212_v50  ;;  %v2723_v50 = vmul.f32 -1.442695, %v2004_v17  ;;  %v2725_v55 = vmul.f32 -1.442695, %v2006_v25 }
 0x3e8   :  { %v2927_v36 = vpop.eup %2926  ;;  %v2215_v63 = vadd.f32 1.0, %v2925_v54  ;;  %2944 = vrcp.f32 %v2213_v14  ;;  %v2015_v24 = vadd.f32 %v3862_v47, %v3873_v22  ;;  %v2726_v40 = vmul.f32 -1.442695, %v2007_v29 }
 0x3e9   :  { %v3920_v59 = vpop.xlane.xlu1 %1893  ;;  %v2929_v60 = vpop.eup %2928  ;;  %v2216_v6 = vadd.f32 1.0, %v2927_v36  ;;  %2946 = vrcp.f32 %v2214_v56 }
 0x3ea   :  { %v2931_v5 = vpop.eup %2930  ;;  %v2217_v15 = vadd.f32 1.0, %v2929_v60  ;;  %2948 = vrcp.f32 %v2215_v63 }
 0x3eb   :  { %v2933_v3 = vpop.eup %2932  ;;  %v2218_v30 = vadd.f32 1.0, %v2931_v5  ;;  %2950 = vrcp.f32 %v2216_v6  ;;  %v2727_v6 = vmul.f32 -1.442695, %v2008_v49  ;;  %v2728_v5 = vmul.f32 -1.442695, %v2009_v27 }
 0x3ec   :  { %v2935_v28 = vpop.eup %2934  ;;  %v2219_v20 = vadd.f32 1.0, %v2933_v3  ;;  %2952 = vrcp.f32 %v2217_v15  ;;  %v2729_v3 = vmul.f32 -1.442695, %v2010_v26  ;;  %v2731_v49 = vmul.f32 -1.442695, %v2012_v1 }
 0x3ed   :  { %v3942_v34 = vpop.xlane.xlu1 %1941  ;;  %v2937_v38 = vpop.eup %2936  ;;  %v2220_v42 = vadd.f32 1.0, %v2935_v28  ;;  %2954 = vrcp.f32 %v2218_v30 }
 0x3ee   :  { %v2221_v19 = vadd.f32 1.0, %v2937_v38  ;;  %2956 = vrcp.f32 %v2219_v20  ;;  %v3948_v4 = vpop.eup %2938  ;;  %v2730_v20 = vmul.f32 -1.442695, %v2011_v23 }
 0x3ef   :  { %2958 = vrcp.f32 %v2220_v42 }
 0x3f0   :  { %v2941_v51 = vpop.eup %2940  ;;  %2960 = vrcp.f32 %v2221_v19 }
 0x3f1   :  { %v3958_v14 = vpop.xlane.xlu1 %1896  ;;  %v2943_v54 = vpop.eup %2942  ;;  %2962 = vrcp.f32 %v2206_v11  ;;  %v2501_v35 = vrot.slane %v2941_v51, %v3891_v32  ;;  %v2031_v11 = vadd.f32 %v3862_v47, %v3881_v18  ;;  %v2734_v18 = vmul.f32 -1.442695, %v2015_v24 }
 0x3f2   :  { %v2945_v56 = vpop.eup %2944  ;;  %v2505_v36 = vrot.slane %v2943_v54, %v3894_v33  ;;  %2964 = vpow2.f32 %v2722_v13 }
 0x3f3   :  { %v2947_v63 = vpop.eup %2946  ;;  %v2510_v60 = vrot.slane %v2945_v56, %v3898_v8  ;;  %2966 = vpow2.f32 %v2723_v50  ;;  %v2732_v50 = vmul.f32 -1.442695, %v2013_v21  ;;  %v2750_v1 = vmul.f32 -1.442695, %v2031_v11 }
 0x3f4   :  { %v2949_v15 = vpop.eup %2948  ;;  %v2506_v16 = vsel %vm2398_vm3, %v2505_v36, %v2501_v35  ;;  %v2515_v44 = vrot.slane %v2947_v63, %v3907_v52  ;;  %2968 = vpow2.f32 %v2724_v53 }
 0x3f5   :  { %v3969_v30 = vpop.xlane.xlu1 %1944  ;;  %v2951_v17 = vpop.eup %2950  ;;  %v2511_v22 = vsel %vm2405_vm5, %v2510_v60, %v2506_v16  ;;  %v2520_v28 = vrot.slane %v2949_v15, %v3911_v48  ;;  %2970 = vpow2.f32 %v2725_v55 }
 0x3f6   :  { %v2953_v62 = vpop.eup %2952  ;;  %v2516_v25 = vsel %vm2412_vm6, %v2515_v44, %v2511_v22  ;;  %v2525_v38 = vrot.slane %v2951_v17, %v3915_v57  ;;  %2972 = vpow2.f32 %v2726_v40 }
 0x3f7   :  { %v2955_v42 = vpop.eup %2954  ;;  %v2521_v29 = vsel %vm2419_vm7, %v2520_v28, %v2516_v25  ;;  %v2530_v19 = vrot.slane %v2953_v62, %v3918_v58  ;;  %2974 = vpow2.f32 %v2727_v6 }
 0x3f8   :  { %v2957_v13 = vpop.eup %2956  ;;  %v2526_v27 = vsel %vm2426_vm8, %v2525_v38, %v2521_v29  ;;  %v2535_v26 = vrot.slane %v2955_v42, %v3923_v61  ;;  %2976 = vpow2.f32 %v2728_v5 }
 0x3f9   :  { %v2959_v51 = vpop.eup %2958  ;;  %v2531_v23 = vsel %vm2433_vm9, %v2530_v19, %v2526_v27  ;;  %v2540_v53 = vrot.slane %v2957_v13, %v3926_v0  ;;  %2978 = vpow2.f32 %v2729_v3  ;;  %v3985_v56 = vpop.xlane.xlu1 %1968 }
 0x3fa   :  { %v2961_v54 = vpop.eup %2960  ;;  %v2536_v35 = vsel %vm2440_vm10, %v2535_v26, %v2531_v23  ;;  %v2545_v55 = vrot.slane %v2959_v51, %v3929_v9  ;;  %2980 = vpow2.f32 %v2730_v20  ;;  %v2032_v26 = vadd.f32 %v3862_v47, %v3902_v46 }
 0x3fb   :  { %v3987_v36 = vpop.eup %2962  ;;  %v2541_v21 = vsel %vm2447_vm11, %v2540_v53, %v2536_v35  ;;  %v2550_v40 = vrot.slane %v2961_v54, %v3934_v12  ;;  %2982 = vpow2.f32 %v2731_v49  ;;  %v2016_v49 = vadd.f32 %v3862_v47, %v3886_v2 }
 0x3fc   :  { %v2965_v63 = vpop.eup %2964  ;;  %v2546_v60 = vsel %vm2454_vm12, %v2545_v55, %v2541_v21  ;;  %2984 = vpow2.f32 %v2732_v50  ;;  %v2035_v50 = vadd.f32 %v3862_v47, %v3854_v41  ;;  %v2222_v23 = vadd.f32 1.0, %v3948_v4 }
 0x3fd   :  { %v2967_v24 = vpop.eup %2966  ;;  %v3993_v6 = vsel %vm2461_vm13, %v2550_v40, %v2546_v60  ;;  %2986 = vpow2.f32 %v2734_v18  ;;  %v2195_v5 = vadd.f32 1.0, %v2965_v63  ;;  %v3995_v28 = vpop.xlane.xlu1 %1962  ;;  %v2017_v18 = vadd.f32 %v3862_v47, %v3920_v59 }
 0x3fe   :  { %v2969_v15 = vpop.eup %2968  ;;  %v2196_v16 = vadd.f32 1.0, %v2967_v24  ;;  %2988 = vpow2.f32 %v2750_v1  ;;  %v2033_v55 = vadd.f32 %v3862_v47, %v3942_v34  ;;  %v2036_v46 = vadd.f32 %v3862_v47, %v3848_v39 }
 0x3ff   :  { %v2971_v44 = vpop.eup %2970  ;;  %v2197_v3 = vadd.f32 1.0, %v2969_v15  ;;  %2990 = vrcp.f32 %v2195_v5  ;;  %v2735_v4 = vmul.f32 -1.442695, %v2016_v49  ;;  %v2018_v21 = vadd.f32 %v3862_v47, %v3958_v14 }
 0x400   :  { %v2973_v17 = vpop.eup %2972  ;;  %v2198_v22 = vadd.f32 1.0, %v2971_v44  ;;  %2992 = vrcp.f32 %v2196_v16  ;;  %v2751_v59 = vmul.f32 -1.442695, %v2032_v26  ;;  %v2034_v63 = vadd.f32 %v3862_v47, %v3969_v30 }
 0x401   :  { %v2975_v20 = vpop.eup %2974  ;;  %v2199_v62 = vadd.f32 1.0, %v2973_v17  ;;  %2994 = vrcp.f32 %v2197_v3  ;;  %v4006_v54 = vpop.xlane.xlu1 %1977  ;;  %v2037_v60 = vadd.f32 %v3862_v47, %v3850_v7  ;;  %v2736_v24 = vmul.f32 -1.442695, %v2017_v18 }
 0x402   :  { %v2977_v25 = vpop.eup %2976  ;;  %v2200_v38 = vadd.f32 1.0, %v2975_v20  ;;  %2996 = vrcp.f32 %v2198_v22  ;;  %v2038_v5 = vadd.f32 %v3862_v47, %v3846_v37  ;;  %v2752_v16 = vmul.f32 -1.442695, %v2033_v55 }
 0x403   :  { %v2979_v11 = vpop.eup %2978  ;;  %v2201_v42 = vadd.f32 1.0, %v2977_v25  ;;  %2998 = vrcp.f32 %v2199_v62  ;;  %v2039_v44 = vadd.f32 %v3862_v47, %v3860_v45  ;;  %v2737_v7 = vmul.f32 -1.442695, %v2018_v21 }
 0x404   :  { %v2981_v29 = vpop.eup %2980  ;;  %v2202_v19 = vadd.f32 1.0, %v2979_v11  ;;  %3000 = vrcp.f32 %v2200_v38  ;;  %v2754_v17 = vmul.f32 -1.442695, %v2035_v50  ;;  %v2753_v25 = vmul.f32 -1.442695, %v2034_v63 }
 0x405   :  { %v2983_v13 = vpop.eup %2982  ;;  %v2203_v27 = vadd.f32 1.0, %v2981_v29  ;;  %3002 = vrcp.f32 %v2201_v42  ;;  %v4025_v22 = vpop.xlane.xlu1 %1971 }
 0x406   :  { %v2985_v51 = vpop.eup %2984  ;;  %v2204_v53 = vadd.f32 1.0, %v2983_v13  ;;  %3004 = vrcp.f32 %v2202_v19  ;;  %v2755_v13 = vmul.f32 -1.442695, %v2036_v46 }
 0x407   :  { %v2987_v2 = vpop.eup %2986  ;;  %v2205_v35 = vadd.f32 1.0, %v2985_v51  ;;  %3006 = vrcp.f32 %v2203_v27  ;;  %v2040_v51 = vadd.f32 %v3862_v47, %v3995_v28 }
 0x408   :  { %v2989_v41 = vpop.eup %2988  ;;  %v2207_v1 = vadd.f32 1.0, %v2987_v2  ;;  %3008 = vrcp.f32 %v2204_v53  ;;  %v2756_v2 = vmul.f32 -1.442695, %v2037_v60 }
 0x409   :  { %v2991_v40 = vpop.eup %2990  ;;  %3010 = vrcp.f32 %v2205_v35  ;;  %v2223_v42 = vadd.f32 1.0, %v2989_v41  ;;  %v2757_v41 = vmul.f32 -1.442695, %v2038_v5 }
 0x40a   :  { %v2993_v34 = vpop.eup %2992  ;;  %3012 = vrcp.f32 %v2222_v23  ;;  %v2392_v39 = vrot.slane %v2991_v40, %v3891_v32  ;;  %v2758_v40 = vmul.f32 -1.442695, %v2039_v44  ;;  %v2463_v44 = vadd.s32 4294967208, %v3878_v10 }
 0x40b   :  { %v2995_v15 = vpop.eup %2994  ;;  %3014 = vrcp.f32 %v2207_v1  ;;  %v2397_v14 = vrot.slane %v2993_v34, %v3894_v33  ;;  %v4041_v1 = vpop.xlane.xlu1 %1974  ;;  %v2759_v34 = vmul.f32 -1.442695, %v2040_v51 }
 0x40c   :  { %v2997_v30 = vpop.eup %2996  ;;  %v2404_v3 = vrot.slane %v2995_v15, %v3898_v8  ;;  %3016 = vpow2.f32 %v2735_v4 }
 0x40d   :  { %v2999_v20 = vpop.eup %2998  ;;  %v2399_v62 = vsel %vm2398_vm3, %v2397_v14, %v2392_v39  ;;  %v2411_v37 = vrot.slane %v2997_v30, %v3907_v52  ;;  %3018 = vpow2.f32 %v2751_v59  ;;  %v1981_v14 = vpop.xlane.xlu0 %1980 }
 0x40e   :  { %v3001_v38 = vpop.eup %3000  ;;  %v2406_v11 = vsel %vm2405_vm5, %v2404_v3, %v2399_v62  ;;  %v2418_v45 = vrot.slane %v2999_v20, %v3911_v48  ;;  %3020 = vpow2.f32 %v2736_v24  ;;  %v2042_v3 = vadd.f32 %v3862_v47, %v3985_v56 }
 0x40f   :  { %v3003_v29 = vpop.eup %3002  ;;  %v2413_v19 = vsel %vm2412_vm6, %v2411_v37, %v2406_v11  ;;  %v2425_v49 = vrot.slane %v3001_v38, %v3915_v57  ;;  %3022 = vpow2.f32 %v2752_v16  ;;  %v2041_v62 = vadd.f32 %v3862_v47, %v3856_v43  ;;  %v1984_v37 = vpop.xlane.xlu1 %1983 }
 0x410   :  { %v3005_v27 = vpop.eup %3004  ;;  %v2420_v26 = vsel %vm2419_vm7, %v2418_v45, %v2413_v19  ;;  %v2432_v50 = vrot.slane %v3003_v29, %v3918_v58  ;;  %3024 = vpow2.f32 %v2737_v7  ;;  %v2477_v38 = vadd.s32 4294967192, %v3878_v10 }
 0x411   :  { %v3007_v23 = vpop.eup %3006  ;;  %v2427_v53 = vsel %vm2426_vm8, %v2425_v49, %v2420_v26  ;;  %v2439_v18 = vrot.slane %v3005_v27, %v3923_v61  ;;  %3026 = vpow2.f32 %v2753_v25  ;;  %v2484_v11 = vadd.s32 4294967184, %v3878_v10  ;;  %v1990_v51 = vpop.xlane.xlu0 %1989 }
 0x412   :  { %v3009_v35 = vpop.eup %3008  ;;  %v2434_v55 = vsel %vm2433_vm9, %v2432_v50, %v2427_v53  ;;  %v2446_v46 = vrot.slane %v3007_v23, %v3926_v0  ;;  %3028 = vrcp.f32 %v2223_v42  ;;  %v2491_v29 = vadd.s32 4294967176, %v3878_v10 }
 0x413   :  { %v3011_v4 = vpop.eup %3010  ;;  %v2441_v21 = vsel %vm2440_vm10, %v2439_v18, %v2434_v55  ;;  %v2453_v28 = vrot.slane %v3009_v35, %v3929_v9  ;;  %3030 = vpow2.f32 %v2754_v17  ;;  %v2470_v17 = vadd.s32 4294967200, %v3878_v10 }
 0x414   :  { %v4045_v59 = vpop.eup %3012  ;;  %v2448_v63 = vsel %vm2447_vm11, %v2446_v46, %v2441_v21  ;;  %v2460_v60 = vrot.slane %v3011_v4, %v3934_v12  ;;  %3032 = vpow2.f32 %v2755_v13  ;;  %v4065_v49 = vsub.s32 %v2463_v44, %v3427_v31 }
 0x415   :  { %v4049_v39 = vpop.eup %3014  ;;  %v2455_v24 = vsel %vm2454_vm12, %v2453_v28, %v2448_v63  ;;  %3034 = vpow2.f32 %v2756_v2  ;;  %v2761_v13 = vmul.f32 -1.442695, %v2042_v3  ;;  %v2760_v50 = vmul.f32 -1.442695, %v2041_v62 }
 0x416   :  { %v3017_v5 = vpop.eup %3016  ;;  %v4053_v15 = vsel %vm2461_vm13, %v2460_v60, %v2455_v24  ;;  %3036 = vpow2.f32 %v2757_v41  ;;  %v4070_v53 = vsub.s32 %v2470_v17, %v3427_v31  ;;  %v4073_v10 = vsub.s32 %v2477_v38, %v3427_v31  ;;  %v1987_v41 = vpop.xlane.xlu1 %1986 }
 0x417   :  { %v3019_v16 = vpop.eup %3018  ;;  %v2208_v30 = vadd.f32 1.0, %v3017_v5  ;;  %3038 = vpow2.f32 %v2758_v40  ;;  %v4076_v18 = vsub.s32 %v2484_v11, %v3427_v31  ;;  %v4079_v35 = vsub.s32 %v2491_v29, %v3427_v31 }
 0x418   :  { %v3021_v7 = vpop.eup %3020  ;;  %v2224_v20 = vadd.f32 1.0, %v3019_v16  ;;  %3040 = vpow2.f32 %v2759_v34  ;;  %v2046_v46 = vadd.f32 %v3862_v47, %v1981_v14  ;;  %v2045_v28 = vadd.f32 %v3862_v47, %v4006_v54 }
 0x419   :  { %v3023_v25 = vpop.eup %3022  ;;  %3042 = vrcp.f32 %v2208_v30  ;;  %v2209_v45 = vadd.f32 1.0, %v3021_v7  ;;  %v2049_v40 = vadd.f32 %v3862_v47, %v1990_v51  ;;  %v2555_v60 = vrot.slane %v4045_v59, %v4065_v49 }
 0x41a   :  { %v3025_v42 = vpop.eup %3024  ;;  %3044 = vrcp.f32 %v2224_v20  ;;  %v2225_v56 = vadd.f32 1.0, %v3023_v25  ;;  %v2043_v34 = vadd.f32 %v3862_v47, %v4025_v22  ;;  %v2467_v5 = vrot.slane %v3987_v36, %v4065_v49  ;;  %v1993_v25 = vpop.xlane.xlu1 %1992 }
 0x41b   :  { %v3027_v19 = vpop.eup %3026  ;;  %3046 = vrcp.f32 %v2209_v45  ;;  %v2210_v43 = vadd.f32 1.0, %v3025_v42  ;;  %v2044_v54 = vadd.f32 %v3862_v47, %v4041_v1  ;;  %v2556_v59 = vsel %vm2468_vm14, %v2555_v60, %v3993_v6 }
 0x41c   :  { %v4067_v27 = vpop.eup %3028  ;;  %3048 = vrcp.f32 %v2225_v56  ;;  %v2226_v26 = vadd.f32 1.0, %v3027_v19  ;;  %v2765_v44 = vmul.f32 -1.442695, %v2046_v46  ;;  %v2047_v30 = vadd.f32 %v3862_v47, %v1984_v37 }
 0x41d   :  { %v3031_v23 = vpop.eup %3030  ;;  %3050 = vrcp.f32 %v2210_v43  ;;  %v2764_v7 = vmul.f32 -1.442695, %v2045_v28  ;;  %v2768_v17 = vmul.f32 -1.442695, %v2049_v40  ;;  %v2469_v20 = vsel %vm2468_vm14, %v2467_v5, %v4053_v15 }
 0x41e   :  { %v3033_v2 = vpop.eup %3032  ;;  %3052 = vrcp.f32 %v2226_v26  ;;  %v2227_v55 = vadd.f32 1.0, %v3031_v23  ;;  %v2560_v1 = vrot.slane %v4067_v27, %v4070_v53  ;;  %v2762_v62 = vmul.f32 -1.442695, %v2043_v34 }
 0x41f   :  { %v3035_v4 = vpop.eup %3034  ;;  %3054 = vpow2.f32 %v2761_v13  ;;  %v2228_v21 = vadd.f32 1.0, %v3033_v2  ;;  %v2474_v38 = vrot.slane %v4049_v39, %v4070_v53  ;;  %v2763_v45 = vmul.f32 -1.442695, %v2044_v54 }
 0x420   :  { %v3037_v63 = vpop.eup %3036  ;;  %3056 = vpow2.f32 %v2760_v50  ;;  %v2229_v31 = vadd.f32 1.0, %v3035_v4  ;;  %v2766_v15 = vmul.f32 -1.442695, %v2047_v30  ;;  %v2048_v29 = vadd.f32 %v3862_v47, %v1987_v41 }
 0x421   :  { %v3039_v24 = vpop.eup %3038  ;;  %v2230_v14 = vadd.f32 1.0, %v3037_v63  ;;  %3058 = vrcp.f32 %v2227_v55  ;;  %v2476_v43 = vsel %vm2475_vm15, %v2474_v38, %v2469_v20  ;;  %v2050_v39 = vadd.f32 %v3862_v47, %v1993_v25 }
 0x422   :  { %v3041_v16 = vpop.eup %3040  ;;  %3060 = vrcp.f32 %v2228_v21  ;;  %v2561_v26 = vsel %vm2475_vm15, %v2560_v1, %v2556_v59  ;;  %v2231_v51 = vadd.f32 1.0, %v3039_v24  ;;  %v2767_v21 = vmul.f32 -1.442695, %v2048_v29 }
 0x423   :  { %v3043_v3 = vpop.eup %3042  ;;  %v2232_v22 = vadd.f32 1.0, %v3041_v16  ;;  %3062 = vrcp.f32 %v2229_v31  ;;  %v2769_v60 = vmul.f32 -1.442695, %v2050_v39 }
 0x424   :  { %v3045_v36 = vpop.eup %3044  ;;  %3064 = vrcp.f32 %v2230_v14  ;;  %v2481_v37 = vrot.slane %v3043_v3, %v4073_v10 }
 0x425   :  { %v3047_v6 = vpop.eup %3046  ;;  %v2565_v11 = vrot.slane %v3045_v36, %v4073_v10  ;;  %3066 = vrcp.f32 %v2232_v22 }
 0x426   :  { %v3049_v42 = vpop.eup %3048  ;;  %v2488_v56 = vrot.slane %v3047_v6, %v4076_v18  ;;  %3068 = vpow2.f32 %v2765_v44  ;;  %v2483_v2 = vsel %vm2482_vm0, %v2481_v37, %v2476_v43 }
 0x427   :  { %v3051_v19 = vpop.eup %3050  ;;  %v2570_v13 = vrot.slane %v3049_v42, %v4076_v18  ;;  %3070 = vpow2.f32 %v2764_v7  ;;  %v2566_v55 = vsel %vm2482_vm0, %v2565_v11, %v2561_v26 }
 0x428   :  { %v3053_v27 = vpop.eup %3052  ;;  %v2495_v50 = vrot.slane %v3051_v19, %v4079_v35  ;;  %3072 = vpow2.f32 %v2768_v17  ;;  %v2490_v4 = vsel %vm2489_vm1, %v2488_v56, %v2483_v2 }
 0x429   :  { %v3055_v23 = vpop.eup %3054  ;;  %v2575_v46 = vrot.slane %v3053_v27, %v4079_v35  ;;  %v2571_v47 = vsel %vm2489_vm1, %v2570_v13, %v2566_v55  ;;  %3074 = vpow2.f32 %v2762_v62 }
 0x42a   :  { %v3057_v41 = vpop.eup %3056  ;;  %v2497_v40 = vsel %vm2496_vm2, %v2495_v50, %v2490_v4  ;;  %3076 = vpow2.f32 %v2763_v45  ;;  %v2234_v22 = vadd.f32 1.0, %v3055_v23 }
 0x42b   :  { %v3059_v28 = vpop.eup %3058  ;;  %v2576_v63 = vsel %vm2496_vm2, %v2575_v46, %v2571_v47  ;;  %3078 = vpow2.f32 %v2766_v15  ;;  %v2233_v14 = vadd.f32 1.0, %v3057_v41 }
 0x42c   :  { %v3061_v31 = vpop.eup %3060  ;;  %v4119_v34 = vsel %vm2656_vm4, %v2576_v63, %v2497_v40  ;;  %v2580_v24 = vrot.slane %v3059_v28, %v3891_v32  ;;  %3080 = vrcp.f32 %v2231_v51 }
 0x42d   :  { %v3063_v5 = vpop.eup %3062  ;;  %v2584_v54 = vrot.slane %v3061_v31, %v3894_v33  ;;  %3082 = vpow2.f32 %v2767_v21 }
 0x42e   :  { %v3065_v16 = vpop.eup %3064  ;;  %v2589_v59 = vrot.slane %v3063_v5, %v3898_v8  ;;  %3084 = vpow2.f32 %v2769_v60 }
 0x42f   :  { %v2585_v44 = vsel %vm2398_vm3, %v2584_v54, %v2580_v24  ;;  %v2594_v30 = vrot.slane %v3065_v16, %v3907_v52  ;;  %v3067_v3 = vpop.eup %3066  ;;  %3086 = vrcp.f32 %v2233_v14  ;;  %vm2658_vm3 = vcmask 1042434  }
 0x430   :  { %v2590_v7 = vsel %vm2405_vm5, %v2589_v59, %v2585_v44  ;;  %v3069_v32 = vpop.eup %3068  ;;  %3088 = vrcp.f32 %v2234_v22  ;;  %v2604_v56 = vrot.slane %v3067_v3, %v3915_v57 }
 0x431   :  { %v2595_v17 = vsel %vm2412_vm6, %v2594_v30, %v2590_v7  ;;  %v3071_v36 = vpop.eup %3070  ;;  %v2238_v20 = vadd.f32 1.0, %v3069_v32 }
 0x432   :  { %v3073_v33 = vpop.eup %3072  ;;  %v2237_v1 = vadd.f32 1.0, %v3071_v36 }
 0x433   :  { %v3075_v62 = vpop.eup %3074  ;;  %3090 = vrcp.f32 %v2238_v20  ;;  %v2241_v52 = vadd.f32 1.0, %v3073_v33 }
 0x434   :  { %v3077_v8 = vpop.eup %3076  ;;  %v2235_v25 = vadd.f32 1.0, %v3075_v62  ;;  %3092 = vrcp.f32 %v2237_v1 }
 0x435   :  { %v3079_v6 = vpop.eup %3078  ;;  %v2236_v38 = vadd.f32 1.0, %v3077_v8 }
 0x436   :  { %v3081_v37 = vpop.eup %3080  ;;  %3094 = vrcp.f32 %v2235_v25  ;;  %v2239_v11 = vadd.f32 1.0, %v3079_v6 }
 0x437   :  { %v3083_v45 = vpop.eup %3082  ;;  %3096 = vrcp.f32 %v2236_v38  ;;  %v2599_v29 = vrot.slane %v3081_v37, %v3911_v48 }
 0x438   :  { %v3085_v42 = vpop.eup %3084  ;;  %3098 = vrcp.f32 %v2239_v11  ;;  %v2240_v15 = vadd.f32 1.0, %v3083_v45 }
 0x439   :  { %3100 = vrcp.f32 %v2241_v52  ;;  %v2242_v19 = vadd.f32 1.0, %v3085_v42  ;;  %v3087_v43 = vpop.eup %3086  ;;  %v2600_v13 = vsel %vm2419_vm7, %v2599_v29, %v2595_v17 }
 0x43a   :  { %3102 = vrcp.f32 %v2240_v15  ;;  %v2605_v39 = vsel %vm2426_vm8, %v2604_v56, %v2600_v13  ;;  %v3089_v27 = vpop.eup %3088  ;;  %v2609_v26 = vrot.slane %v3087_v43, %v3918_v58 }
 0x43b   :  { %3104 = vrcp.f32 %v2242_v19  ;;  %v2614_v2 = vrot.slane %v3089_v27, %v3923_v61 }
 0x43c   :  { %v2610_v57 = vsel %vm2433_vm9, %v2609_v26, %v2605_v39 }
 0x43d   :  { %v3091_v50 = vpop.eup %3090  ;;  %v2615_v41 = vsel %vm2440_vm10, %v2614_v2, %v2610_v57 }
 0x43e   :  { %v3093_v51 = vpop.eup %3092  ;;  %v2634_v63 = vrot.slane %v3091_v50, %v4065_v49 }
 0x43f   :  { %v2629_v21 = vrot.slane %v3093_v51, %v3934_v12 }
 0x440   :  { %v3095_v23 = vpop.eup %3094 }
 0x441   :  { %v3097_v48 = vpop.eup %3096  ;;  %v2619_v55 = vrot.slane %v3095_v23, %v3926_v0 }
 0x442   :  { %v3099_v46 = vpop.eup %3098  ;;  %v2624_v4 = vrot.slane %v3097_v48, %v3929_v9 }
 0x443   :  { %v3101_v47 = vpop.eup %3100  ;;  %v2620_v58 = vsel %vm2447_vm11, %v2619_v55, %v2615_v41  ;;  %v2639_v28 = vrot.slane %v3099_v46, %v4070_v53 }
 0x444   :  { %v3103_v40 = vpop.eup %3102  ;;  %v2625_v61 = vsel %vm2454_vm12, %v2624_v4, %v2620_v58  ;;  %v2649_v12 = vrot.slane %v3101_v47, %v4076_v18 }
 0x445   :  { %v3105_v60 = vpop.eup %3104  ;;  %v2630_v0 = vsel %vm2461_vm13, %v2629_v21, %v2625_v61  ;;  %v2644_v31 = vrot.slane %v3103_v40, %v4073_v10 }
 0x446   :  { %v2635_v24 = vsel %vm2468_vm14, %v2634_v63, %v2630_v0  ;;  %v2654_v9 = vrot.slane %v3105_v60, %v4079_v35 }
 0x447   :  { %v2640_v5 = vsel %vm2475_vm15, %v2639_v28, %v2635_v24 }
 0x448   :  { %v2645_v53 = vsel %vm2482_vm0, %v2644_v31, %v2640_v5 }
 0x449   :  { %v2650_v49 = vsel %vm2489_vm1, %v2649_v12, %v2645_v53 }
 0x44a   :  { %v2655_v14 = vsel %vm2496_vm2, %v2654_v9, %v2650_v49 }
 0x44b   :  { %v2659_v54 = vsel %vm2658_vm3, %v2655_v14, %v4119_v34 }
 0x44c   :  { %2661 = vst [vmem:[%s4165_s9] sm:$0x7] %v2659_v54 }

</bundles_post_ra>
